<compile_context>
chip_gen: v7x
topology: tpu7x:2x2x1
jax: 0.10.0
libtpu: 0.0.40
codegen_flags: <defaults>
</compile_context>

<pallas_src>
import math
import functools

import jax
import jax.numpy as jnp
from jax import lax
from jax.experimental import pallas as pl
from jax.experimental.pallas import tpu as pltpu

NEG_INF = float(jnp.finfo(jnp.float32).min)  # matches torch finfo(dtype).min extended-mask fill


# ----------------------------------------------------------------------------- in-kernel helpers

def _gelu_erf(x):
    # Exact (erf-based) GELU as used by HF act "gelu" (erf via Abramowitz & Stegun 7.1.26,
    # max abs err ~1.5e-7). Kept (instead of tanh-approx GELU) to preserve erf semantics;
    # the exp() lands on the EUP slot, the polynomial on the VPU.
    z = x * 0.7071067811865476
    a = jnp.abs(z)
    t = 1.0 / (1.0 + 0.3275911 * a)
    poly = t * (0.254829592 + t * (-0.284496736 + t * (1.421413741 +
             t * (-1.453152027 + t * 1.061405429))))
    erf_abs = 1.0 - poly * jnp.exp(-a * a)
    erf = jnp.where(z >= 0, erf_abs, -erf_abs)
    return 0.5 * x * (1.0 + erf)


def _layernorm(x, g, b, eps):
    # torch.nn.LayerNorm over the last dim, statistics in f32.
    mean = jnp.mean(x, axis=-1, keepdims=True)
    c = x - mean
    var = jnp.mean(c * c, axis=-1, keepdims=True)
    return c * lax.rsqrt(var + eps) * g + b


def _mm(a, w_ref):
    # bf16 x bf16 MXU matmul with an f32 accumulator.
    return jnp.dot(a.astype(jnp.bfloat16), w_ref[...],
                   preferred_element_type=jnp.float32)


def _attention_into(ctx_sc, q, k, v, add_mask, nh, scale, rows):
    """Multi-head attention; batch folded into the einsum batch dim, heads as a static loop.

    q: (B, rows, H), k/v: (B, Lk, H) (f32), add_mask: (B, 1, Lk) additive f32 bias.
    Each head's context is written straight into ctx_sc[:, :rows, head_lane_slice] (f32),
    so there is no lane-axis concatenate and the merged result never leaves VMEM.
    """
    H = q.shape[-1]
    hd = H // nh
    q16, k16, v16 = (t.astype(jnp.bfloat16) for t in (q, k, v))
    for h in range(nh):                                     # static unroll, nh is small
        sl = slice(h * hd, (h + 1) * hd)
        s = jnp.einsum('bqd,bkd->bqk', q16[:, :, sl], k16[:, :, sl],
                       preferred_element_type=jnp.float32) * scale
        s = s + add_mask
        s = s - jnp.max(s, axis=-1, keepdims=True)
        p = jnp.exp(s)
        # approx reciprocal (EUP slot); ~1e-3 rel. error, well below the bf16 operand noise.
        p = p * pl.reciprocal(jnp.sum(p, axis=-1, keepdims=True), approx=True)
        ctx_sc[:, :rows, sl] = jnp.einsum('bqk,bkd->bqd', p.astype(jnp.bfloat16),
                                          v16[:, :, sl],
                                          preferred_element_type=jnp.float32)


# ----------------------------------------------------------------------------- fused layer kernel

def _layer_kernel(*refs, has_cross, apply_input_ln, is_last, nh, num_q, eps, scale):
    ctx_sc = refs[-1]                 # (B, L, H) f32 VMEM scratch (attention context)
    o_ref = refs[-2]
    it = iter(refs[:-2])

    def take(n):
        return [next(it) for _ in range(n)]

    h_ref = next(it)
    mask_ref = next(it)
    enc_ref = next(it) if has_cross else None
    if apply_input_ln:
        in_ln_g, in_ln_b = take(2)
    sa_qkv_w, sa_qkv_b, sa_o_w, sa_o_b, sa_ln_g, sa_ln_b = take(6)
    if has_cross:
        ca_q_w, ca_q_b, ca_kv_w, ca_kv_b, ca_o_w, ca_o_b, ca_ln_g, ca_ln_b = take(8)
    ffq_i_w, ffq_i_b, ffq_o_w, ffq_o_b, ffq_ln_g, ffq_ln_b = take(6)
    if is_last:
        lm_w, lm_b = take(2)
    else:
        fft_i_w, fft_i_b, fft_o_w, fft_o_b, fft_ln_g, fft_ln_b = take(6)

    B, L, H = h_ref.shape
    Q = num_q
    T = L - Q
    mask = mask_ref[...].astype(jnp.float32)                      # (B, 1, L) additive

    # batch folded into the matmul M dimension: all projections run on (B*L, H) slabs.
    x = h_ref[...].astype(jnp.float32).reshape(B * L, H)
    if apply_input_ln:                                            # embeddings LayerNorm fused in
        x = _layernorm(x, in_ln_g[...], in_ln_b[...], eps)

    # --- self attention (fused QKV projection) -------------------------------
    qkv = _mm(x, sa_qkv_w) + sa_qkv_b[...]                        # (B*L, 3H) f32
    qkv3 = qkv.reshape(B, L, 3 * H)
    _attention_into(ctx_sc, qkv3[:, :, :H], qkv3[:, :, H:2 * H], qkv3[:, :, 2 * H:],
                    mask, nh, scale, L)
    ctx = ctx_sc[...].reshape(B * L, H)
    attn = _layernorm(_mm(ctx, sa_o_w) + sa_o_b[...] + x,
                      sa_ln_g[...], sa_ln_b[...], eps)            # (B*L, H)

    attn3 = attn.reshape(B, L, H)
    q_part = attn3[:, :Q, :].reshape(B * Q, H)

    # --- cross attention (query part only) -----------------------------------
    if has_cross:
        enc = enc_ref[...]                                        # (B, N, E), N == L (see forward)
        N, E = enc.shape[1], enc.shape[2]
        cq = (_mm(q_part, ca_q_w) + ca_q_b[...]).reshape(B, Q, H)
        ckv = (_mm(enc.reshape(B * N, E), ca_kv_w) + ca_kv_b[...]).reshape(B, N, 2 * H)
        # encoder mask is the SAME cat([query, text]) mask (faithful to the original forward)
        _attention_into(ctx_sc, cq, ckv[:, :, :H], ckv[:, :, H:], mask, nh, scale, Q)
        cctx = ctx_sc[:, :Q, :].reshape(B * Q, H)
        q_part = _layernorm(_mm(cctx, ca_o_w) + ca_o_b[...] + q_part,
                            ca_ln_g[...], ca_ln_b[...], eps)

    # --- query FFN (GELU intermediate never leaves VMEM) ----------------------
    iq = _gelu_erf(_mm(q_part, ffq_i_w) + ffq_i_b[...])
    q_out = _layernorm(_mm(iq, ffq_o_w) + ffq_o_b[...] + q_part,
                       ffq_ln_g[...], ffq_ln_b[...], eps)

    if is_last:
        # fused lm_projection of the query part; the last layer's text FFN is dead compute.
        proj = _mm(q_out, lm_w) + lm_b[...]
        o_ref[...] = proj.reshape(o_ref.shape).astype(o_ref.dtype)
    else:
        # --- text FFN ---------------------------------------------------------
        t_part = attn3[:, Q:, :].reshape(B * T, H)
        itx = _gelu_erf(_mm(t_part, fft_i_w) + fft_i_b[...])
        t_out = _layernorm(_mm(itx, fft_o_w) + fft_o_b[...] + t_part,
                           fft_ln_g[...], fft_ln_b[...], eps)
        # direct stores (no (L, H) concatenate materialization)
        o_ref[:, :Q, :] = q_out.reshape(B, Q, H).astype(o_ref.dtype)
        o_ref[:, Q:, :] = t_out.reshape(B, T, H).astype(o_ref.dtype)


_SA = ("sa_qkv_w", "sa_qkv_b", "sa_o_w", "sa_o_b", "sa_ln_g", "sa_ln_b")
_CA = ("ca_q_w", "ca_q_b", "ca_kv_w", "ca_kv_b", "ca_o_w", "ca_o_b", "ca_ln_g", "ca_ln_b")
_FFQ = ("ffq_i_w", "ffq_i_b", "ffq_o_w", "ffq_o_b", "ffq_ln_g", "ffq_ln_b")
_FFT = ("fft_i_w", "fft_i_b", "fft_o_w", "fft_o_b", "fft_ln_g", "fft_ln_b")


def _full_spec(a):
    if a.ndim == 2:
        return pl.BlockSpec(a.shape, lambda i: (0, 0))
    return pl.BlockSpec(a.shape, lambda i: (0, 0, 0))


def qformer_layer(h, enc, ext_mask, lp, extra, cfg, *, has_cross, apply_input_ln, is_last):
    """One InstructBlipQFormerLayer as a single fused pallas_call (whole batch per grid step)."""
    B, L, H = h.shape
    nh = cfg["num_attention_heads"]
    hd = H // nh
    eps = cfg["layer_norm_eps"]
    scale = 1.0 / math.sqrt(hd)
    Q = cfg["num_queries"]
    T = L - Q
    I = cfg["intermediate_size"]

    inputs = [h, ext_mask]
    if has_cross:
        inputs.append(enc)
    if apply_input_ln:
        inputs += [extra["emb_ln_g"], extra["emb_ln_b"]]
    names = _SA + (_CA if has_cross else ()) + _FFQ + (() if is_last else _FFT)
    inputs += [lp[n] for n in names]
    if is_last:
        inputs += [extra["lm_proj_w"], extra["lm_proj_b"]]
    in_specs = [_full_spec(a) for a in inputs]

    if is_last:
        P = extra["lm_proj_w"].shape[1]
        out_shape = jax.ShapeDtypeStruct((B, Q, P), jnp.float32)
        out_spec = pl.BlockSpec((B, Q, P), lambda i: (0, 0, 0))
    else:
        out_shape = jax.ShapeDtypeStruct((B, L, H), jnp.bfloat16)   # bf16 inter-layer activations
        out_spec = pl.BlockSpec((B, L, H), lambda i: (0, 0, 0))

    # rough advisory cost estimate so XLA schedules around the num_layers-call chain
    flops = 2 * B * L * H * 3 * H + 4 * B * nh * L * L * hd + 2 * B * L * H * H
    trans = B * nh * L * L + B * Q * I
    if has_cross:
        E = enc.shape[-1]
        flops += (2 * B * Q * H * H + 2 * B * L * E * 2 * H
                  + 4 * B * nh * Q * L * hd + 2 * B * Q * H * H)
        trans += B * nh * Q * L
    flops += 4 * B * Q * H * I
    if is_last:
        flops += 2 * B * Q * H * extra["lm_proj_w"].shape[1]
    else:
        flops += 4 * B * T * H * I
        trans += B * T * I
    bytes_accessed = sum(int(a.size) * a.dtype.itemsize for a in inputs)
    bytes_accessed += int(math.prod(out_shape.shape)) * jnp.dtype(out_shape.dtype).itemsize

    kernel = functools.partial(_layer_kernel, has_cross=has_cross,
                               apply_input_ln=apply_input_ln, is_last=is_last,
                               nh=nh, num_q=Q, eps=eps, scale=scale)
    return pl.pallas_call(
        kernel,
        out_shape=out_shape,
        grid=(1,),
        in_specs=in_specs,
        out_specs=out_spec,
        scratch_shapes=[pltpu.VMEM((B, L, H), jnp.float32)],
        compiler_params=pltpu.CompilerParams(
            dimension_semantics=("arbitrary",),          # never megacore-split the tiny batch
            vmem_limit_bytes=32 * 1024 * 1024),
        cost_estimate=pl.CostEstimate(flops=int(flops), transcendentals=int(trans),
                                      bytes_accessed=int(bytes_accessed)),
    )(*inputs)


# ----------------------------------------------------------------------------- forward

def qformer_connector_forward(fparams, cfg, embeds, input_text_ids,
                              input_text_attention_mask=None):
    """Mirrors InstructQFormerConnector.forward (eval mode). Expects fused (bf16) params."""
    B, T = input_text_ids.shape
    Q = cfg["num_queries"]
    H = cfg["hidden_size"]
    L = Q + T
    # forward() reuses the cat([query, text]) mask as the encoder mask -> N_enc must be Q+T.
    assert embeds.shape[1] == L, "encoder sequence length must equal num_queries + text_len"

    if input_text_attention_mask is None:
        input_text_attention_mask = jnp.ones_like(input_text_ids)
    query_mask = jnp.ones((B, Q), dtype=input_text_attention_mask.dtype)
    attn_mask = jnp.concatenate([query_mask, input_text_attention_mask], axis=1)   # (B, Q+T)
    # additive extended mask, built ONCE and reused by every layer (self + cross attention)
    ext_mask = ((1.0 - attn_mask.astype(jnp.float32)) * NEG_INF).reshape(B, 1, L)

    # --- embeddings (table gather + position add stay in plain JAX) ------------
    word = jnp.take(fparams["word_embeddings"], input_text_ids, axis=0)            # (B, T, H)
    text_emb = word + fparams["position_embeddings"][:T][None, :, :]
    query_tokens = jnp.broadcast_to(fparams["query_tokens"], (B, Q, H))
    h = jnp.concatenate([query_tokens, text_emb], axis=1)                          # (B, L, H) f32
    # embeddings LayerNorm is fused into layer 0 (apply_input_ln=True)

    enc16 = embeds.astype(jnp.bfloat16)   # cross-attn KV matmul operand dtype (stats stay f32)

    n_layers = cfg["num_hidden_layers"]
    for li in range(n_layers):
        h = qformer_layer(
            h, enc16, ext_mask, fparams["layers"][li], fparams, cfg,
            has_cross=cfg["has_cross"][li],
            apply_input_ln=(li == 0),
            is_last=(li == n_layers - 1))
    # last layer already returned lm_projection(query_output): (B, Q, input_size) f32
    return h


# ----------------------------------------------------------------------------- params

def init_params(key, cfg, vocab_size, pad_token_id=0):
    """HF-style parameter layout (separate q/k/v denses), fused/bf16-cast by fuse_params."""
    H = cfg["hidden_size"]
    I = cfg["intermediate_size"]
    E = cfg["encoder_hidden_size"]
    keys = iter(jax.random.split(key, 256))

    def dense(fi, fo):
        return {"w": jax.random.normal(next(keys), (fi, fo), jnp.float32) * 0.02,
                "b": jax.random.normal(next(keys), (fo,), jnp.float32) * 0.02}

    word = jax.random.normal(next(keys), (vocab_size, H), jnp.float32) * 0.02
    word = word.at[pad_token_id].set(0.0)  # padding_idx row zeroed (nn.Embedding init)

    params = {
        "word_embeddings": word,
        "position_embeddings": jax.random.normal(
            next(keys), (cfg["max_position_embeddings"], H), jnp.float32) * 0.02,
        "emb_ln_g": jnp.ones((H,), jnp.float32),
        "emb_ln_b": jnp.zeros((H,), jnp.float32),
        "query_tokens": jnp.zeros((1, cfg["num_queries"], H), jnp.float32),  # torch.zeros init
        "lm_proj": dense(H, cfg["input_size"]),
        "layers": [],
    }
    for li in range(cfg["num_hidden_layers"]):
        lp = {
            "sa_q": dense(H, H), "sa_k": dense(H, H), "sa_v": dense(H, H), "sa_o": dense(H, H),
            "sa_ln_g": jnp.ones((H,), jnp.float32), "sa_ln_b": jnp.zeros((H,), jnp.float32),
            "ffq_i": dense(H, I), "ffq_o": dense(I, H),
            "ffq_ln_g": jnp.ones((H,), jnp.float32), "ffq_ln_b": jnp.zeros((H,), jnp.float32),
            "fft_i": dense(H, I), "fft_o": dense(I, H),
            "fft_ln_g": jnp.ones((H,), jnp.float32), "fft_ln_b": jnp.zeros((H,), jnp.float32),
        }
        if cfg["has_cross"][li]:
            lp.update({
                "ca_q": dense(H, H), "ca_k": dense(E, H), "ca_v": dense(E, H), "ca_o": dense(H, H),
                "ca_ln_g": jnp.ones((H,), jnp.float32), "ca_ln_b": jnp.zeros((H,), jnp.float32),
            })
        params["layers"].append(lp)
    return params


def fuse_params(params, cfg):
    """One-time prep: concat QKV / KV weights along N, cast weight matrices to bf16 (MXU
    operand dtype), keep biases and LayerNorm params as f32 rows."""
    def w16(x):
        return x.astype(jnp.bfloat16)

    def row(v):
        return v.reshape(1, -1).astype(jnp.float32)

    fused = {
        "word_embeddings": params["word_embeddings"],
        "position_embeddings": params["position_embeddings"],
        "query_tokens": params["query_tokens"],
        "emb_ln_g": row(params["emb_ln_g"]), "emb_ln_b": row(params["emb_ln_b"]),
        "lm_proj_w": w16(params["lm_proj"]["w"]), "lm_proj_b": row(params["lm_proj"]["b"]),
        "layers": [],
    }
    for li, lp in enumerate(params["layers"]):
        f = {
            "sa_qkv_w": w16(jnp.concatenate(
                [lp["sa_q"]["w"], lp["sa_k"]["w"], lp["sa_v"]["w"]], axis=1)),
            "sa_qkv_b": row(jnp.concatenate(
                [lp["sa_q"]["b"], lp["sa_k"]["b"], lp["sa_v"]["b"]])),
            "sa_o_w": w16(lp["sa_o"]["w"]), "sa_o_b": row(lp["sa_o"]["b"]),
            "sa_ln_g": row(lp["sa_ln_g"]), "sa_ln_b": row(lp["sa_ln_b"]),
            "ffq_i_w": w16(lp["ffq_i"]["w"]), "ffq_i_b": row(lp["ffq_i"]["b"]),
            "ffq_o_w": w16(lp["ffq_o"]["w"]), "ffq_o_b": row(lp["ffq_o"]["b"]),
            "ffq_ln_g": row(lp["ffq_ln_g"]), "ffq_ln_b": row(lp["ffq_ln_b"]),
            "fft_i_w": w16(lp["fft_i"]["w"]), "fft_i_b": row(lp["fft_i"]["b"]),
            "fft_o_w": w16(lp["fft_o"]["w"]), "fft_o_b": row(lp["fft_o"]["b"]),
            "fft_ln_g": row(lp["fft_ln_g"]), "fft_ln_b": row(lp["fft_ln_b"]),
        }
        if cfg["has_cross"][li]:
            f.update({
                "ca_q_w": w16(lp["ca_q"]["w"]), "ca_q_b": row(lp["ca_q"]["b"]),
                "ca_kv_w": w16(jnp.concatenate([lp["ca_k"]["w"], lp["ca_v"]["w"]], axis=1)),
                "ca_kv_b": row(jnp.concatenate([lp["ca_k"]["b"], lp["ca_v"]["b"]])),
                "ca_o_w": w16(lp["ca_o"]["w"]), "ca_o_b": row(lp["ca_o"]["b"]),
                "ca_ln_g": row(lp["ca_ln_g"]), "ca_ln_b": row(lp["ca_ln_b"]),
            })
        fused["layers"].append(f)
    return fused


# ----------------------------------------------------------------------------- main

if __name__ == "__main__":
    key = jax.random.PRNGKey(0)

    # Small shapes consistent with the module's forward.
    B, T, Q = 2, 8, 8
    input_size = 64      # LLM hidden size -> qformer hidden_size
    output_size = 32     # modality encoder hidden size -> encoder_hidden_size
    N_enc = Q + T        # forward() reuses the (B, Q+T) mask as the encoder mask,
                         # so the encoder sequence length must equal Q+T.
    vocab_size = 100

    cfg = dict(
        num_hidden_layers=4,
        num_attention_heads=8,
        intermediate_size=128,           # reduced from the default 1024 for a small demo
        cross_attention_frequency=2,
        layer_norm_eps=1e-12,
        max_position_embeddings=32,
        hidden_size=input_size,
        encoder_hidden_size=output_size,
        input_size=input_size,
        num_queries=Q,
    )
    cfg["has_cross"] = tuple(
        (li % cfg["cross_attention_frequency"]) == 0 for li in range(cfg["num_hidden_layers"])
    )

    kp, ke, ki = jax.random.split(key, 3)
    params = init_params(kp, cfg, vocab_size, pad_token_id=0)
    fparams = fuse_params(params, cfg)   # one-time weight fusion + bf16 cast
    embeds = jax.random.normal(ke, (B, N_enc, output_size), jnp.float32)
    input_text_ids = jax.random.randint(ki, (B, T), 0, vocab_size, dtype=jnp.int32)

    out = qformer_connector_forward(fparams, cfg, embeds, input_text_ids)
    out = jax.block_until_ready(out)

    assert out.shape == (B, Q, input_size), out.shape
    assert bool(jnp.all(jnp.isfinite(out)))
    # TODO(synk): dropout layers are treated as eval-mode identity (no RNG); the embedding
    # table gather stays in plain JAX (jnp.take) rather than an in-kernel DMA gather.
    print("KERNEL_OK")
</pallas_src>

<mosaic_0001>
module attributes {stable_mosaic.version = 11 : i64} {
  func.func @_layer_kernel(%arg0: i32, %arg1: memref<2x16x64xf32, #tpu.memory_space<vmem>>, %arg2: memref<2x1x16xf32, #tpu.memory_space<vmem>>, %arg3: memref<2x16x32xbf16, #tpu.memory_space<vmem>>, %arg4: memref<1x64xf32, #tpu.memory_space<vmem>>, %arg5: memref<1x64xf32, #tpu.memory_space<vmem>>, %arg6: memref<64x192xbf16, #tpu.memory_space<vmem>>, %arg7: memref<1x192xf32, #tpu.memory_space<vmem>>, %arg8: memref<64x64xbf16, #tpu.memory_space<vmem>>, %arg9: memref<1x64xf32, #tpu.memory_space<vmem>>, %arg10: memref<1x64xf32, #tpu.memory_space<vmem>>, %arg11: memref<1x64xf32, #tpu.memory_space<vmem>>, %arg12: memref<64x64xbf16, #tpu.memory_space<vmem>>, %arg13: memref<1x64xf32, #tpu.memory_space<vmem>>, %arg14: memref<32x128xbf16, #tpu.memory_space<vmem>>, %arg15: memref<1x128xf32, #tpu.memory_space<vmem>>, %arg16: memref<64x64xbf16, #tpu.memory_space<vmem>>, %arg17: memref<1x64xf32, #tpu.memory_space<vmem>>, %arg18: memref<1x64xf32, #tpu.memory_space<vmem>>, %arg19: memref<1x64xf32, #tpu.memory_space<vmem>>, %arg20: memref<64x128xbf16, #tpu.memory_space<vmem>>, %arg21: memref<1x128xf32, #tpu.memory_space<vmem>>, %arg22: memref<128x64xbf16, #tpu.memory_space<vmem>>, %arg23: memref<1x64xf32, #tpu.memory_space<vmem>>, %arg24: memref<1x64xf32, #tpu.memory_space<vmem>>, %arg25: memref<1x64xf32, #tpu.memory_space<vmem>>, %arg26: memref<64x128xbf16, #tpu.memory_space<vmem>>, %arg27: memref<1x128xf32, #tpu.memory_space<vmem>>, %arg28: memref<128x64xbf16, #tpu.memory_space<vmem>>, %arg29: memref<1x64xf32, #tpu.memory_space<vmem>>, %arg30: memref<1x64xf32, #tpu.memory_space<vmem>>, %arg31: memref<1x64xf32, #tpu.memory_space<vmem>>, %arg32: memref<2x16x64xbf16, #tpu.memory_space<vmem>>, %arg33: memref<2x16x64xf32, #tpu.memory_space<vmem>>) attributes {dimension_semantics = [#tpu.dimension_semantics<arbitrary>], iteration_bounds = array<i64: 1>, scalar_prefetch = 0 : i64, scratch_operands = 1 : i64, tpu.core_type = #tpu.core_type<tc>, window_params = [{pipeline_mode = #tpu.pipeline_mode<synchronous>, transform_indices = @transform_0, window_bounds = array<i64: 2, 16, 64>}, {pipeline_mode = #tpu.pipeline_mode<synchronous>, transform_indices = @transform_1, window_bounds = array<i64: 2, 1, 16>}, {pipeline_mode = #tpu.pipeline_mode<synchronous>, transform_indices = @transform_2, window_bounds = array<i64: 2, 16, 32>}, {pipeline_mode = #tpu.pipeline_mode<synchronous>, transform_indices = @transform_3, window_bounds = array<i64: 1, 64>}, {pipeline_mode = #tpu.pipeline_mode<synchronous>, transform_indices = @transform_4, window_bounds = array<i64: 1, 64>}, {pipeline_mode = #tpu.pipeline_mode<synchronous>, transform_indices = @transform_5, window_bounds = array<i64: 64, 192>}, {pipeline_mode = #tpu.pipeline_mode<synchronous>, transform_indices = @transform_6, window_bounds = array<i64: 1, 192>}, {pipeline_mode = #tpu.pipeline_mode<synchronous>, transform_indices = @transform_7, window_bounds = array<i64: 64, 64>}, {pipeline_mode = #tpu.pipeline_mode<synchronous>, transform_indices = @transform_8, window_bounds = array<i64: 1, 64>}, {pipeline_mode = #tpu.pipeline_mode<synchronous>, transform_indices = @transform_9, window_bounds = array<i64: 1, 64>}, {pipeline_mode = #tpu.pipeline_mode<synchronous>, transform_indices = @transform_10, window_bounds = array<i64: 1, 64>}, {pipeline_mode = #tpu.pipeline_mode<synchronous>, transform_indices = @transform_11, window_bounds = array<i64: 64, 64>}, {pipeline_mode = #tpu.pipeline_mode<synchronous>, transform_indices = @transform_12, window_bounds = array<i64: 1, 64>}, {pipeline_mode = #tpu.pipeline_mode<synchronous>, transform_indices = @transform_13, window_bounds = array<i64: 32, 128>}, {pipeline_mode = #tpu.pipeline_mode<synchronous>, transform_indices = @transform_14, window_bounds = array<i64: 1, 128>}, {pipeline_mode = #tpu.pipeline_mode<synchronous>, transform_indices = @transform_15, window_bounds = array<i64: 64, 64>}, {pipeline_mode = #tpu.pipeline_mode<synchronous>, transform_indices = @transform_16, window_bounds = array<i64: 1, 64>}, {pipeline_mode = #tpu.pipeline_mode<synchronous>, transform_indices = @transform_17, window_bounds = array<i64: 1, 64>}, {pipeline_mode = #tpu.pipeline_mode<synchronous>, transform_indices = @transform_18, window_bounds = array<i64: 1, 64>}, {pipeline_mode = #tpu.pipeline_mode<synchronous>, transform_indices = @transform_19, window_bounds = array<i64: 64, 128>}, {pipeline_mode = #tpu.pipeline_mode<synchronous>, transform_indices = @transform_20, window_bounds = array<i64: 1, 128>}, {pipeline_mode = #tpu.pipeline_mode<synchronous>, transform_indices = @transform_21, window_bounds = array<i64: 128, 64>}, {pipeline_mode = #tpu.pipeline_mode<synchronous>, transform_indices = @transform_22, window_bounds = array<i64: 1, 64>}, {pipeline_mode = #tpu.pipeline_mode<synchronous>, transform_indices = @transform_23, window_bounds = array<i64: 1, 64>}, {pipeline_mode = #tpu.pipeline_mode<synchronous>, transform_indices = @transform_24, window_bounds = array<i64: 1, 64>}, {pipeline_mode = #tpu.pipeline_mode<synchronous>, transform_indices = @transform_25, window_bounds = array<i64: 64, 128>}, {pipeline_mode = #tpu.pipeline_mode<synchronous>, transform_indices = @transform_26, window_bounds = array<i64: 1, 128>}, {pipeline_mode = #tpu.pipeline_mode<synchronous>, transform_indices = @transform_27, window_bounds = array<i64: 128, 64>}, {pipeline_mode = #tpu.pipeline_mode<synchronous>, transform_indices = @transform_28, window_bounds = array<i64: 1, 64>}, {pipeline_mode = #tpu.pipeline_mode<synchronous>, transform_indices = @transform_29, window_bounds = array<i64: 1, 64>}, {pipeline_mode = #tpu.pipeline_mode<synchronous>, transform_indices = @transform_30, window_bounds = array<i64: 1, 64>}, {pipeline_mode = #tpu.pipeline_mode<synchronous>, transform_indices = @transform_31, window_bounds = array<i64: 2, 16, 64>}]} {
    %c0 = arith.constant 0 : index
    %c0_0 = arith.constant 0 : index
    %c0_1 = arith.constant 0 : index
    %0 = vector.load %arg2[%c0, %c0_0, %c0_1] : memref<2x1x16xf32, #tpu.memory_space<vmem>>, vector<2x1x16xf32>
    %c0_2 = arith.constant 0 : index
    %c0_3 = arith.constant 0 : index
    %c0_4 = arith.constant 0 : index
    %1 = vector.load %arg1[%c0_2, %c0_3, %c0_4] : memref<2x16x64xf32, #tpu.memory_space<vmem>>, vector<2x16x64xf32>
    %2 = vector.shape_cast %1 : vector<2x16x64xf32> to vector<32x64xf32>
    %c0_5 = arith.constant 0 : index
    %c0_6 = arith.constant 0 : index
    %3 = vector.load %arg4[%c0_5, %c0_6] : memref<1x64xf32, #tpu.memory_space<vmem>>, vector<1x64xf32>
    %c0_7 = arith.constant 0 : index
    %c0_8 = arith.constant 0 : index
    %4 = vector.load %arg5[%c0_7, %c0_8] : memref<1x64xf32, #tpu.memory_space<vmem>>, vector<1x64xf32>
    %cst = arith.constant dense<0.000000e+00> : vector<32xf32>
    %5 = vector.multi_reduction <add>, %2, %cst [1] : vector<32x64xf32> to vector<32xf32>
    %6 = vector.shape_cast %5 : vector<32xf32> to vector<32x1xf32>
    %cst_9 = arith.constant 6.400000e+01 : f32
    %7 = vector.broadcast %cst_9 : f32 to vector<32x1xf32>
    %8 = arith.divf %6, %7 : vector<32x1xf32>
    %9 = vector.broadcast %8 : vector<32x1xf32> to vector<32x64xf32>
    %10 = arith.subf %2, %9 : vector<32x64xf32>
    %11 = arith.mulf %10, %10 : vector<32x64xf32>
    %cst_10 = arith.constant dense<0.000000e+00> : vector<32xf32>
    %12 = vector.multi_reduction <add>, %11, %cst_10 [1] : vector<32x64xf32> to vector<32xf32>
    %13 = vector.shape_cast %12 : vector<32xf32> to vector<32x1xf32>
    %cst_11 = arith.constant 6.400000e+01 : f32
    %14 = vector.broadcast %cst_11 : f32 to vector<32x1xf32>
    %15 = arith.divf %13, %14 : vector<32x1xf32>
    %cst_12 = arith.constant 9.99999996E-13 : f32
    %16 = vector.broadcast %cst_12 : f32 to vector<32x1xf32>
    %17 = arith.addf %15, %16 : vector<32x1xf32>
    %18 = math.rsqrt %17 : vector<32x1xf32>
    %19 = vector.broadcast %18 : vector<32x1xf32> to vector<32x64xf32>
    %20 = arith.mulf %10, %19 : vector<32x64xf32>
    %21 = vector.broadcast %3 : vector<1x64xf32> to vector<32x64xf32>
    %22 = arith.mulf %20, %21 : vector<32x64xf32>
    %23 = vector.broadcast %4 : vector<1x64xf32> to vector<32x64xf32>
    %24 = arith.addf %22, %23 : vector<32x64xf32>
    %25 = arith.truncf %24 : vector<32x64xf32> to vector<32x64xbf16>
    %c0_13 = arith.constant 0 : index
    %c0_14 = arith.constant 0 : index
    %26 = vector.load %arg6[%c0_13, %c0_14] : memref<64x192xbf16, #tpu.memory_space<vmem>>, vector<64x192xbf16>
    %cst_15 = arith.constant dense<0.000000e+00> : vector<32x192xf32>
    %27 = tpu.matmul %25, %26, %cst_15 {dimension_numbers = #tpu.dot_dimension_numbers<[1], [0], [0], [1], [0, 0, 1, 1], [], []>} : vector<32x64xbf16>, vector<64x192xbf16>, vector<32x192xf32> -> vector<32x192xf32>
    %c0_16 = arith.constant 0 : index
    %c0_17 = arith.constant 0 : index
    %28 = vector.load %arg7[%c0_16, %c0_17] : memref<1x192xf32, #tpu.memory_space<vmem>>, vector<1x192xf32>
    %29 = vector.broadcast %28 : vector<1x192xf32> to vector<32x192xf32>
    %30 = arith.addf %27, %29 : vector<32x192xf32>
    %31 = vector.shape_cast %30 : vector<32x192xf32> to vector<2x16x192xf32>
    %32 = vector.extract_strided_slice %31 {offsets = [0, 0, 0], sizes = [2, 16, 64], strides = [1, 1, 1]} : vector<2x16x192xf32> to vector<2x16x64xf32>
    %33 = vector.extract_strided_slice %31 {offsets = [0, 0, 64], sizes = [2, 16, 64], strides = [1, 1, 1]} : vector<2x16x192xf32> to vector<2x16x64xf32>
    %34 = vector.extract_strided_slice %31 {offsets = [0, 0, 128], sizes = [2, 16, 64], strides = [1, 1, 1]} : vector<2x16x192xf32> to vector<2x16x64xf32>
    %35 = arith.truncf %32 : vector<2x16x64xf32> to vector<2x16x64xbf16>
    %36 = arith.truncf %33 : vector<2x16x64xf32> to vector<2x16x64xbf16>
    %37 = arith.truncf %34 : vector<2x16x64xf32> to vector<2x16x64xbf16>
    %38 = vector.extract_strided_slice %35 {offsets = [0, 0, 0], sizes = [2, 16, 8], strides = [1, 1, 1]} : vector<2x16x64xbf16> to vector<2x16x8xbf16>
    %39 = vector.extract_strided_slice %36 {offsets = [0, 0, 0], sizes = [2, 16, 8], strides = [1, 1, 1]} : vector<2x16x64xbf16> to vector<2x16x8xbf16>
    "tpu.trace_start"() <{level = 10 : i32, message = "bqd,bkd->bqk"}> : () -> ()
    %cst_18 = arith.constant dense<0.000000e+00> : vector<2x16x16xf32>
    %40 = tpu.matmul %38, %39, %cst_18 {dimension_numbers = #tpu.dot_dimension_numbers<[2], [2], [1], [1], [0, 0, 0, 1, 1, 1], [0], [0]>} : vector<2x16x8xbf16>, vector<2x16x8xbf16>, vector<2x16x16xf32> -> vector<2x16x16xf32>
    "tpu.trace_stop"() : () -> ()
    %cst_19 = arith.constant 0.353553385 : f32
    %41 = vector.broadcast %cst_19 : f32 to vector<2x16x16xf32>
    %42 = arith.mulf %40, %41 : vector<2x16x16xf32>
    %43 = vector.broadcast %0 : vector<2x1x16xf32> to vector<2x16x16xf32>
    %44 = arith.addf %42, %43 : vector<2x16x16xf32>
    %cst_20 = arith.constant dense<0xFF800000> : vector<2x16xf32>
    %45 = vector.multi_reduction <maximumf>, %44, %cst_20 [2] : vector<2x16x16xf32> to vector<2x16xf32>
    %46 = vector.shape_cast %45 : vector<2x16xf32> to vector<2x16x1xf32>
    %47 = vector.broadcast %46 : vector<2x16x1xf32> to vector<2x16x16xf32>
    %48 = arith.subf %44, %47 : vector<2x16x16xf32>
    %49 = math.exp %48 : vector<2x16x16xf32>
    %cst_21 = arith.constant dense<0.000000e+00> : vector<2x16xf32>
    %50 = vector.multi_reduction <add>, %49, %cst_21 [2] : vector<2x16x16xf32> to vector<2x16xf32>
    %51 = vector.shape_cast %50 : vector<2x16xf32> to vector<2x16x1xf32>
    %52 = tpu.reciprocal %51 {approx = true} : vector<2x16x1xf32> -> vector<2x16x1xf32>
    %53 = vector.broadcast %52 : vector<2x16x1xf32> to vector<2x16x16xf32>
    %54 = arith.mulf %49, %53 : vector<2x16x16xf32>
    %55 = arith.truncf %54 : vector<2x16x16xf32> to vector<2x16x16xbf16>
    %56 = vector.extract_strided_slice %37 {offsets = [0, 0, 0], sizes = [2, 16, 8], strides = [1, 1, 1]} : vector<2x16x64xbf16> to vector<2x16x8xbf16>
    "tpu.trace_start"() <{level = 10 : i32, message = "bqk,bkd->bqd"}> : () -> ()
    %cst_22 = arith.constant dense<0.000000e+00> : vector<2x16x8xf32>
    %57 = tpu.matmul %55, %56, %cst_22 {dimension_numbers = #tpu.dot_dimension_numbers<[2], [1], [1], [2], [0, 0, 0, 1, 1, 2], [0], [0]>} : vector<2x16x16xbf16>, vector<2x16x8xbf16>, vector<2x16x8xf32> -> vector<2x16x8xf32>
    "tpu.trace_stop"() : () -> ()
    %c0_23 = arith.constant 0 : index
    %c0_24 = arith.constant 0 : index
    %c0_25 = arith.constant 0 : index
    %58 = vector.load %arg33[%c0_23, %c0_24, %c0_25] : memref<2x16x64xf32, #tpu.memory_space<vmem>>, vector<2x16x8xf32>
    tpu.vector_store %arg33[%c0_23, %c0_24, %c0_25], %57 {strides = array<i32>} : memref<2x16x64xf32, #tpu.memory_space<vmem>>, vector<2x16x8xf32>,
    %59 = vector.extract_strided_slice %35 {offsets = [0, 0, 8], sizes = [2, 16, 8], strides = [1, 1, 1]} : vector<2x16x64xbf16> to vector<2x16x8xbf16>
    %60 = vector.extract_strided_slice %36 {offsets = [0, 0, 8], sizes = [2, 16, 8], strides = [1, 1, 1]} : vector<2x16x64xbf16> to vector<2x16x8xbf16>
    "tpu.trace_start"() <{level = 10 : i32, message = "bqd,bkd->bqk"}> : () -> ()
    %cst_26 = arith.constant dense<0.000000e+00> : vector<2x16x16xf32>
    %61 = tpu.matmul %59, %60, %cst_26 {dimension_numbers = #tpu.dot_dimension_numbers<[2], [2], [1], [1], [0, 0, 0, 1, 1, 1], [0], [0]>} : vector<2x16x8xbf16>, vector<2x16x8xbf16>, vector<2x16x16xf32> -> vector<2x16x16xf32>
    "tpu.trace_stop"() : () -> ()
    %cst_27 = arith.constant 0.353553385 : f32
    %62 = vector.broadcast %cst_27 : f32 to vector<2x16x16xf32>
    %63 = arith.mulf %61, %62 : vector<2x16x16xf32>
    %64 = vector.broadcast %0 : vector<2x1x16xf32> to vector<2x16x16xf32>
    %65 = arith.addf %63, %64 : vector<2x16x16xf32>
    %cst_28 = arith.constant dense<0xFF800000> : vector<2x16xf32>
    %66 = vector.multi_reduction <maximumf>, %65, %cst_28 [2] : vector<2x16x16xf32> to vector<2x16xf32>
    %67 = vector.shape_cast %66 : vector<2x16xf32> to vector<2x16x1xf32>
    %68 = vector.broadcast %67 : vector<2x16x1xf32> to vector<2x16x16xf32>
    %69 = arith.subf %65, %68 : vector<2x16x16xf32>
    %70 = math.exp %69 : vector<2x16x16xf32>
    %cst_29 = arith.constant dense<0.000000e+00> : vector<2x16xf32>
    %71 = vector.multi_reduction <add>, %70, %cst_29 [2] : vector<2x16x16xf32> to vector<2x16xf32>
    %72 = vector.shape_cast %71 : vector<2x16xf32> to vector<2x16x1xf32>
    %73 = tpu.reciprocal %72 {approx = true} : vector<2x16x1xf32> -> vector<2x16x1xf32>
    %74 = vector.broadcast %73 : vector<2x16x1xf32> to vector<2x16x16xf32>
    %75 = arith.mulf %70, %74 : vector<2x16x16xf32>
    %76 = arith.truncf %75 : vector<2x16x16xf32> to vector<2x16x16xbf16>
    %77 = vector.extract_strided_slice %37 {offsets = [0, 0, 8], sizes = [2, 16, 8], strides = [1, 1, 1]} : vector<2x16x64xbf16> to vector<2x16x8xbf16>
    "tpu.trace_start"() <{level = 10 : i32, message = "bqk,bkd->bqd"}> : () -> ()
    %cst_30 = arith.constant dense<0.000000e+00> : vector<2x16x8xf32>
    %78 = tpu.matmul %76, %77, %cst_30 {dimension_numbers = #tpu.dot_dimension_numbers<[2], [1], [1], [2], [0, 0, 0, 1, 1, 2], [0], [0]>} : vector<2x16x16xbf16>, vector<2x16x8xbf16>, vector<2x16x8xf32> -> vector<2x16x8xf32>
    "tpu.trace_stop"() : () -> ()
    %c0_31 = arith.constant 0 : index
    %c0_32 = arith.constant 0 : index
    %c8 = arith.constant 8 : index
    %79 = vector.load %arg33[%c0_31, %c0_32, %c8] : memref<2x16x64xf32, #tpu.memory_space<vmem>>, vector<2x16x8xf32>
    tpu.vector_store %arg33[%c0_31, %c0_32, %c8], %78 {strides = array<i32>} : memref<2x16x64xf32, #tpu.memory_space<vmem>>, vector<2x16x8xf32>,
    %80 = vector.extract_strided_slice %35 {offsets = [0, 0, 16], sizes = [2, 16, 8], strides = [1, 1, 1]} : vector<2x16x64xbf16> to vector<2x16x8xbf16>
    %81 = vector.extract_strided_slice %36 {offsets = [0, 0, 16], sizes = [2, 16, 8], strides = [1, 1, 1]} : vector<2x16x64xbf16> to vector<2x16x8xbf16>
    "tpu.trace_start"() <{level = 10 : i32, message = "bqd,bkd->bqk"}> : () -> ()
    %cst_33 = arith.constant dense<0.000000e+00> : vector<2x16x16xf32>
    %82 = tpu.matmul %80, %81, %cst_33 {dimension_numbers = #tpu.dot_dimension_numbers<[2], [2], [1], [1], [0, 0, 0, 1, 1, 1], [0], [0]>} : vector<2x16x8xbf16>, vector<2x16x8xbf16>, vector<2x16x16xf32> -> vector<2x16x16xf32>
    "tpu.trace_stop"() : () -> ()
    %cst_34 = arith.constant 0.353553385 : f32
    %83 = vector.broadcast %cst_34 : f32 to vector<2x16x16xf32>
    %84 = arith.mulf %82, %83 : vector<2x16x16xf32>
    %85 = vector.broadcast %0 : vector<2x1x16xf32> to vector<2x16x16xf32>
    %86 = arith.addf %84, %85 : vector<2x16x16xf32>
    %cst_35 = arith.constant dense<0xFF800000> : vector<2x16xf32>
    %87 = vector.multi_reduction <maximumf>, %86, %cst_35 [2] : vector<2x16x16xf32> to vector<2x16xf32>
    %88 = vector.shape_cast %87 : vector<2x16xf32> to vector<2x16x1xf32>
    %89 = vector.broadcast %88 : vector<2x16x1xf32> to vector<2x16x16xf32>
    %90 = arith.subf %86, %89 : vector<2x16x16xf32>
    %91 = math.exp %90 : vector<2x16x16xf32>
    %cst_36 = arith.constant dense<0.000000e+00> : vector<2x16xf32>
    %92 = vector.multi_reduction <add>, %91, %cst_36 [2] : vector<2x16x16xf32> to vector<2x16xf32>
    %93 = vector.shape_cast %92 : vector<2x16xf32> to vector<2x16x1xf32>
    %94 = tpu.reciprocal %93 {approx = true} : vector<2x16x1xf32> -> vector<2x16x1xf32>
    %95 = vector.broadcast %94 : vector<2x16x1xf32> to vector<2x16x16xf32>
    %96 = arith.mulf %91, %95 : vector<2x16x16xf32>
    %97 = arith.truncf %96 : vector<2x16x16xf32> to vector<2x16x16xbf16>
    %98 = vector.extract_strided_slice %37 {offsets = [0, 0, 16], sizes = [2, 16, 8], strides = [1, 1, 1]} : vector<2x16x64xbf16> to vector<2x16x8xbf16>
    "tpu.trace_start"() <{level = 10 : i32, message = "bqk,bkd->bqd"}> : () -> ()
    %cst_37 = arith.constant dense<0.000000e+00> : vector<2x16x8xf32>
    %99 = tpu.matmul %97, %98, %cst_37 {dimension_numbers = #tpu.dot_dimension_numbers<[2], [1], [1], [2], [0, 0, 0, 1, 1, 2], [0], [0]>} : vector<2x16x16xbf16>, vector<2x16x8xbf16>, vector<2x16x8xf32> -> vector<2x16x8xf32>
    "tpu.trace_stop"() : () -> ()
    %c0_38 = arith.constant 0 : index
    %c0_39 = arith.constant 0 : index
    %c16 = arith.constant 16 : index
    %100 = vector.load %arg33[%c0_38, %c0_39, %c16] : memref<2x16x64xf32, #tpu.memory_space<vmem>>, vector<2x16x8xf32>
    tpu.vector_store %arg33[%c0_38, %c0_39, %c16], %99 {strides = array<i32>} : memref<2x16x64xf32, #tpu.memory_space<vmem>>, vector<2x16x8xf32>,
    %101 = vector.extract_strided_slice %35 {offsets = [0, 0, 24], sizes = [2, 16, 8], strides = [1, 1, 1]} : vector<2x16x64xbf16> to vector<2x16x8xbf16>
    %102 = vector.extract_strided_slice %36 {offsets = [0, 0, 24], sizes = [2, 16, 8], strides = [1, 1, 1]} : vector<2x16x64xbf16> to vector<2x16x8xbf16>
    "tpu.trace_start"() <{level = 10 : i32, message = "bqd,bkd->bqk"}> : () -> ()
    %cst_40 = arith.constant dense<0.000000e+00> : vector<2x16x16xf32>
    %103 = tpu.matmul %101, %102, %cst_40 {dimension_numbers = #tpu.dot_dimension_numbers<[2], [2], [1], [1], [0, 0, 0, 1, 1, 1], [0], [0]>} : vector<2x16x8xbf16>, vector<2x16x8xbf16>, vector<2x16x16xf32> -> vector<2x16x16xf32>
    "tpu.trace_stop"() : () -> ()
    %cst_41 = arith.constant 0.353553385 : f32
    %104 = vector.broadcast %cst_41 : f32 to vector<2x16x16xf32>
    %105 = arith.mulf %103, %104 : vector<2x16x16xf32>
    %106 = vector.broadcast %0 : vector<2x1x16xf32> to vector<2x16x16xf32>
    %107 = arith.addf %105, %106 : vector<2x16x16xf32>
    %cst_42 = arith.constant dense<0xFF800000> : vector<2x16xf32>
    %108 = vector.multi_reduction <maximumf>, %107, %cst_42 [2] : vector<2x16x16xf32> to vector<2x16xf32>
    %109 = vector.shape_cast %108 : vector<2x16xf32> to vector<2x16x1xf32>
    %110 = vector.broadcast %109 : vector<2x16x1xf32> to vector<2x16x16xf32>
    %111 = arith.subf %107, %110 : vector<2x16x16xf32>
    %112 = math.exp %111 : vector<2x16x16xf32>
    %cst_43 = arith.constant dense<0.000000e+00> : vector<2x16xf32>
    %113 = vector.multi_reduction <add>, %112, %cst_43 [2] : vector<2x16x16xf32> to vector<2x16xf32>
    %114 = vector.shape_cast %113 : vector<2x16xf32> to vector<2x16x1xf32>
    %115 = tpu.reciprocal %114 {approx = true} : vector<2x16x1xf32> -> vector<2x16x1xf32>
    %116 = vector.broadcast %115 : vector<2x16x1xf32> to vector<2x16x16xf32>
    %117 = arith.mulf %112, %116 : vector<2x16x16xf32>
    %118 = arith.truncf %117 : vector<2x16x16xf32> to vector<2x16x16xbf16>
    %119 = vector.extract_strided_slice %37 {offsets = [0, 0, 24], sizes = [2, 16, 8], strides = [1, 1, 1]} : vector<2x16x64xbf16> to vector<2x16x8xbf16>
    "tpu.trace_start"() <{level = 10 : i32, message = "bqk,bkd->bqd"}> : () -> ()
    %cst_44 = arith.constant dense<0.000000e+00> : vector<2x16x8xf32>
    %120 = tpu.matmul %118, %119, %cst_44 {dimension_numbers = #tpu.dot_dimension_numbers<[2], [1], [1], [2], [0, 0, 0, 1, 1, 2], [0], [0]>} : vector<2x16x16xbf16>, vector<2x16x8xbf16>, vector<2x16x8xf32> -> vector<2x16x8xf32>
    "tpu.trace_stop"() : () -> ()
    %c0_45 = arith.constant 0 : index
    %c0_46 = arith.constant 0 : index
    %c24 = arith.constant 24 : index
    %121 = vector.load %arg33[%c0_45, %c0_46, %c24] : memref<2x16x64xf32, #tpu.memory_space<vmem>>, vector<2x16x8xf32>
    tpu.vector_store %arg33[%c0_45, %c0_46, %c24], %120 {strides = array<i32>} : memref<2x16x64xf32, #tpu.memory_space<vmem>>, vector<2x16x8xf32>,
    %122 = vector.extract_strided_slice %35 {offsets = [0, 0, 32], sizes = [2, 16, 8], strides = [1, 1, 1]} : vector<2x16x64xbf16> to vector<2x16x8xbf16>
    %123 = vector.extract_strided_slice %36 {offsets = [0, 0, 32], sizes = [2, 16, 8], strides = [1, 1, 1]} : vector<2x16x64xbf16> to vector<2x16x8xbf16>
    "tpu.trace_start"() <{level = 10 : i32, message = "bqd,bkd->bqk"}> : () -> ()
    %cst_47 = arith.constant dense<0.000000e+00> : vector<2x16x16xf32>
    %124 = tpu.matmul %122, %123, %cst_47 {dimension_numbers = #tpu.dot_dimension_numbers<[2], [2], [1], [1], [0, 0, 0, 1, 1, 1], [0], [0]>} : vector<2x16x8xbf16>, vector<2x16x8xbf16>, vector<2x16x16xf32> -> vector<2x16x16xf32>
    "tpu.trace_stop"() : () -> ()
    %cst_48 = arith.constant 0.353553385 : f32
    %125 = vector.broadcast %cst_48 : f32 to vector<2x16x16xf32>
    %126 = arith.mulf %124, %125 : vector<2x16x16xf32>
    %127 = vector.broadcast %0 : vector<2x1x16xf32> to vector<2x16x16xf32>
    %128 = arith.addf %126, %127 : vector<2x16x16xf32>
    %cst_49 = arith.constant dense<0xFF800000> : vector<2x16xf32>
    %129 = vector.multi_reduction <maximumf>, %128, %cst_49 [2] : vector<2x16x16xf32> to vector<2x16xf32>
    %130 = vector.shape_cast %129 : vector<2x16xf32> to vector<2x16x1xf32>
    %131 = vector.broadcast %130 : vector<2x16x1xf32> to vector<2x16x16xf32>
    %132 = arith.subf %128, %131 : vector<2x16x16xf32>
    %133 = math.exp %132 : vector<2x16x16xf32>
    %cst_50 = arith.constant dense<0.000000e+00> : vector<2x16xf32>
    %134 = vector.multi_reduction <add>, %133, %cst_50 [2] : vector<2x16x16xf32> to vector<2x16xf32>
    %135 = vector.shape_cast %134 : vector<2x16xf32> to vector<2x16x1xf32>
    %136 = tpu.reciprocal %135 {approx = true} : vector<2x16x1xf32> -> vector<2x16x1xf32>
    %137 = vector.broadcast %136 : vector<2x16x1xf32> to vector<2x16x16xf32>
    %138 = arith.mulf %133, %137 : vector<2x16x16xf32>
    %139 = arith.truncf %138 : vector<2x16x16xf32> to vector<2x16x16xbf16>
    %140 = vector.extract_strided_slice %37 {offsets = [0, 0, 32], sizes = [2, 16, 8], strides = [1, 1, 1]} : vector<2x16x64xbf16> to vector<2x16x8xbf16>
    "tpu.trace_start"() <{level = 10 : i32, message = "bqk,bkd->bqd"}> : () -> ()
    %cst_51 = arith.constant dense<0.000000e+00> : vector<2x16x8xf32>
    %141 = tpu.matmul %139, %140, %cst_51 {dimension_numbers = #tpu.dot_dimension_numbers<[2], [1], [1], [2], [0, 0, 0, 1, 1, 2], [0], [0]>} : vector<2x16x16xbf16>, vector<2x16x8xbf16>, vector<2x16x8xf32> -> vector<2x16x8xf32>
    "tpu.trace_stop"() : () -> ()
    %c0_52 = arith.constant 0 : index
    %c0_53 = arith.constant 0 : index
    %c32 = arith.constant 32 : index
    %142 = vector.load %arg33[%c0_52, %c0_53, %c32] : memref<2x16x64xf32, #tpu.memory_space<vmem>>, vector<2x16x8xf32>
    tpu.vector_store %arg33[%c0_52, %c0_53, %c32], %141 {strides = array<i32>} : memref<2x16x64xf32, #tpu.memory_space<vmem>>, vector<2x16x8xf32>,
    %143 = vector.extract_strided_slice %35 {offsets = [0, 0, 40], sizes = [2, 16, 8], strides = [1, 1, 1]} : vector<2x16x64xbf16> to vector<2x16x8xbf16>
    %144 = vector.extract_strided_slice %36 {offsets = [0, 0, 40], sizes = [2, 16, 8], strides = [1, 1, 1]} : vector<2x16x64xbf16> to vector<2x16x8xbf16>
    "tpu.trace_start"() <{level = 10 : i32, message = "bqd,bkd->bqk"}> : () -> ()
    %cst_54 = arith.constant dense<0.000000e+00> : vector<2x16x16xf32>
    %145 = tpu.matmul %143, %144, %cst_54 {dimension_numbers = #tpu.dot_dimension_numbers<[2], [2], [1], [1], [0, 0, 0, 1, 1, 1], [0], [0]>} : vector<2x16x8xbf16>, vector<2x16x8xbf16>, vector<2x16x16xf32> -> vector<2x16x16xf32>
    "tpu.trace_stop"() : () -> ()
    %cst_55 = arith.constant 0.353553385 : f32
    %146 = vector.broadcast %cst_55 : f32 to vector<2x16x16xf32>
    %147 = arith.mulf %145, %146 : vector<2x16x16xf32>
    %148 = vector.broadcast %0 : vector<2x1x16xf32> to vector<2x16x16xf32>
    %149 = arith.addf %147, %148 : vector<2x16x16xf32>
    %cst_56 = arith.constant dense<0xFF800000> : vector<2x16xf32>
    %150 = vector.multi_reduction <maximumf>, %149, %cst_56 [2] : vector<2x16x16xf32> to vector<2x16xf32>
    %151 = vector.shape_cast %150 : vector<2x16xf32> to vector<2x16x1xf32>
    %152 = vector.broadcast %151 : vector<2x16x1xf32> to vector<2x16x16xf32>
    %153 = arith.subf %149, %152 : vector<2x16x16xf32>
    %154 = math.exp %153 : vector<2x16x16xf32>
    %cst_57 = arith.constant dense<0.000000e+00> : vector<2x16xf32>
    %155 = vector.multi_reduction <add>, %154, %cst_57 [2] : vector<2x16x16xf32> to vector<2x16xf32>
    %156 = vector.shape_cast %155 : vector<2x16xf32> to vector<2x16x1xf32>
    %157 = tpu.reciprocal %156 {approx = true} : vector<2x16x1xf32> -> vector<2x16x1xf32>
    %158 = vector.broadcast %157 : vector<2x16x1xf32> to vector<2x16x16xf32>
    %159 = arith.mulf %154, %158 : vector<2x16x16xf32>
    %160 = arith.truncf %159 : vector<2x16x16xf32> to vector<2x16x16xbf16>
    %161 = vector.extract_strided_slice %37 {offsets = [0, 0, 40], sizes = [2, 16, 8], strides = [1, 1, 1]} : vector<2x16x64xbf16> to vector<2x16x8xbf16>
    "tpu.trace_start"() <{level = 10 : i32, message = "bqk,bkd->bqd"}> : () -> ()
    %cst_58 = arith.constant dense<0.000000e+00> : vector<2x16x8xf32>
    %162 = tpu.matmul %160, %161, %cst_58 {dimension_numbers = #tpu.dot_dimension_numbers<[2], [1], [1], [2], [0, 0, 0, 1, 1, 2], [0], [0]>} : vector<2x16x16xbf16>, vector<2x16x8xbf16>, vector<2x16x8xf32> -> vector<2x16x8xf32>
    "tpu.trace_stop"() : () -> ()
    %c0_59 = arith.constant 0 : index
    %c0_60 = arith.constant 0 : index
    %c40 = arith.constant 40 : index
    %163 = vector.load %arg33[%c0_59, %c0_60, %c40] : memref<2x16x64xf32, #tpu.memory_space<vmem>>, vector<2x16x8xf32>
    tpu.vector_store %arg33[%c0_59, %c0_60, %c40], %162 {strides = array<i32>} : memref<2x16x64xf32, #tpu.memory_space<vmem>>, vector<2x16x8xf32>,
    %164 = vector.extract_strided_slice %35 {offsets = [0, 0, 48], sizes = [2, 16, 8], strides = [1, 1, 1]} : vector<2x16x64xbf16> to vector<2x16x8xbf16>
    %165 = vector.extract_strided_slice %36 {offsets = [0, 0, 48], sizes = [2, 16, 8], strides = [1, 1, 1]} : vector<2x16x64xbf16> to vector<2x16x8xbf16>
    "tpu.trace_start"() <{level = 10 : i32, message = "bqd,bkd->bqk"}> : () -> ()
    %cst_61 = arith.constant dense<0.000000e+00> : vector<2x16x16xf32>
    %166 = tpu.matmul %164, %165, %cst_61 {dimension_numbers = #tpu.dot_dimension_numbers<[2], [2], [1], [1], [0, 0, 0, 1, 1, 1], [0], [0]>} : vector<2x16x8xbf16>, vector<2x16x8xbf16>, vector<2x16x16xf32> -> vector<2x16x16xf32>
    "tpu.trace_stop"() : () -> ()
    %cst_62 = arith.constant 0.353553385 : f32
    %167 = vector.broadcast %cst_62 : f32 to vector<2x16x16xf32>
    %168 = arith.mulf %166, %167 : vector<2x16x16xf32>
    %169 = vector.broadcast %0 : vector<2x1x16xf32> to vector<2x16x16xf32>
    %170 = arith.addf %168, %169 : vector<2x16x16xf32>
    %cst_63 = arith.constant dense<0xFF800000> : vector<2x16xf32>
    %171 = vector.multi_reduction <maximumf>, %170, %cst_63 [2] : vector<2x16x16xf32> to vector<2x16xf32>
    %172 = vector.shape_cast %171 : vector<2x16xf32> to vector<2x16x1xf32>
    %173 = vector.broadcast %172 : vector<2x16x1xf32> to vector<2x16x16xf32>
    %174 = arith.subf %170, %173 : vector<2x16x16xf32>
    %175 = math.exp %174 : vector<2x16x16xf32>
    %cst_64 = arith.constant dense<0.000000e+00> : vector<2x16xf32>
    %176 = vector.multi_reduction <add>, %175, %cst_64 [2] : vector<2x16x16xf32> to vector<2x16xf32>
    %177 = vector.shape_cast %176 : vector<2x16xf32> to vector<2x16x1xf32>
    %178 = tpu.reciprocal %177 {approx = true} : vector<2x16x1xf32> -> vector<2x16x1xf32>
    %179 = vector.broadcast %178 : vector<2x16x1xf32> to vector<2x16x16xf32>
    %180 = arith.mulf %175, %179 : vector<2x16x16xf32>
    %181 = arith.truncf %180 : vector<2x16x16xf32> to vector<2x16x16xbf16>
    %182 = vector.extract_strided_slice %37 {offsets = [0, 0, 48], sizes = [2, 16, 8], strides = [1, 1, 1]} : vector<2x16x64xbf16> to vector<2x16x8xbf16>
    "tpu.trace_start"() <{level = 10 : i32, message = "bqk,bkd->bqd"}> : () -> ()
    %cst_65 = arith.constant dense<0.000000e+00> : vector<2x16x8xf32>
    %183 = tpu.matmul %181, %182, %cst_65 {dimension_numbers = #tpu.dot_dimension_numbers<[2], [1], [1], [2], [0, 0, 0, 1, 1, 2], [0], [0]>} : vector<2x16x16xbf16>, vector<2x16x8xbf16>, vector<2x16x8xf32> -> vector<2x16x8xf32>
    "tpu.trace_stop"() : () -> ()
    %c0_66 = arith.constant 0 : index
    %c0_67 = arith.constant 0 : index
    %c48 = arith.constant 48 : index
    %184 = vector.load %arg33[%c0_66, %c0_67, %c48] : memref<2x16x64xf32, #tpu.memory_space<vmem>>, vector<2x16x8xf32>
    tpu.vector_store %arg33[%c0_66, %c0_67, %c48], %183 {strides = array<i32>} : memref<2x16x64xf32, #tpu.memory_space<vmem>>, vector<2x16x8xf32>,
    %185 = vector.extract_strided_slice %35 {offsets = [0, 0, 56], sizes = [2, 16, 8], strides = [1, 1, 1]} : vector<2x16x64xbf16> to vector<2x16x8xbf16>
    %186 = vector.extract_strided_slice %36 {offsets = [0, 0, 56], sizes = [2, 16, 8], strides = [1, 1, 1]} : vector<2x16x64xbf16> to vector<2x16x8xbf16>
    "tpu.trace_start"() <{level = 10 : i32, message = "bqd,bkd->bqk"}> : () -> ()
    %cst_68 = arith.constant dense<0.000000e+00> : vector<2x16x16xf32>
    %187 = tpu.matmul %185, %186, %cst_68 {dimension_numbers = #tpu.dot_dimension_numbers<[2], [2], [1], [1], [0, 0, 0, 1, 1, 1], [0], [0]>} : vector<2x16x8xbf16>, vector<2x16x8xbf16>, vector<2x16x16xf32> -> vector<2x16x16xf32>
    "tpu.trace_stop"() : () -> ()
    %cst_69 = arith.constant 0.353553385 : f32
    %188 = vector.broadcast %cst_69 : f32 to vector<2x16x16xf32>
    %189 = arith.mulf %187, %188 : vector<2x16x16xf32>
    %190 = vector.broadcast %0 : vector<2x1x16xf32> to vector<2x16x16xf32>
    %191 = arith.addf %189, %190 : vector<2x16x16xf32>
    %cst_70 = arith.constant dense<0xFF800000> : vector<2x16xf32>
    %192 = vector.multi_reduction <maximumf>, %191, %cst_70 [2] : vector<2x16x16xf32> to vector<2x16xf32>
    %193 = vector.shape_cast %192 : vector<2x16xf32> to vector<2x16x1xf32>
    %194 = vector.broadcast %193 : vector<2x16x1xf32> to vector<2x16x16xf32>
    %195 = arith.subf %191, %194 : vector<2x16x16xf32>
    %196 = math.exp %195 : vector<2x16x16xf32>
    %cst_71 = arith.constant dense<0.000000e+00> : vector<2x16xf32>
    %197 = vector.multi_reduction <add>, %196, %cst_71 [2] : vector<2x16x16xf32> to vector<2x16xf32>
    %198 = vector.shape_cast %197 : vector<2x16xf32> to vector<2x16x1xf32>
    %199 = tpu.reciprocal %198 {approx = true} : vector<2x16x1xf32> -> vector<2x16x1xf32>
    %200 = vector.broadcast %199 : vector<2x16x1xf32> to vector<2x16x16xf32>
    %201 = arith.mulf %196, %200 : vector<2x16x16xf32>
    %202 = arith.truncf %201 : vector<2x16x16xf32> to vector<2x16x16xbf16>
    %203 = vector.extract_strided_slice %37 {offsets = [0, 0, 56], sizes = [2, 16, 8], strides = [1, 1, 1]} : vector<2x16x64xbf16> to vector<2x16x8xbf16>
    "tpu.trace_start"() <{level = 10 : i32, message = "bqk,bkd->bqd"}> : () -> ()
    %cst_72 = arith.constant dense<0.000000e+00> : vector<2x16x8xf32>
    %204 = tpu.matmul %202, %203, %cst_72 {dimension_numbers = #tpu.dot_dimension_numbers<[2], [1], [1], [2], [0, 0, 0, 1, 1, 2], [0], [0]>} : vector<2x16x16xbf16>, vector<2x16x8xbf16>, vector<2x16x8xf32> -> vector<2x16x8xf32>
    "tpu.trace_stop"() : () -> ()
    %c0_73 = arith.constant 0 : index
    %c0_74 = arith.constant 0 : index
    %c56 = arith.constant 56 : index
    %205 = vector.load %arg33[%c0_73, %c0_74, %c56] : memref<2x16x64xf32, #tpu.memory_space<vmem>>, vector<2x16x8xf32>
    tpu.vector_store %arg33[%c0_73, %c0_74, %c56], %204 {strides = array<i32>} : memref<2x16x64xf32, #tpu.memory_space<vmem>>, vector<2x16x8xf32>,
    %c0_75 = arith.constant 0 : index
    %c0_76 = arith.constant 0 : index
    %c0_77 = arith.constant 0 : index
    %206 = vector.load %arg33[%c0_75, %c0_76, %c0_77] : memref<2x16x64xf32, #tpu.memory_space<vmem>>, vector<2x16x64xf32>
    %207 = vector.shape_cast %206 : vector<2x16x64xf32> to vector<32x64xf32>
    %208 = arith.truncf %207 : vector<32x64xf32> to vector<32x64xbf16>
    %c0_78 = arith.constant 0 : index
    %c0_79 = arith.constant 0 : index
    %209 = vector.load %arg8[%c0_78, %c0_79] : memref<64x64xbf16, #tpu.memory_space<vmem>>, vector<64x64xbf16>
    %cst_80 = arith.constant dense<0.000000e+00> : vector<32x64xf32>
    %210 = tpu.matmul %208, %209, %cst_80 {dimension_numbers = #tpu.dot_dimension_numbers<[1], [0], [0], [1], [0, 0, 1, 1], [], []>} : vector<32x64xbf16>, vector<64x64xbf16>, vector<32x64xf32> -> vector<32x64xf32>
    %c0_81 = arith.constant 0 : index
    %c0_82 = arith.constant 0 : index
    %211 = vector.load %arg9[%c0_81, %c0_82] : memref<1x64xf32, #tpu.memory_space<vmem>>, vector<1x64xf32>
    %212 = vector.broadcast %211 : vector<1x64xf32> to vector<32x64xf32>
    %213 = arith.addf %210, %212 : vector<32x64xf32>
    %214 = arith.addf %213, %24 : vector<32x64xf32>
    %c0_83 = arith.constant 0 : index
    %c0_84 = arith.constant 0 : index
    %215 = vector.load %arg10[%c0_83, %c0_84] : memref<1x64xf32, #tpu.memory_space<vmem>>, vector<1x64xf32>
    %c0_85 = arith.constant 0 : index
    %c0_86 = arith.constant 0 : index
    %216 = vector.load %arg11[%c0_85, %c0_86] : memref<1x64xf32, #tpu.memory_space<vmem>>, vector<1x64xf32>
    %cst_87 = arith.constant dense<0.000000e+00> : vector<32xf32>
    %217 = vector.multi_reduction <add>, %214, %cst_87 [1] : vector<32x64xf32> to vector<32xf32>
    %218 = vector.shape_cast %217 : vector<32xf32> to vector<32x1xf32>
    %cst_88 = arith.constant 6.400000e+01 : f32
    %219 = vector.broadcast %cst_88 : f32 to vector<32x1xf32>
    %220 = arith.divf %218, %219 : vector<32x1xf32>
    %221 = vector.broadcast %220 : vector<32x1xf32> to vector<32x64xf32>
    %222 = arith.subf %214, %221 : vector<32x64xf32>
    %223 = arith.mulf %222, %222 : vector<32x64xf32>
    %cst_89 = arith.constant dense<0.000000e+00> : vector<32xf32>
    %224 = vector.multi_reduction <add>, %223, %cst_89 [1] : vector<32x64xf32> to vector<32xf32>
    %225 = vector.shape_cast %224 : vector<32xf32> to vector<32x1xf32>
    %cst_90 = arith.constant 6.400000e+01 : f32
    %226 = vector.broadcast %cst_90 : f32 to vector<32x1xf32>
    %227 = arith.divf %225, %226 : vector<32x1xf32>
    %cst_91 = arith.constant 9.99999996E-13 : f32
    %228 = vector.broadcast %cst_91 : f32 to vector<32x1xf32>
    %229 = arith.addf %227, %228 : vector<32x1xf32>
    %230 = math.rsqrt %229 : vector<32x1xf32>
    %231 = vector.broadcast %230 : vector<32x1xf32> to vector<32x64xf32>
    %232 = arith.mulf %222, %231 : vector<32x64xf32>
    %233 = vector.broadcast %215 : vector<1x64xf32> to vector<32x64xf32>
    %234 = arith.mulf %232, %233 : vector<32x64xf32>
    %235 = vector.broadcast %216 : vector<1x64xf32> to vector<32x64xf32>
    %236 = arith.addf %234, %235 : vector<32x64xf32>
    %237 = vector.shape_cast %236 : vector<32x64xf32> to vector<2x16x64xf32>
    %238 = vector.extract_strided_slice %237 {offsets = [0, 0, 0], sizes = [2, 8, 64], strides = [1, 1, 1]} : vector<2x16x64xf32> to vector<2x8x64xf32>
    %239 = vector.shape_cast %238 : vector<2x8x64xf32> to vector<16x64xf32>
    %c0_92 = arith.constant 0 : index
    %c0_93 = arith.constant 0 : index
    %c0_94 = arith.constant 0 : index
    %240 = vector.load %arg3[%c0_92, %c0_93, %c0_94] : memref<2x16x32xbf16, #tpu.memory_space<vmem>>, vector<2x16x32xbf16>
    %241 = arith.truncf %239 : vector<16x64xf32> to vector<16x64xbf16>
    %c0_95 = arith.constant 0 : index
    %c0_96 = arith.constant 0 : index
    %242 = vector.load %arg12[%c0_95, %c0_96] : memref<64x64xbf16, #tpu.memory_space<vmem>>, vector<64x64xbf16>
    %cst_97 = arith.constant dense<0.000000e+00> : vector<16x64xf32>
    %243 = tpu.matmul %241, %242, %cst_97 {dimension_numbers = #tpu.dot_dimension_numbers<[1], [0], [0], [1], [0, 0, 1, 1], [], []>} : vector<16x64xbf16>, vector<64x64xbf16>, vector<16x64xf32> -> vector<16x64xf32>
    %c0_98 = arith.constant 0 : index
    %c0_99 = arith.constant 0 : index
    %244 = vector.load %arg13[%c0_98, %c0_99] : memref<1x64xf32, #tpu.memory_space<vmem>>, vector<1x64xf32>
    %245 = vector.broadcast %244 : vector<1x64xf32> to vector<16x64xf32>
    %246 = arith.addf %243, %245 : vector<16x64xf32>
    %247 = vector.shape_cast %246 : vector<16x64xf32> to vector<2x8x64xf32>
    %248 = vector.shape_cast %240 : vector<2x16x32xbf16> to vector<32x32xbf16>
    %c0_100 = arith.constant 0 : index
    %c0_101 = arith.constant 0 : index
    %249 = vector.load %arg14[%c0_100, %c0_101] : memref<32x128xbf16, #tpu.memory_space<vmem>>, vector<32x128xbf16>
    %cst_102 = arith.constant dense<0.000000e+00> : vector<32x128xf32>
    %250 = tpu.matmul %248, %249, %cst_102 {dimension_numbers = #tpu.dot_dimension_numbers<[1], [0], [0], [1], [0, 0, 1, 1], [], []>} : vector<32x32xbf16>, vector<32x128xbf16>, vector<32x128xf32> -> vector<32x128xf32>
    %c0_103 = arith.constant 0 : index
    %c0_104 = arith.constant 0 : index
    %251 = vector.load %arg15[%c0_103, %c0_104] : memref<1x128xf32, #tpu.memory_space<vmem>>, vector<1x128xf32>
    %252 = vector.broadcast %251 : vector<1x128xf32> to vector<32x128xf32>
    %253 = arith.addf %250, %252 : vector<32x128xf32>
    %254 = vector.shape_cast %253 : vector<32x128xf32> to vector<2x16x128xf32>
    %255 = vector.extract_strided_slice %254 {offsets = [0, 0, 0], sizes = [2, 16, 64], strides = [1, 1, 1]} : vector<2x16x128xf32> to vector<2x16x64xf32>
    %256 = vector.extract_strided_slice %254 {offsets = [0, 0, 64], sizes = [2, 16, 64], strides = [1, 1, 1]} : vector<2x16x128xf32> to vector<2x16x64xf32>
    %257 = arith.truncf %247 : vector<2x8x64xf32> to vector<2x8x64xbf16>
    %258 = arith.truncf %255 : vector<2x16x64xf32> to vector<2x16x64xbf16>
    %259 = arith.truncf %256 : vector<2x16x64xf32> to vector<2x16x64xbf16>
    %260 = vector.extract_strided_slice %257 {offsets = [0, 0, 0], sizes = [2, 8, 8], strides = [1, 1, 1]} : vector<2x8x64xbf16> to vector<2x8x8xbf16>
    %261 = vector.extract_strided_slice %258 {offsets = [0, 0, 0], sizes = [2, 16, 8], strides = [1, 1, 1]} : vector<2x16x64xbf16> to vector<2x16x8xbf16>
    "tpu.trace_start"() <{level = 10 : i32, message = "bqd,bkd->bqk"}> : () -> ()
    %cst_105 = arith.constant dense<0.000000e+00> : vector<2x8x16xf32>
    %262 = tpu.matmul %260, %261, %cst_105 {dimension_numbers = #tpu.dot_dimension_numbers<[2], [2], [1], [1], [0, 0, 0, 1, 1, 1], [0], [0]>} : vector<2x8x8xbf16>, vector<2x16x8xbf16>, vector<2x8x16xf32> -> vector<2x8x16xf32>
    "tpu.trace_stop"() : () -> ()
    %cst_106 = arith.constant 0.353553385 : f32
    %263 = vector.broadcast %cst_106 : f32 to vector<2x8x16xf32>
    %264 = arith.mulf %262, %263 : vector<2x8x16xf32>
    %265 = vector.broadcast %0 : vector<2x1x16xf32> to vector<2x8x16xf32>
    %266 = arith.addf %264, %265 : vector<2x8x16xf32>
    %cst_107 = arith.constant dense<0xFF800000> : vector<2x8xf32>
    %267 = vector.multi_reduction <maximumf>, %266, %cst_107 [2] : vector<2x8x16xf32> to vector<2x8xf32>
    %268 = vector.shape_cast %267 : vector<2x8xf32> to vector<2x8x1xf32>
    %269 = vector.broadcast %268 : vector<2x8x1xf32> to vector<2x8x16xf32>
    %270 = arith.subf %266, %269 : vector<2x8x16xf32>
    %271 = math.exp %270 : vector<2x8x16xf32>
    %cst_108 = arith.constant dense<0.000000e+00> : vector<2x8xf32>
    %272 = vector.multi_reduction <add>, %271, %cst_108 [2] : vector<2x8x16xf32> to vector<2x8xf32>
    %273 = vector.shape_cast %272 : vector<2x8xf32> to vector<2x8x1xf32>
    %274 = tpu.reciprocal %273 {approx = true} : vector<2x8x1xf32> -> vector<2x8x1xf32>
    %275 = vector.broadcast %274 : vector<2x8x1xf32> to vector<2x8x16xf32>
    %276 = arith.mulf %271, %275 : vector<2x8x16xf32>
    %277 = arith.truncf %276 : vector<2x8x16xf32> to vector<2x8x16xbf16>
    %278 = vector.extract_strided_slice %259 {offsets = [0, 0, 0], sizes = [2, 16, 8], strides = [1, 1, 1]} : vector<2x16x64xbf16> to vector<2x16x8xbf16>
    "tpu.trace_start"() <{level = 10 : i32, message = "bqk,bkd->bqd"}> : () -> ()
    %cst_109 = arith.constant dense<0.000000e+00> : vector<2x8x8xf32>
    %279 = tpu.matmul %277, %278, %cst_109 {dimension_numbers = #tpu.dot_dimension_numbers<[2], [1], [1], [2], [0, 0, 0, 1, 1, 2], [0], [0]>} : vector<2x8x16xbf16>, vector<2x16x8xbf16>, vector<2x8x8xf32> -> vector<2x8x8xf32>
    "tpu.trace_stop"() : () -> ()
    %c0_110 = arith.constant 0 : index
    %c0_111 = arith.constant 0 : index
    %c0_112 = arith.constant 0 : index
    %280 = vector.load %arg33[%c0_110, %c0_111, %c0_112] : memref<2x16x64xf32, #tpu.memory_space<vmem>>, vector<2x8x8xf32>
    tpu.vector_store %arg33[%c0_110, %c0_111, %c0_112], %279 {strides = array<i32>} : memref<2x16x64xf32, #tpu.memory_space<vmem>>, vector<2x8x8xf32>,
    %281 = vector.extract_strided_slice %257 {offsets = [0, 0, 8], sizes = [2, 8, 8], strides = [1, 1, 1]} : vector<2x8x64xbf16> to vector<2x8x8xbf16>
    %282 = vector.extract_strided_slice %258 {offsets = [0, 0, 8], sizes = [2, 16, 8], strides = [1, 1, 1]} : vector<2x16x64xbf16> to vector<2x16x8xbf16>
    "tpu.trace_start"() <{level = 10 : i32, message = "bqd,bkd->bqk"}> : () -> ()
    %cst_113 = arith.constant dense<0.000000e+00> : vector<2x8x16xf32>
    %283 = tpu.matmul %281, %282, %cst_113 {dimension_numbers = #tpu.dot_dimension_numbers<[2], [2], [1], [1], [0, 0, 0, 1, 1, 1], [0], [0]>} : vector<2x8x8xbf16>, vector<2x16x8xbf16>, vector<2x8x16xf32> -> vector<2x8x16xf32>
    "tpu.trace_stop"() : () -> ()
    %cst_114 = arith.constant 0.353553385 : f32
    %284 = vector.broadcast %cst_114 : f32 to vector<2x8x16xf32>
    %285 = arith.mulf %283, %284 : vector<2x8x16xf32>
    %286 = vector.broadcast %0 : vector<2x1x16xf32> to vector<2x8x16xf32>
    %287 = arith.addf %285, %286 : vector<2x8x16xf32>
    %cst_115 = arith.constant dense<0xFF800000> : vector<2x8xf32>
    %288 = vector.multi_reduction <maximumf>, %287, %cst_115 [2] : vector<2x8x16xf32> to vector<2x8xf32>
    %289 = vector.shape_cast %288 : vector<2x8xf32> to vector<2x8x1xf32>
    %290 = vector.broadcast %289 : vector<2x8x1xf32> to vector<2x8x16xf32>
    %291 = arith.subf %287, %290 : vector<2x8x16xf32>
    %292 = math.exp %291 : vector<2x8x16xf32>
    %cst_116 = arith.constant dense<0.000000e+00> : vector<2x8xf32>
    %293 = vector.multi_reduction <add>, %292, %cst_116 [2] : vector<2x8x16xf32> to vector<2x8xf32>
    %294 = vector.shape_cast %293 : vector<2x8xf32> to vector<2x8x1xf32>
    %295 = tpu.reciprocal %294 {approx = true} : vector<2x8x1xf32> -> vector<2x8x1xf32>
    %296 = vector.broadcast %295 : vector<2x8x1xf32> to vector<2x8x16xf32>
    %297 = arith.mulf %292, %296 : vector<2x8x16xf32>
    %298 = arith.truncf %297 : vector<2x8x16xf32> to vector<2x8x16xbf16>
    %299 = vector.extract_strided_slice %259 {offsets = [0, 0, 8], sizes = [2, 16, 8], strides = [1, 1, 1]} : vector<2x16x64xbf16> to vector<2x16x8xbf16>
    "tpu.trace_start"() <{level = 10 : i32, message = "bqk,bkd->bqd"}> : () -> ()
    %cst_117 = arith.constant dense<0.000000e+00> : vector<2x8x8xf32>
    %300 = tpu.matmul %298, %299, %cst_117 {dimension_numbers = #tpu.dot_dimension_numbers<[2], [1], [1], [2], [0, 0, 0, 1, 1, 2], [0], [0]>} : vector<2x8x16xbf16>, vector<2x16x8xbf16>, vector<2x8x8xf32> -> vector<2x8x8xf32>
    "tpu.trace_stop"() : () -> ()
    %c0_118 = arith.constant 0 : index
    %c0_119 = arith.constant 0 : index
    %c8_120 = arith.constant 8 : index
    %301 = vector.load %arg33[%c0_118, %c0_119, %c8_120] : memref<2x16x64xf32, #tpu.memory_space<vmem>>, vector<2x8x8xf32>
    tpu.vector_store %arg33[%c0_118, %c0_119, %c8_120], %300 {strides = array<i32>} : memref<2x16x64xf32, #tpu.memory_space<vmem>>, vector<2x8x8xf32>,
    %302 = vector.extract_strided_slice %257 {offsets = [0, 0, 16], sizes = [2, 8, 8], strides = [1, 1, 1]} : vector<2x8x64xbf16> to vector<2x8x8xbf16>
    %303 = vector.extract_strided_slice %258 {offsets = [0, 0, 16], sizes = [2, 16, 8], strides = [1, 1, 1]} : vector<2x16x64xbf16> to vector<2x16x8xbf16>
    "tpu.trace_start"() <{level = 10 : i32, message = "bqd,bkd->bqk"}> : () -> ()
    %cst_121 = arith.constant dense<0.000000e+00> : vector<2x8x16xf32>
    %304 = tpu.matmul %302, %303, %cst_121 {dimension_numbers = #tpu.dot_dimension_numbers<[2], [2], [1], [1], [0, 0, 0, 1, 1, 1], [0], [0]>} : vector<2x8x8xbf16>, vector<2x16x8xbf16>, vector<2x8x16xf32> -> vector<2x8x16xf32>
    "tpu.trace_stop"() : () -> ()
    %cst_122 = arith.constant 0.353553385 : f32
    %305 = vector.broadcast %cst_122 : f32 to vector<2x8x16xf32>
    %306 = arith.mulf %304, %305 : vector<2x8x16xf32>
    %307 = vector.broadcast %0 : vector<2x1x16xf32> to vector<2x8x16xf32>
    %308 = arith.addf %306, %307 : vector<2x8x16xf32>
    %cst_123 = arith.constant dense<0xFF800000> : vector<2x8xf32>
    %309 = vector.multi_reduction <maximumf>, %308, %cst_123 [2] : vector<2x8x16xf32> to vector<2x8xf32>
    %310 = vector.shape_cast %309 : vector<2x8xf32> to vector<2x8x1xf32>
    %311 = vector.broadcast %310 : vector<2x8x1xf32> to vector<2x8x16xf32>
    %312 = arith.subf %308, %311 : vector<2x8x16xf32>
    %313 = math.exp %312 : vector<2x8x16xf32>
    %cst_124 = arith.constant dense<0.000000e+00> : vector<2x8xf32>
    %314 = vector.multi_reduction <add>, %313, %cst_124 [2] : vector<2x8x16xf32> to vector<2x8xf32>
    %315 = vector.shape_cast %314 : vector<2x8xf32> to vector<2x8x1xf32>
    %316 = tpu.reciprocal %315 {approx = true} : vector<2x8x1xf32> -> vector<2x8x1xf32>
    %317 = vector.broadcast %316 : vector<2x8x1xf32> to vector<2x8x16xf32>
    %318 = arith.mulf %313, %317 : vector<2x8x16xf32>
    %319 = arith.truncf %318 : vector<2x8x16xf32> to vector<2x8x16xbf16>
    %320 = vector.extract_strided_slice %259 {offsets = [0, 0, 16], sizes = [2, 16, 8], strides = [1, 1, 1]} : vector<2x16x64xbf16> to vector<2x16x8xbf16>
    "tpu.trace_start"() <{level = 10 : i32, message = "bqk,bkd->bqd"}> : () -> ()
    %cst_125 = arith.constant dense<0.000000e+00> : vector<2x8x8xf32>
    %321 = tpu.matmul %319, %320, %cst_125 {dimension_numbers = #tpu.dot_dimension_numbers<[2], [1], [1], [2], [0, 0, 0, 1, 1, 2], [0], [0]>} : vector<2x8x16xbf16>, vector<2x16x8xbf16>, vector<2x8x8xf32> -> vector<2x8x8xf32>
    "tpu.trace_stop"() : () -> ()
    %c0_126 = arith.constant 0 : index
    %c0_127 = arith.constant 0 : index
    %c16_128 = arith.constant 16 : index
    %322 = vector.load %arg33[%c0_126, %c0_127, %c16_128] : memref<2x16x64xf32, #tpu.memory_space<vmem>>, vector<2x8x8xf32>
    tpu.vector_store %arg33[%c0_126, %c0_127, %c16_128], %321 {strides = array<i32>} : memref<2x16x64xf32, #tpu.memory_space<vmem>>, vector<2x8x8xf32>,
    %323 = vector.extract_strided_slice %257 {offsets = [0, 0, 24], sizes = [2, 8, 8], strides = [1, 1, 1]} : vector<2x8x64xbf16> to vector<2x8x8xbf16>
    %324 = vector.extract_strided_slice %258 {offsets = [0, 0, 24], sizes = [2, 16, 8], strides = [1, 1, 1]} : vector<2x16x64xbf16> to vector<2x16x8xbf16>
    "tpu.trace_start"() <{level = 10 : i32, message = "bqd,bkd->bqk"}> : () -> ()
    %cst_129 = arith.constant dense<0.000000e+00> : vector<2x8x16xf32>
    %325 = tpu.matmul %323, %324, %cst_129 {dimension_numbers = #tpu.dot_dimension_numbers<[2], [2], [1], [1], [0, 0, 0, 1, 1, 1], [0], [0]>} : vector<2x8x8xbf16>, vector<2x16x8xbf16>, vector<2x8x16xf32> -> vector<2x8x16xf32>
    "tpu.trace_stop"() : () -> ()
    %cst_130 = arith.constant 0.353553385 : f32
    %326 = vector.broadcast %cst_130 : f32 to vector<2x8x16xf32>
    %327 = arith.mulf %325, %326 : vector<2x8x16xf32>
    %328 = vector.broadcast %0 : vector<2x1x16xf32> to vector<2x8x16xf32>
    %329 = arith.addf %327, %328 : vector<2x8x16xf32>
    %cst_131 = arith.constant dense<0xFF800000> : vector<2x8xf32>
    %330 = vector.multi_reduction <maximumf>, %329, %cst_131 [2] : vector<2x8x16xf32> to vector<2x8xf32>
    %331 = vector.shape_cast %330 : vector<2x8xf32> to vector<2x8x1xf32>
    %332 = vector.broadcast %331 : vector<2x8x1xf32> to vector<2x8x16xf32>
    %333 = arith.subf %329, %332 : vector<2x8x16xf32>
    %334 = math.exp %333 : vector<2x8x16xf32>
    %cst_132 = arith.constant dense<0.000000e+00> : vector<2x8xf32>
    %335 = vector.multi_reduction <add>, %334, %cst_132 [2] : vector<2x8x16xf32> to vector<2x8xf32>
    %336 = vector.shape_cast %335 : vector<2x8xf32> to vector<2x8x1xf32>
    %337 = tpu.reciprocal %336 {approx = true} : vector<2x8x1xf32> -> vector<2x8x1xf32>
    %338 = vector.broadcast %337 : vector<2x8x1xf32> to vector<2x8x16xf32>
    %339 = arith.mulf %334, %338 : vector<2x8x16xf32>
    %340 = arith.truncf %339 : vector<2x8x16xf32> to vector<2x8x16xbf16>
    %341 = vector.extract_strided_slice %259 {offsets = [0, 0, 24], sizes = [2, 16, 8], strides = [1, 1, 1]} : vector<2x16x64xbf16> to vector<2x16x8xbf16>
    "tpu.trace_start"() <{level = 10 : i32, message = "bqk,bkd->bqd"}> : () -> ()
    %cst_133 = arith.constant dense<0.000000e+00> : vector<2x8x8xf32>
    %342 = tpu.matmul %340, %341, %cst_133 {dimension_numbers = #tpu.dot_dimension_numbers<[2], [1], [1], [2], [0, 0, 0, 1, 1, 2], [0], [0]>} : vector<2x8x16xbf16>, vector<2x16x8xbf16>, vector<2x8x8xf32> -> vector<2x8x8xf32>
    "tpu.trace_stop"() : () -> ()
    %c0_134 = arith.constant 0 : index
    %c0_135 = arith.constant 0 : index
    %c24_136 = arith.constant 24 : index
    %343 = vector.load %arg33[%c0_134, %c0_135, %c24_136] : memref<2x16x64xf32, #tpu.memory_space<vmem>>, vector<2x8x8xf32>
    tpu.vector_store %arg33[%c0_134, %c0_135, %c24_136], %342 {strides = array<i32>} : memref<2x16x64xf32, #tpu.memory_space<vmem>>, vector<2x8x8xf32>,
    %344 = vector.extract_strided_slice %257 {offsets = [0, 0, 32], sizes = [2, 8, 8], strides = [1, 1, 1]} : vector<2x8x64xbf16> to vector<2x8x8xbf16>
    %345 = vector.extract_strided_slice %258 {offsets = [0, 0, 32], sizes = [2, 16, 8], strides = [1, 1, 1]} : vector<2x16x64xbf16> to vector<2x16x8xbf16>
    "tpu.trace_start"() <{level = 10 : i32, message = "bqd,bkd->bqk"}> : () -> ()
    %cst_137 = arith.constant dense<0.000000e+00> : vector<2x8x16xf32>
    %346 = tpu.matmul %344, %345, %cst_137 {dimension_numbers = #tpu.dot_dimension_numbers<[2], [2], [1], [1], [0, 0, 0, 1, 1, 1], [0], [0]>} : vector<2x8x8xbf16>, vector<2x16x8xbf16>, vector<2x8x16xf32> -> vector<2x8x16xf32>
    "tpu.trace_stop"() : () -> ()
    %cst_138 = arith.constant 0.353553385 : f32
    %347 = vector.broadcast %cst_138 : f32 to vector<2x8x16xf32>
    %348 = arith.mulf %346, %347 : vector<2x8x16xf32>
    %349 = vector.broadcast %0 : vector<2x1x16xf32> to vector<2x8x16xf32>
    %350 = arith.addf %348, %349 : vector<2x8x16xf32>
    %cst_139 = arith.constant dense<0xFF800000> : vector<2x8xf32>
    %351 = vector.multi_reduction <maximumf>, %350, %cst_139 [2] : vector<2x8x16xf32> to vector<2x8xf32>
    %352 = vector.shape_cast %351 : vector<2x8xf32> to vector<2x8x1xf32>
    %353 = vector.broadcast %352 : vector<2x8x1xf32> to vector<2x8x16xf32>
    %354 = arith.subf %350, %353 : vector<2x8x16xf32>
    %355 = math.exp %354 : vector<2x8x16xf32>
    %cst_140 = arith.constant dense<0.000000e+00> : vector<2x8xf32>
    %356 = vector.multi_reduction <add>, %355, %cst_140 [2] : vector<2x8x16xf32> to vector<2x8xf32>
    %357 = vector.shape_cast %356 : vector<2x8xf32> to vector<2x8x1xf32>
    %358 = tpu.reciprocal %357 {approx = true} : vector<2x8x1xf32> -> vector<2x8x1xf32>
    %359 = vector.broadcast %358 : vector<2x8x1xf32> to vector<2x8x16xf32>
    %360 = arith.mulf %355, %359 : vector<2x8x16xf32>
    %361 = arith.truncf %360 : vector<2x8x16xf32> to vector<2x8x16xbf16>
    %362 = vector.extract_strided_slice %259 {offsets = [0, 0, 32], sizes = [2, 16, 8], strides = [1, 1, 1]} : vector<2x16x64xbf16> to vector<2x16x8xbf16>
    "tpu.trace_start"() <{level = 10 : i32, message = "bqk,bkd->bqd"}> : () -> ()
    %cst_141 = arith.constant dense<0.000000e+00> : vector<2x8x8xf32>
    %363 = tpu.matmul %361, %362, %cst_141 {dimension_numbers = #tpu.dot_dimension_numbers<[2], [1], [1], [2], [0, 0, 0, 1, 1, 2], [0], [0]>} : vector<2x8x16xbf16>, vector<2x16x8xbf16>, vector<2x8x8xf32> -> vector<2x8x8xf32>
    "tpu.trace_stop"() : () -> ()
    %c0_142 = arith.constant 0 : index
    %c0_143 = arith.constant 0 : index
    %c32_144 = arith.constant 32 : index
    %364 = vector.load %arg33[%c0_142, %c0_143, %c32_144] : memref<2x16x64xf32, #tpu.memory_space<vmem>>, vector<2x8x8xf32>
    tpu.vector_store %arg33[%c0_142, %c0_143, %c32_144], %363 {strides = array<i32>} : memref<2x16x64xf32, #tpu.memory_space<vmem>>, vector<2x8x8xf32>,
    %365 = vector.extract_strided_slice %257 {offsets = [0, 0, 40], sizes = [2, 8, 8], strides = [1, 1, 1]} : vector<2x8x64xbf16> to vector<2x8x8xbf16>
    %366 = vector.extract_strided_slice %258 {offsets = [0, 0, 40], sizes = [2, 16, 8], strides = [1, 1, 1]} : vector<2x16x64xbf16> to vector<2x16x8xbf16>
    "tpu.trace_start"() <{level = 10 : i32, message = "bqd,bkd->bqk"}> : () -> ()
    %cst_145 = arith.constant dense<0.000000e+00> : vector<2x8x16xf32>
    %367 = tpu.matmul %365, %366, %cst_145 {dimension_numbers = #tpu.dot_dimension_numbers<[2], [2], [1], [1], [0, 0, 0, 1, 1, 1], [0], [0]>} : vector<2x8x8xbf16>, vector<2x16x8xbf16>, vector<2x8x16xf32> -> vector<2x8x16xf32>
    "tpu.trace_stop"() : () -> ()
    %cst_146 = arith.constant 0.353553385 : f32
    %368 = vector.broadcast %cst_146 : f32 to vector<2x8x16xf32>
    %369 = arith.mulf %367, %368 : vector<2x8x16xf32>
    %370 = vector.broadcast %0 : vector<2x1x16xf32> to vector<2x8x16xf32>
    %371 = arith.addf %369, %370 : vector<2x8x16xf32>
    %cst_147 = arith.constant dense<0xFF800000> : vector<2x8xf32>
    %372 = vector.multi_reduction <maximumf>, %371, %cst_147 [2] : vector<2x8x16xf32> to vector<2x8xf32>
    %373 = vector.shape_cast %372 : vector<2x8xf32> to vector<2x8x1xf32>
    %374 = vector.broadcast %373 : vector<2x8x1xf32> to vector<2x8x16xf32>
    %375 = arith.subf %371, %374 : vector<2x8x16xf32>
    %376 = math.exp %375 : vector<2x8x16xf32>
    %cst_148 = arith.constant dense<0.000000e+00> : vector<2x8xf32>
    %377 = vector.multi_reduction <add>, %376, %cst_148 [2] : vector<2x8x16xf32> to vector<2x8xf32>
    %378 = vector.shape_cast %377 : vector<2x8xf32> to vector<2x8x1xf32>
    %379 = tpu.reciprocal %378 {approx = true} : vector<2x8x1xf32> -> vector<2x8x1xf32>
    %380 = vector.broadcast %379 : vector<2x8x1xf32> to vector<2x8x16xf32>
    %381 = arith.mulf %376, %380 : vector<2x8x16xf32>
    %382 = arith.truncf %381 : vector<2x8x16xf32> to vector<2x8x16xbf16>
    %383 = vector.extract_strided_slice %259 {offsets = [0, 0, 40], sizes = [2, 16, 8], strides = [1, 1, 1]} : vector<2x16x64xbf16> to vector<2x16x8xbf16>
    "tpu.trace_start"() <{level = 10 : i32, message = "bqk,bkd->bqd"}> : () -> ()
    %cst_149 = arith.constant dense<0.000000e+00> : vector<2x8x8xf32>
    %384 = tpu.matmul %382, %383, %cst_149 {dimension_numbers = #tpu.dot_dimension_numbers<[2], [1], [1], [2], [0, 0, 0, 1, 1, 2], [0], [0]>} : vector<2x8x16xbf16>, vector<2x16x8xbf16>, vector<2x8x8xf32> -> vector<2x8x8xf32>
    "tpu.trace_stop"() : () -> ()
    %c0_150 = arith.constant 0 : index
    %c0_151 = arith.constant 0 : index
    %c40_152 = arith.constant 40 : index
    %385 = vector.load %arg33[%c0_150, %c0_151, %c40_152] : memref<2x16x64xf32, #tpu.memory_space<vmem>>, vector<2x8x8xf32>
    tpu.vector_store %arg33[%c0_150, %c0_151, %c40_152], %384 {strides = array<i32>} : memref<2x16x64xf32, #tpu.memory_space<vmem>>, vector<2x8x8xf32>,
    %386 = vector.extract_strided_slice %257 {offsets = [0, 0, 48], sizes = [2, 8, 8], strides = [1, 1, 1]} : vector<2x8x64xbf16> to vector<2x8x8xbf16>
    %387 = vector.extract_strided_slice %258 {offsets = [0, 0, 48], sizes = [2, 16, 8], strides = [1, 1, 1]} : vector<2x16x64xbf16> to vector<2x16x8xbf16>
    "tpu.trace_start"() <{level = 10 : i32, message = "bqd,bkd->bqk"}> : () -> ()
    %cst_153 = arith.constant dense<0.000000e+00> : vector<2x8x16xf32>
    %388 = tpu.matmul %386, %387, %cst_153 {dimension_numbers = #tpu.dot_dimension_numbers<[2], [2], [1], [1], [0, 0, 0, 1, 1, 1], [0], [0]>} : vector<2x8x8xbf16>, vector<2x16x8xbf16>, vector<2x8x16xf32> -> vector<2x8x16xf32>
    "tpu.trace_stop"() : () -> ()
    %cst_154 = arith.constant 0.353553385 : f32
    %389 = vector.broadcast %cst_154 : f32 to vector<2x8x16xf32>
    %390 = arith.mulf %388, %389 : vector<2x8x16xf32>
    %391 = vector.broadcast %0 : vector<2x1x16xf32> to vector<2x8x16xf32>
    %392 = arith.addf %390, %391 : vector<2x8x16xf32>
    %cst_155 = arith.constant dense<0xFF800000> : vector<2x8xf32>
    %393 = vector.multi_reduction <maximumf>, %392, %cst_155 [2] : vector<2x8x16xf32> to vector<2x8xf32>
    %394 = vector.shape_cast %393 : vector<2x8xf32> to vector<2x8x1xf32>
    %395 = vector.broadcast %394 : vector<2x8x1xf32> to vector<2x8x16xf32>
    %396 = arith.subf %392, %395 : vector<2x8x16xf32>
    %397 = math.exp %396 : vector<2x8x16xf32>
    %cst_156 = arith.constant dense<0.000000e+00> : vector<2x8xf32>
    %398 = vector.multi_reduction <add>, %397, %cst_156 [2] : vector<2x8x16xf32> to vector<2x8xf32>
    %399 = vector.shape_cast %398 : vector<2x8xf32> to vector<2x8x1xf32>
    %400 = tpu.reciprocal %399 {approx = true} : vector<2x8x1xf32> -> vector<2x8x1xf32>
    %401 = vector.broadcast %400 : vector<2x8x1xf32> to vector<2x8x16xf32>
    %402 = arith.mulf %397, %401 : vector<2x8x16xf32>
    %403 = arith.truncf %402 : vector<2x8x16xf32> to vector<2x8x16xbf16>
    %404 = vector.extract_strided_slice %259 {offsets = [0, 0, 48], sizes = [2, 16, 8], strides = [1, 1, 1]} : vector<2x16x64xbf16> to vector<2x16x8xbf16>
    "tpu.trace_start"() <{level = 10 : i32, message = "bqk,bkd->bqd"}> : () -> ()
    %cst_157 = arith.constant dense<0.000000e+00> : vector<2x8x8xf32>
    %405 = tpu.matmul %403, %404, %cst_157 {dimension_numbers = #tpu.dot_dimension_numbers<[2], [1], [1], [2], [0, 0, 0, 1, 1, 2], [0], [0]>} : vector<2x8x16xbf16>, vector<2x16x8xbf16>, vector<2x8x8xf32> -> vector<2x8x8xf32>
    "tpu.trace_stop"() : () -> ()
    %c0_158 = arith.constant 0 : index
    %c0_159 = arith.constant 0 : index
    %c48_160 = arith.constant 48 : index
    %406 = vector.load %arg33[%c0_158, %c0_159, %c48_160] : memref<2x16x64xf32, #tpu.memory_space<vmem>>, vector<2x8x8xf32>
    tpu.vector_store %arg33[%c0_158, %c0_159, %c48_160], %405 {strides = array<i32>} : memref<2x16x64xf32, #tpu.memory_space<vmem>>, vector<2x8x8xf32>,
    %407 = vector.extract_strided_slice %257 {offsets = [0, 0, 56], sizes = [2, 8, 8], strides = [1, 1, 1]} : vector<2x8x64xbf16> to vector<2x8x8xbf16>
    %408 = vector.extract_strided_slice %258 {offsets = [0, 0, 56], sizes = [2, 16, 8], strides = [1, 1, 1]} : vector<2x16x64xbf16> to vector<2x16x8xbf16>
    "tpu.trace_start"() <{level = 10 : i32, message = "bqd,bkd->bqk"}> : () -> ()
    %cst_161 = arith.constant dense<0.000000e+00> : vector<2x8x16xf32>
    %409 = tpu.matmul %407, %408, %cst_161 {dimension_numbers = #tpu.dot_dimension_numbers<[2], [2], [1], [1], [0, 0, 0, 1, 1, 1], [0], [0]>} : vector<2x8x8xbf16>, vector<2x16x8xbf16>, vector<2x8x16xf32> -> vector<2x8x16xf32>
    "tpu.trace_stop"() : () -> ()
    %cst_162 = arith.constant 0.353553385 : f32
    %410 = vector.broadcast %cst_162 : f32 to vector<2x8x16xf32>
    %411 = arith.mulf %409, %410 : vector<2x8x16xf32>
    %412 = vector.broadcast %0 : vector<2x1x16xf32> to vector<2x8x16xf32>
    %413 = arith.addf %411, %412 : vector<2x8x16xf32>
    %cst_163 = arith.constant dense<0xFF800000> : vector<2x8xf32>
    %414 = vector.multi_reduction <maximumf>, %413, %cst_163 [2] : vector<2x8x16xf32> to vector<2x8xf32>
    %415 = vector.shape_cast %414 : vector<2x8xf32> to vector<2x8x1xf32>
    %416 = vector.broadcast %415 : vector<2x8x1xf32> to vector<2x8x16xf32>
    %417 = arith.subf %413, %416 : vector<2x8x16xf32>
    %418 = math.exp %417 : vector<2x8x16xf32>
    %cst_164 = arith.constant dense<0.000000e+00> : vector<2x8xf32>
    %419 = vector.multi_reduction <add>, %418, %cst_164 [2] : vector<2x8x16xf32> to vector<2x8xf32>
    %420 = vector.shape_cast %419 : vector<2x8xf32> to vector<2x8x1xf32>
    %421 = tpu.reciprocal %420 {approx = true} : vector<2x8x1xf32> -> vector<2x8x1xf32>
    %422 = vector.broadcast %421 : vector<2x8x1xf32> to vector<2x8x16xf32>
    %423 = arith.mulf %418, %422 : vector<2x8x16xf32>
    %424 = arith.truncf %423 : vector<2x8x16xf32> to vector<2x8x16xbf16>
    %425 = vector.extract_strided_slice %259 {offsets = [0, 0, 56], sizes = [2, 16, 8], strides = [1, 1, 1]} : vector<2x16x64xbf16> to vector<2x16x8xbf16>
    "tpu.trace_start"() <{level = 10 : i32, message = "bqk,bkd->bqd"}> : () -> ()
    %cst_165 = arith.constant dense<0.000000e+00> : vector<2x8x8xf32>
    %426 = tpu.matmul %424, %425, %cst_165 {dimension_numbers = #tpu.dot_dimension_numbers<[2], [1], [1], [2], [0, 0, 0, 1, 1, 2], [0], [0]>} : vector<2x8x16xbf16>, vector<2x16x8xbf16>, vector<2x8x8xf32> -> vector<2x8x8xf32>
    "tpu.trace_stop"() : () -> ()
    %c0_166 = arith.constant 0 : index
    %c0_167 = arith.constant 0 : index
    %c56_168 = arith.constant 56 : index
    %427 = vector.load %arg33[%c0_166, %c0_167, %c56_168] : memref<2x16x64xf32, #tpu.memory_space<vmem>>, vector<2x8x8xf32>
    tpu.vector_store %arg33[%c0_166, %c0_167, %c56_168], %426 {strides = array<i32>} : memref<2x16x64xf32, #tpu.memory_space<vmem>>, vector<2x8x8xf32>,
    %c0_169 = arith.constant 0 : index
    %c0_170 = arith.constant 0 : index
    %c0_171 = arith.constant 0 : index
    %428 = vector.load %arg33[%c0_169, %c0_170, %c0_171] : memref<2x16x64xf32, #tpu.memory_space<vmem>>, vector<2x8x64xf32>
    %429 = vector.shape_cast %428 : vector<2x8x64xf32> to vector<16x64xf32>
    %430 = arith.truncf %429 : vector<16x64xf32> to vector<16x64xbf16>
    %c0_172 = arith.constant 0 : index
    %c0_173 = arith.constant 0 : index
    %431 = vector.load %arg16[%c0_172, %c0_173] : memref<64x64xbf16, #tpu.memory_space<vmem>>, vector<64x64xbf16>
    %cst_174 = arith.constant dense<0.000000e+00> : vector<16x64xf32>
    %432 = tpu.matmul %430, %431, %cst_174 {dimension_numbers = #tpu.dot_dimension_numbers<[1], [0], [0], [1], [0, 0, 1, 1], [], []>} : vector<16x64xbf16>, vector<64x64xbf16>, vector<16x64xf32> -> vector<16x64xf32>
    %c0_175 = arith.constant 0 : index
    %c0_176 = arith.constant 0 : index
    %433 = vector.load %arg17[%c0_175, %c0_176] : memref<1x64xf32, #tpu.memory_space<vmem>>, vector<1x64xf32>
    %434 = vector.broadcast %433 : vector<1x64xf32> to vector<16x64xf32>
    %435 = arith.addf %432, %434 : vector<16x64xf32>
    %436 = arith.addf %435, %239 : vector<16x64xf32>
    %c0_177 = arith.constant 0 : index
    %c0_178 = arith.constant 0 : index
    %437 = vector.load %arg18[%c0_177, %c0_178] : memref<1x64xf32, #tpu.memory_space<vmem>>, vector<1x64xf32>
    %c0_179 = arith.constant 0 : index
    %c0_180 = arith.constant 0 : index
    %438 = vector.load %arg19[%c0_179, %c0_180] : memref<1x64xf32, #tpu.memory_space<vmem>>, vector<1x64xf32>
    %cst_181 = arith.constant dense<0.000000e+00> : vector<16xf32>
    %439 = vector.multi_reduction <add>, %436, %cst_181 [1] : vector<16x64xf32> to vector<16xf32>
    %440 = vector.shape_cast %439 : vector<16xf32> to vector<16x1xf32>
    %cst_182 = arith.constant 6.400000e+01 : f32
    %441 = vector.broadcast %cst_182 : f32 to vector<16x1xf32>
    %442 = arith.divf %440, %441 : vector<16x1xf32>
    %443 = vector.broadcast %442 : vector<16x1xf32> to vector<16x64xf32>
    %444 = arith.subf %436, %443 : vector<16x64xf32>
    %445 = arith.mulf %444, %444 : vector<16x64xf32>
    %cst_183 = arith.constant dense<0.000000e+00> : vector<16xf32>
    %446 = vector.multi_reduction <add>, %445, %cst_183 [1] : vector<16x64xf32> to vector<16xf32>
    %447 = vector.shape_cast %446 : vector<16xf32> to vector<16x1xf32>
    %cst_184 = arith.constant 6.400000e+01 : f32
    %448 = vector.broadcast %cst_184 : f32 to vector<16x1xf32>
    %449 = arith.divf %447, %448 : vector<16x1xf32>
    %cst_185 = arith.constant 9.99999996E-13 : f32
    %450 = vector.broadcast %cst_185 : f32 to vector<16x1xf32>
    %451 = arith.addf %449, %450 : vector<16x1xf32>
    %452 = math.rsqrt %451 : vector<16x1xf32>
    %453 = vector.broadcast %452 : vector<16x1xf32> to vector<16x64xf32>
    %454 = arith.mulf %444, %453 : vector<16x64xf32>
    %455 = vector.broadcast %437 : vector<1x64xf32> to vector<16x64xf32>
    %456 = arith.mulf %454, %455 : vector<16x64xf32>
    %457 = vector.broadcast %438 : vector<1x64xf32> to vector<16x64xf32>
    %458 = arith.addf %456, %457 : vector<16x64xf32>
    %459 = arith.truncf %458 : vector<16x64xf32> to vector<16x64xbf16>
    %c0_186 = arith.constant 0 : index
    %c0_187 = arith.constant 0 : index
    %460 = vector.load %arg20[%c0_186, %c0_187] : memref<64x128xbf16, #tpu.memory_space<vmem>>, vector<64x128xbf16>
    %cst_188 = arith.constant dense<0.000000e+00> : vector<16x128xf32>
    %461 = tpu.matmul %459, %460, %cst_188 {dimension_numbers = #tpu.dot_dimension_numbers<[1], [0], [0], [1], [0, 0, 1, 1], [], []>} : vector<16x64xbf16>, vector<64x128xbf16>, vector<16x128xf32> -> vector<16x128xf32>
    %c0_189 = arith.constant 0 : index
    %c0_190 = arith.constant 0 : index
    %462 = vector.load %arg21[%c0_189, %c0_190] : memref<1x128xf32, #tpu.memory_space<vmem>>, vector<1x128xf32>
    %463 = vector.broadcast %462 : vector<1x128xf32> to vector<16x128xf32>
    %464 = arith.addf %461, %463 : vector<16x128xf32>
    %cst_191 = arith.constant 0.707106769 : f32
    %465 = vector.broadcast %cst_191 : f32 to vector<16x128xf32>
    %466 = arith.mulf %464, %465 : vector<16x128xf32>
    %467 = math.absf %466 : vector<16x128xf32>
    %cst_192 = arith.constant 0.327591091 : f32
    %468 = vector.broadcast %cst_192 : f32 to vector<16x128xf32>
    %469 = arith.mulf %468, %467 : vector<16x128xf32>
    %cst_193 = arith.constant 1.000000e+00 : f32
    %470 = vector.broadcast %cst_193 : f32 to vector<16x128xf32>
    %471 = arith.addf %470, %469 : vector<16x128xf32>
    %cst_194 = arith.constant 1.000000e+00 : f32
    %472 = vector.broadcast %cst_194 : f32 to vector<16x128xf32>
    %473 = arith.divf %472, %471 : vector<16x128xf32>
    %cst_195 = arith.constant 1.06140542 : f32
    %474 = vector.broadcast %cst_195 : f32 to vector<16x128xf32>
    %475 = arith.mulf %473, %474 : vector<16x128xf32>
    %cst_196 = arith.constant -1.45315206 : f32
    %476 = vector.broadcast %cst_196 : f32 to vector<16x128xf32>
    %477 = arith.addf %476, %475 : vector<16x128xf32>
    %478 = arith.mulf %473, %477 : vector<16x128xf32>
    %cst_197 = arith.constant 1.42141378 : f32
    %479 = vector.broadcast %cst_197 : f32 to vector<16x128xf32>
    %480 = arith.addf %479, %478 : vector<16x128xf32>
    %481 = arith.mulf %473, %480 : vector<16x128xf32>
    %cst_198 = arith.constant -0.284496725 : f32
    %482 = vector.broadcast %cst_198 : f32 to vector<16x128xf32>
    %483 = arith.addf %482, %481 : vector<16x128xf32>
    %484 = arith.mulf %473, %483 : vector<16x128xf32>
    %cst_199 = arith.constant 0.254829586 : f32
    %485 = vector.broadcast %cst_199 : f32 to vector<16x128xf32>
    %486 = arith.addf %485, %484 : vector<16x128xf32>
    %487 = arith.mulf %473, %486 : vector<16x128xf32>
    %cst_200 = arith.constant 0.000000e+00 : f32
    %488 = vector.broadcast %cst_200 : f32 to vector<16x128xf32>
    %489 = arith.subf %488, %467 : vector<16x128xf32>
    %490 = arith.mulf %489, %467 : vector<16x128xf32>
    %491 = math.exp %490 : vector<16x128xf32>
    %492 = arith.mulf %487, %491 : vector<16x128xf32>
    %cst_201 = arith.constant 1.000000e+00 : f32
    %493 = vector.broadcast %cst_201 : f32 to vector<16x128xf32>
    %494 = arith.subf %493, %492 : vector<16x128xf32>
    %cst_202 = arith.constant 0.000000e+00 : f32
    %495 = vector.broadcast %cst_202 : f32 to vector<16x128xf32>
    %496 = arith.cmpf oge, %466, %495 : vector<16x128xf32>
    %cst_203 = arith.constant 0.000000e+00 : f32
    %497 = vector.broadcast %cst_203 : f32 to vector<16x128xf32>
    %498 = arith.subf %497, %494 : vector<16x128xf32>
    %499 = arith.select %496, %494, %498 : vector<16x128xi1>, vector<16x128xf32>
    %cst_204 = arith.constant 5.000000e-01 : f32
    %500 = vector.broadcast %cst_204 : f32 to vector<16x128xf32>
    %501 = arith.mulf %500, %464 : vector<16x128xf32>
    %cst_205 = arith.constant 1.000000e+00 : f32
    %502 = vector.broadcast %cst_205 : f32 to vector<16x128xf32>
    %503 = arith.addf %502, %499 : vector<16x128xf32>
    %504 = arith.mulf %501, %503 : vector<16x128xf32>
    %505 = arith.truncf %504 : vector<16x128xf32> to vector<16x128xbf16>
    %c0_206 = arith.constant 0 : index
    %c0_207 = arith.constant 0 : index
    %506 = vector.load %arg22[%c0_206, %c0_207] : memref<128x64xbf16, #tpu.memory_space<vmem>>, vector<128x64xbf16>
    %cst_208 = arith.constant dense<0.000000e+00> : vector<16x64xf32>
    %507 = tpu.matmul %505, %506, %cst_208 {dimension_numbers = #tpu.dot_dimension_numbers<[1], [0], [0], [1], [0, 0, 1, 1], [], []>} : vector<16x128xbf16>, vector<128x64xbf16>, vector<16x64xf32> -> vector<16x64xf32>
    %c0_209 = arith.constant 0 : index
    %c0_210 = arith.constant 0 : index
    %508 = vector.load %arg23[%c0_209, %c0_210] : memref<1x64xf32, #tpu.memory_space<vmem>>, vector<1x64xf32>
    %509 = vector.broadcast %508 : vector<1x64xf32> to vector<16x64xf32>
    %510 = arith.addf %507, %509 : vector<16x64xf32>
    %511 = arith.addf %510, %458 : vector<16x64xf32>
    %c0_211 = arith.constant 0 : index
    %c0_212 = arith.constant 0 : index
    %512 = vector.load %arg24[%c0_211, %c0_212] : memref<1x64xf32, #tpu.memory_space<vmem>>, vector<1x64xf32>
    %c0_213 = arith.constant 0 : index
    %c0_214 = arith.constant 0 : index
    %513 = vector.load %arg25[%c0_213, %c0_214] : memref<1x64xf32, #tpu.memory_space<vmem>>, vector<1x64xf32>
    %cst_215 = arith.constant dense<0.000000e+00> : vector<16xf32>
    %514 = vector.multi_reduction <add>, %511, %cst_215 [1] : vector<16x64xf32> to vector<16xf32>
    %515 = vector.shape_cast %514 : vector<16xf32> to vector<16x1xf32>
    %cst_216 = arith.constant 6.400000e+01 : f32
    %516 = vector.broadcast %cst_216 : f32 to vector<16x1xf32>
    %517 = arith.divf %515, %516 : vector<16x1xf32>
    %518 = vector.broadcast %517 : vector<16x1xf32> to vector<16x64xf32>
    %519 = arith.subf %511, %518 : vector<16x64xf32>
    %520 = arith.mulf %519, %519 : vector<16x64xf32>
    %cst_217 = arith.constant dense<0.000000e+00> : vector<16xf32>
    %521 = vector.multi_reduction <add>, %520, %cst_217 [1] : vector<16x64xf32> to vector<16xf32>
    %522 = vector.shape_cast %521 : vector<16xf32> to vector<16x1xf32>
    %cst_218 = arith.constant 6.400000e+01 : f32
    %523 = vector.broadcast %cst_218 : f32 to vector<16x1xf32>
    %524 = arith.divf %522, %523 : vector<16x1xf32>
    %cst_219 = arith.constant 9.99999996E-13 : f32
    %525 = vector.broadcast %cst_219 : f32 to vector<16x1xf32>
    %526 = arith.addf %524, %525 : vector<16x1xf32>
    %527 = math.rsqrt %526 : vector<16x1xf32>
    %528 = vector.broadcast %527 : vector<16x1xf32> to vector<16x64xf32>
    %529 = arith.mulf %519, %528 : vector<16x64xf32>
    %530 = vector.broadcast %512 : vector<1x64xf32> to vector<16x64xf32>
    %531 = arith.mulf %529, %530 : vector<16x64xf32>
    %532 = vector.broadcast %513 : vector<1x64xf32> to vector<16x64xf32>
    %533 = arith.addf %531, %532 : vector<16x64xf32>
    %534 = vector.extract_strided_slice %237 {offsets = [0, 8, 0], sizes = [2, 8, 64], strides = [1, 1, 1]} : vector<2x16x64xf32> to vector<2x8x64xf32>
    %535 = vector.shape_cast %534 : vector<2x8x64xf32> to vector<16x64xf32>
    %536 = arith.truncf %535 : vector<16x64xf32> to vector<16x64xbf16>
    %c0_220 = arith.constant 0 : index
    %c0_221 = arith.constant 0 : index
    %537 = vector.load %arg26[%c0_220, %c0_221] : memref<64x128xbf16, #tpu.memory_space<vmem>>, vector<64x128xbf16>
    %cst_222 = arith.constant dense<0.000000e+00> : vector<16x128xf32>
    %538 = tpu.matmul %536, %537, %cst_222 {dimension_numbers = #tpu.dot_dimension_numbers<[1], [0], [0], [1], [0, 0, 1, 1], [], []>} : vector<16x64xbf16>, vector<64x128xbf16>, vector<16x128xf32> -> vector<16x128xf32>
    %c0_223 = arith.constant 0 : index
    %c0_224 = arith.constant 0 : index
    %539 = vector.load %arg27[%c0_223, %c0_224] : memref<1x128xf32, #tpu.memory_space<vmem>>, vector<1x128xf32>
    %540 = vector.broadcast %539 : vector<1x128xf32> to vector<16x128xf32>
    %541 = arith.addf %538, %540 : vector<16x128xf32>
    %cst_225 = arith.constant 0.707106769 : f32
    %542 = vector.broadcast %cst_225 : f32 to vector<16x128xf32>
    %543 = arith.mulf %541, %542 : vector<16x128xf32>
    %544 = math.absf %543 : vector<16x128xf32>
    %cst_226 = arith.constant 0.327591091 : f32
    %545 = vector.broadcast %cst_226 : f32 to vector<16x128xf32>
    %546 = arith.mulf %545, %544 : vector<16x128xf32>
    %cst_227 = arith.constant 1.000000e+00 : f32
    %547 = vector.broadcast %cst_227 : f32 to vector<16x128xf32>
    %548 = arith.addf %547, %546 : vector<16x128xf32>
    %cst_228 = arith.constant 1.000000e+00 : f32
    %549 = vector.broadcast %cst_228 : f32 to vector<16x128xf32>
    %550 = arith.divf %549, %548 : vector<16x128xf32>
    %cst_229 = arith.constant 1.06140542 : f32
    %551 = vector.broadcast %cst_229 : f32 to vector<16x128xf32>
    %552 = arith.mulf %550, %551 : vector<16x128xf32>
    %cst_230 = arith.constant -1.45315206 : f32
    %553 = vector.broadcast %cst_230 : f32 to vector<16x128xf32>
    %554 = arith.addf %553, %552 : vector<16x128xf32>
    %555 = arith.mulf %550, %554 : vector<16x128xf32>
    %cst_231 = arith.constant 1.42141378 : f32
    %556 = vector.broadcast %cst_231 : f32 to vector<16x128xf32>
    %557 = arith.addf %556, %555 : vector<16x128xf32>
    %558 = arith.mulf %550, %557 : vector<16x128xf32>
    %cst_232 = arith.constant -0.284496725 : f32
    %559 = vector.broadcast %cst_232 : f32 to vector<16x128xf32>
    %560 = arith.addf %559, %558 : vector<16x128xf32>
    %561 = arith.mulf %550, %560 : vector<16x128xf32>
    %cst_233 = arith.constant 0.254829586 : f32
    %562 = vector.broadcast %cst_233 : f32 to vector<16x128xf32>
    %563 = arith.addf %562, %561 : vector<16x128xf32>
    %564 = arith.mulf %550, %563 : vector<16x128xf32>
    %cst_234 = arith.constant 0.000000e+00 : f32
    %565 = vector.broadcast %cst_234 : f32 to vector<16x128xf32>
    %566 = arith.subf %565, %544 : vector<16x128xf32>
    %567 = arith.mulf %566, %544 : vector<16x128xf32>
    %568 = math.exp %567 : vector<16x128xf32>
    %569 = arith.mulf %564, %568 : vector<16x128xf32>
    %cst_235 = arith.constant 1.000000e+00 : f32
    %570 = vector.broadcast %cst_235 : f32 to vector<16x128xf32>
    %571 = arith.subf %570, %569 : vector<16x128xf32>
    %cst_236 = arith.constant 0.000000e+00 : f32
    %572 = vector.broadcast %cst_236 : f32 to vector<16x128xf32>
    %573 = arith.cmpf oge, %543, %572 : vector<16x128xf32>
    %cst_237 = arith.constant 0.000000e+00 : f32
    %574 = vector.broadcast %cst_237 : f32 to vector<16x128xf32>
    %575 = arith.subf %574, %571 : vector<16x128xf32>
    %576 = arith.select %573, %571, %575 : vector<16x128xi1>, vector<16x128xf32>
    %cst_238 = arith.constant 5.000000e-01 : f32
    %577 = vector.broadcast %cst_238 : f32 to vector<16x128xf32>
    %578 = arith.mulf %577, %541 : vector<16x128xf32>
    %cst_239 = arith.constant 1.000000e+00 : f32
    %579 = vector.broadcast %cst_239 : f32 to vector<16x128xf32>
    %580 = arith.addf %579, %576 : vector<16x128xf32>
    %581 = arith.mulf %578, %580 : vector<16x128xf32>
    %582 = arith.truncf %581 : vector<16x128xf32> to vector<16x128xbf16>
    %c0_240 = arith.constant 0 : index
    %c0_241 = arith.constant 0 : index
    %583 = vector.load %arg28[%c0_240, %c0_241] : memref<128x64xbf16, #tpu.memory_space<vmem>>, vector<128x64xbf16>
    %cst_242 = arith.constant dense<0.000000e+00> : vector<16x64xf32>
    %584 = tpu.matmul %582, %583, %cst_242 {dimension_numbers = #tpu.dot_dimension_numbers<[1], [0], [0], [1], [0, 0, 1, 1], [], []>} : vector<16x128xbf16>, vector<128x64xbf16>, vector<16x64xf32> -> vector<16x64xf32>
    %c0_243 = arith.constant 0 : index
    %c0_244 = arith.constant 0 : index
    %585 = vector.load %arg29[%c0_243, %c0_244] : memref<1x64xf32, #tpu.memory_space<vmem>>, vector<1x64xf32>
    %586 = vector.broadcast %585 : vector<1x64xf32> to vector<16x64xf32>
    %587 = arith.addf %584, %586 : vector<16x64xf32>
    %588 = arith.addf %587, %535 : vector<16x64xf32>
    %c0_245 = arith.constant 0 : index
    %c0_246 = arith.constant 0 : index
    %589 = vector.load %arg30[%c0_245, %c0_246] : memref<1x64xf32, #tpu.memory_space<vmem>>, vector<1x64xf32>
    %c0_247 = arith.constant 0 : index
    %c0_248 = arith.constant 0 : index
    %590 = vector.load %arg31[%c0_247, %c0_248] : memref<1x64xf32, #tpu.memory_space<vmem>>, vector<1x64xf32>
    %cst_249 = arith.constant dense<0.000000e+00> : vector<16xf32>
    %591 = vector.multi_reduction <add>, %588, %cst_249 [1] : vector<16x64xf32> to vector<16xf32>
    %592 = vector.shape_cast %591 : vector<16xf32> to vector<16x1xf32>
    %cst_250 = arith.constant 6.400000e+01 : f32
    %593 = vector.broadcast %cst_250 : f32 to vector<16x1xf32>
    %594 = arith.divf %592, %593 : vector<16x1xf32>
    %595 = vector.broadcast %594 : vector<16x1xf32> to vector<16x64xf32>
    %596 = arith.subf %588, %595 : vector<16x64xf32>
    %597 = arith.mulf %596, %596 : vector<16x64xf32>
    %cst_251 = arith.constant dense<0.000000e+00> : vector<16xf32>
    %598 = vector.multi_reduction <add>, %597, %cst_251 [1] : vector<16x64xf32> to vector<16xf32>
    %599 = vector.shape_cast %598 : vector<16xf32> to vector<16x1xf32>
    %cst_252 = arith.constant 6.400000e+01 : f32
    %600 = vector.broadcast %cst_252 : f32 to vector<16x1xf32>
    %601 = arith.divf %599, %600 : vector<16x1xf32>
    %cst_253 = arith.constant 9.99999996E-13 : f32
    %602 = vector.broadcast %cst_253 : f32 to vector<16x1xf32>
    %603 = arith.addf %601, %602 : vector<16x1xf32>
    %604 = math.rsqrt %603 : vector<16x1xf32>
    %605 = vector.broadcast %604 : vector<16x1xf32> to vector<16x64xf32>
    %606 = arith.mulf %596, %605 : vector<16x64xf32>
    %607 = vector.broadcast %589 : vector<1x64xf32> to vector<16x64xf32>
    %608 = arith.mulf %606, %607 : vector<16x64xf32>
    %609 = vector.broadcast %590 : vector<1x64xf32> to vector<16x64xf32>
    %610 = arith.addf %608, %609 : vector<16x64xf32>
    %611 = vector.shape_cast %533 : vector<16x64xf32> to vector<2x8x64xf32>
    %612 = arith.truncf %611 : vector<2x8x64xf32> to vector<2x8x64xbf16>
    %c0_254 = arith.constant 0 : index
    %c0_255 = arith.constant 0 : index
    %c0_256 = arith.constant 0 : index
    %613 = vector.load %arg32[%c0_254, %c0_255, %c0_256] : memref<2x16x64xbf16, #tpu.memory_space<vmem>>, vector<2x8x64xbf16>
    tpu.vector_store %arg32[%c0_254, %c0_255, %c0_256], %612 {strides = array<i32>} : memref<2x16x64xbf16, #tpu.memory_space<vmem>>, vector<2x8x64xbf16>,
    %614 = vector.shape_cast %610 : vector<16x64xf32> to vector<2x8x64xf32>
    %615 = arith.truncf %614 : vector<2x8x64xf32> to vector<2x8x64xbf16>
    %c0_257 = arith.constant 0 : index
    %c8_258 = arith.constant 8 : index
    %c0_259 = arith.constant 0 : index
    %616 = vector.load %arg32[%c0_257, %c8_258, %c0_259] : memref<2x16x64xbf16, #tpu.memory_space<vmem>>, vector<2x8x64xbf16>
    tpu.vector_store %arg32[%c0_257, %c8_258, %c0_259], %615 {strides = array<i32>} : memref<2x16x64xbf16, #tpu.memory_space<vmem>>, vector<2x8x64xbf16>,
    return
  }
  func.func @transform_0(%arg0: i32) -> (i32, i32, i32) {
    %c0_i32 = arith.constant 0 : i32
    %c0_i32_0 = arith.constant 0 : i32
    %c0_i32_1 = arith.constant 0 : i32
    %c0_i32_2 = arith.constant 0 : i32
    return %c0_i32, %c0_i32_0, %c0_i32_1 : i32, i32, i32
  }
  func.func @transform_1(%arg0: i32) -> (i32, i32, i32) {
    %c0_i32 = arith.constant 0 : i32
    %c0_i32_0 = arith.constant 0 : i32
    %c0_i32_1 = arith.constant 0 : i32
    %c0_i32_2 = arith.constant 0 : i32
    return %c0_i32, %c0_i32_0, %c0_i32_1 : i32, i32, i32
  }
  func.func @transform_2(%arg0: i32) -> (i32, i32, i32) {
    %c0_i32 = arith.constant 0 : i32
    %c0_i32_0 = arith.constant 0 : i32
    %c0_i32_1 = arith.constant 0 : i32
    %c0_i32_2 = arith.constant 0 : i32
    return %c0_i32, %c0_i32_0, %c0_i32_1 : i32, i32, i32
  }
  func.func @transform_3(%arg0: i32) -> (i32, i32) {
    %c0_i32 = arith.constant 0 : i32
    %c0_i32_0 = arith.constant 0 : i32
    %c0_i32_1 = arith.constant 0 : i32
    return %c0_i32, %c0_i32_0 : i32, i32
  }
  func.func @transform_4(%arg0: i32) -> (i32, i32) {
    %c0_i32 = arith.constant 0 : i32
    %c0_i32_0 = arith.constant 0 : i32
    %c0_i32_1 = arith.constant 0 : i32
    return %c0_i32, %c0_i32_0 : i32, i32
  }
  func.func @transform_5(%arg0: i32) -> (i32, i32) {
    %c0_i32 = arith.constant 0 : i32
    %c0_i32_0 = arith.constant 0 : i32
    %c0_i32_1 = arith.constant 0 : i32
    return %c0_i32, %c0_i32_0 : i32, i32
  }
  func.func @transform_6(%arg0: i32) -> (i32, i32) {
    %c0_i32 = arith.constant 0 : i32
    %c0_i32_0 = arith.constant 0 : i32
    %c0_i32_1 = arith.constant 0 : i32
    return %c0_i32, %c0_i32_0 : i32, i32
  }
  func.func @transform_7(%arg0: i32) -> (i32, i32) {
    %c0_i32 = arith.constant 0 : i32
    %c0_i32_0 = arith.constant 0 : i32
    %c0_i32_1 = arith.constant 0 : i32
    return %c0_i32, %c0_i32_0 : i32, i32
  }
  func.func @transform_8(%arg0: i32) -> (i32, i32) {
    %c0_i32 = arith.constant 0 : i32
    %c0_i32_0 = arith.constant 0 : i32
    %c0_i32_1 = arith.constant 0 : i32
    return %c0_i32, %c0_i32_0 : i32, i32
  }
  func.func @transform_9(%arg0: i32) -> (i32, i32) {
    %c0_i32 = arith.constant 0 : i32
    %c0_i32_0 = arith.constant 0 : i32
    %c0_i32_1 = arith.constant 0 : i32
    return %c0_i32, %c0_i32_0 : i32, i32
  }
  func.func @transform_10(%arg0: i32) -> (i32, i32) {
    %c0_i32 = arith.constant 0 : i32
    %c0_i32_0 = arith.constant 0 : i32
    %c0_i32_1 = arith.constant 0 : i32
    return %c0_i32, %c0_i32_0 : i32, i32
  }
  func.func @transform_11(%arg0: i32) -> (i32, i32) {
    %c0_i32 = arith.constant 0 : i32
    %c0_i32_0 = arith.constant 0 : i32
    %c0_i32_1 = arith.constant 0 : i32
    return %c0_i32, %c0_i32_0 : i32, i32
  }
  func.func @transform_12(%arg0: i32) -> (i32, i32) {
    %c0_i32 = arith.constant 0 : i32
    %c0_i32_0 = arith.constant 0 : i32
    %c0_i32_1 = arith.constant 0 : i32
    return %c0_i32, %c0_i32_0 : i32, i32
  }
  func.func @transform_13(%arg0: i32) -> (i32, i32) {
    %c0_i32 = arith.constant 0 : i32
    %c0_i32_0 = arith.constant 0 : i32
    %c0_i32_1 = arith.constant 0 : i32
    return %c0_i32, %c0_i32_0 : i32, i32
  }
  func.func @transform_14(%arg0: i32) -> (i32, i32) {
    %c0_i32 = arith.constant 0 : i32
    %c0_i32_0 = arith.constant 0 : i32
    %c0_i32_1 = arith.constant 0 : i32
    return %c0_i32, %c0_i32_0 : i32, i32
  }
  func.func @transform_15(%arg0: i32) -> (i32, i32) {
    %c0_i32 = arith.constant 0 : i32
    %c0_i32_0 = arith.constant 0 : i32
    %c0_i32_1 = arith.constant 0 : i32
    return %c0_i32, %c0_i32_0 : i32, i32
  }
  func.func @transform_16(%arg0: i32) -> (i32, i32) {
    %c0_i32 = arith.constant 0 : i32
    %c0_i32_0 = arith.constant 0 : i32
    %c0_i32_1 = arith.constant 0 : i32
    return %c0_i32, %c0_i32_0 : i32, i32
  }
  func.func @transform_17(%arg0: i32) -> (i32, i32) {
    %c0_i32 = arith.constant 0 : i32
    %c0_i32_0 = arith.constant 0 : i32
    %c0_i32_1 = arith.constant 0 : i32
    return %c0_i32, %c0_i32_0 : i32, i32
  }
  func.func @transform_18(%arg0: i32) -> (i32, i32) {
    %c0_i32 = arith.constant 0 : i32
    %c0_i32_0 = arith.constant 0 : i32
    %c0_i32_1 = arith.constant 0 : i32
    return %c0_i32, %c0_i32_0 : i32, i32
  }
  func.func @transform_19(%arg0: i32) -> (i32, i32) {
    %c0_i32 = arith.constant 0 : i32
    %c0_i32_0 = arith.constant 0 : i32
    %c0_i32_1 = arith.constant 0 : i32
    return %c0_i32, %c0_i32_0 : i32, i32
  }
  func.func @transform_20(%arg0: i32) -> (i32, i32) {
    %c0_i32 = arith.constant 0 : i32
    %c0_i32_0 = arith.constant 0 : i32
    %c0_i32_1 = arith.constant 0 : i32
    return %c0_i32, %c0_i32_0 : i32, i32
  }
  func.func @transform_21(%arg0: i32) -> (i32, i32) {
    %c0_i32 = arith.constant 0 : i32
    %c0_i32_0 = arith.constant 0 : i32
    %c0_i32_1 = arith.constant 0 : i32
    return %c0_i32, %c0_i32_0 : i32, i32
  }
  func.func @transform_22(%arg0: i32) -> (i32, i32) {
    %c0_i32 = arith.constant 0 : i32
    %c0_i32_0 = arith.constant 0 : i32
    %c0_i32_1 = arith.constant 0 : i32
    return %c0_i32, %c0_i32_0 : i32, i32
  }
  func.func @transform_23(%arg0: i32) -> (i32, i32) {
    %c0_i32 = arith.constant 0 : i32
    %c0_i32_0 = arith.constant 0 : i32
    %c0_i32_1 = arith.constant 0 : i32
    return %c0_i32, %c0_i32_0 : i32, i32
  }
  func.func @transform_24(%arg0: i32) -> (i32, i32) {
    %c0_i32 = arith.constant 0 : i32
    %c0_i32_0 = arith.constant 0 : i32
    %c0_i32_1 = arith.constant 0 : i32
    return %c0_i32, %c0_i32_0 : i32, i32
  }
  func.func @transform_25(%arg0: i32) -> (i32, i32) {
    %c0_i32 = arith.constant 0 : i32
    %c0_i32_0 = arith.constant 0 : i32
    %c0_i32_1 = arith.constant 0 : i32
    return %c0_i32, %c0_i32_0 : i32, i32
  }
  func.func @transform_26(%arg0: i32) -> (i32, i32) {
    %c0_i32 = arith.constant 0 : i32
    %c0_i32_0 = arith.constant 0 : i32
    %c0_i32_1 = arith.constant 0 : i32
    return %c0_i32, %c0_i32_0 : i32, i32
  }
  func.func @transform_27(%arg0: i32) -> (i32, i32) {
    %c0_i32 = arith.constant 0 : i32
    %c0_i32_0 = arith.constant 0 : i32
    %c0_i32_1 = arith.constant 0 : i32
    return %c0_i32, %c0_i32_0 : i32, i32
  }
  func.func @transform_28(%arg0: i32) -> (i32, i32) {
    %c0_i32 = arith.constant 0 : i32
    %c0_i32_0 = arith.constant 0 : i32
    %c0_i32_1 = arith.constant 0 : i32
    return %c0_i32, %c0_i32_0 : i32, i32
  }
  func.func @transform_29(%arg0: i32) -> (i32, i32) {
    %c0_i32 = arith.constant 0 : i32
    %c0_i32_0 = arith.constant 0 : i32
    %c0_i32_1 = arith.constant 0 : i32
    return %c0_i32, %c0_i32_0 : i32, i32
  }
  func.func @transform_30(%arg0: i32) -> (i32, i32) {
    %c0_i32 = arith.constant 0 : i32
    %c0_i32_0 = arith.constant 0 : i32
    %c0_i32_1 = arith.constant 0 : i32
    return %c0_i32, %c0_i32_0 : i32, i32
  }
  func.func @transform_31(%arg0: i32) -> (i32, i32, i32) {
    %c0_i32 = arith.constant 0 : i32
    %c0_i32_0 = arith.constant 0 : i32
    %c0_i32_1 = arith.constant 0 : i32
    %c0_i32_2 = arith.constant 0 : i32
    return %c0_i32, %c0_i32_0, %c0_i32_1 : i32, i32, i32
  }
}

</mosaic_0001>

<bundles_post_ra>
// kernel: tpu_custom_call.1
= control target key start
LH: loop header
LB: loop body
LE: loop exit
PB: predicated region body
PF: predicated region fallthrough
CT: control target
= control target key end

     0   :  { %s7269_s6 = smov 1   ;;  %s7270_s10 = smov 2   ;;  %s8648_s0 = inlined_call_operand.smem [shape: u32[32], index: -1, kind: input, shape index: {}] }
   0x1   :  { %s7346_s5 = sld [smem:[%s8648_s0]]   ;;  %s7271_s14 = smov 3  }
   0x2   :  { %s7351_s9 = sld [smem:[%s8648_s0 + %s7269_s6]]   ;;  %s7272_s18 = smov 4  }
   0x3   :  { %s7356_s13 = sld [smem:[%s8648_s0 + %s7270_s10]]   ;;  %s7273_s22 = smov 5  }
   0x4   :  { %s7361_s17 = sld [smem:[%s8648_s0 + %s7271_s14]]   ;;  %s7274_s26 = smov 6  }
   0x5   :  { %s7366_s21 = sld [smem:[%s8648_s0 + %s7272_s18]]   ;;  %s7275_s30 = smov 7  }
   0x6   :  { %s7371_s25 = sld [smem:[%s8648_s0 + %s7273_s22]]   ;;  %s7276_s4 = smov 8  }
   0x7   :  { %8661 = sst [smem:[#allocation41_spill]] %s7346_s5  ;;  %s7277_s10 = smov 9  }
   0x8   :  { %s7376_s29 = sld [smem:[%s8648_s0 + %s7274_s26]]   ;;  %s7278_s15 = smov 10  }
   0x9   :  { %s7381_s3 = sld [smem:[%s8648_s0 + %s7275_s30]]   ;;  %s7279_s20 = smov 11  }
   0xa   :  { %s7386_s8 = sld [smem:[%s8648_s0 + %s7276_s4]]   ;;  %s7280_s26 = smov 12  }
   0xb   :  { %s7391_s14 = sld [smem:[%s8648_s0 + %s7277_s10]]   ;;  %s7281_s1 = smov 13  }
   0xc   :  { %8662 = sst [smem:[#allocation42_spill]] %s7371_s25  ;;  %s7282_s7 = smov 14  }
   0xd   :  { %s7396_s19 = sld [smem:[%s8648_s0 + %s7278_s15]]   ;;  %s7283_s15 = smov 15  }
   0xe   :  { %s7401_s24 = sld [smem:[%s8648_s0 + %s7279_s20]]   ;;  %s7284_s22 = smov 16  }
   0xf   :  { %8663 = sst [smem:[#allocation43_spill]] %s7381_s3  ;;  %s7285_s28 = smov 17  }
  0x10   :  { %s7406_s30 = sld [smem:[%s8648_s0 + %s7280_s26]]  }
  0x11   :  { %s7411_s6 = sld [smem:[%s8648_s0 + %s7281_s1]]  }
  0x12   :  { %s7416_s12 = sld [smem:[%s8648_s0 + %s7282_s7]]   ;;  %s7286_s7 = smov 18  }
  0x13   :  { %s7421_s20 = sld [smem:[%s8648_s0 + %s7283_s15]]   ;;  %s7287_s15 = smov 19  }
  0x14   :  { %8664 = sst [smem:[#allocation44_spill]] %s7401_s24 }
  0x15   :  { %s7426_s27 = sld [smem:[%s8648_s0 + %s7284_s22]]   ;;  %s7288_s22 = smov 20  }
  0x16   :  { %s7431_s4 = sld [smem:[%s8648_s0 + %s7285_s28]]   ;;  %s7289_s28 = smov 21  }
  0x17   :  { %s7436_s24 = sld [smem:[%s8648_s0 + %s7286_s7]]   ;;  %s7290_s7 = smov 22  }
  0x18   :  { %s7446_s3 = sld [smem:[%s8648_s0 + %s7288_s22]]   ;;  %s7292_s22 = smov 24  }
  0x19   :  { %8665 = sst [smem:[#allocation45_spill]] %s7421_s20 }
  0x1a   :  { %s7441_s20 = sld [smem:[%s8648_s0 + %s7287_s15]]   ;;  %s7291_s15 = smov 23  }
  0x1b   :  { %s7451_s25 = sld [smem:[%s8648_s0 + %s7289_s28]]   ;;  %s7293_s28 = smov 25  }
  0x1c   :  { %8666 = sst [smem:[#allocation46_spill]] %s7431_s4 }
  0x1d   :  { %8667 = sst [smem:[#allocation47_spill]] %s7436_s24 }
  0x1e   :  { %8669 = sst [smem:[#allocation49_spill]] %s7446_s3 }
  0x1f   :  { %s7456_s24 = sld [smem:[%s8648_s0 + %s7290_s7]]   ;;  %s7294_s7 = smov 26  }
  0x20   :  { %8668 = sst [smem:[#allocation48_spill]] %s7441_s20 }
  0x21   :  { %8670 = sst [smem:[#allocation50_spill]] %s7451_s25 }
  0x22   :  { %s7461_s20 = sld [smem:[%s8648_s0 + %s7291_s15]]   ;;  %s7295_s15 = smov 27  }
  0x23   :  { %s7466_s3 = sld [smem:[%s8648_s0 + %s7292_s22]]   ;;  %s7296_s22 = smov 28  }
  0x24   :  { %s7471_s25 = sld [smem:[%s8648_s0 + %s7293_s28]]   ;;  %s7297_s28 = smov 29  }
  0x25   :  { %s7476_s5 = sld [smem:[%s8648_s0 + %s7294_s7]]   ;;  %s7298_s7 = smov 30  }
  0x26   :  { %s7486_s4 = sld [smem:[%s8648_s0 + %s7296_s22]]  }
  0x28   :  { %8671 = sst [smem:[#allocation51_spill]] %s7461_s20 }
  0x29   :  { %s7481_s20 = sld [smem:[%s8648_s0 + %s7295_s15]]   ;;  %s7299_s15 = smov 31  }
  0x2a   :  { %8672 = sst [smem:[#allocation52_spill]] %s7471_s25 }
  0x2b   :  { %8673 = sst [smem:[#allocation53_spill]] %s7476_s5 }
  0x2c   :  { %s7491_s25 = sld [smem:[%s8648_s0 + %s7297_s28]]  }
  0x2d   :  { %s7496_s5 = sld [smem:[%s8648_s0 + %s7298_s7]]  }
  0x2f   :  { %8674 = sst [smem:[#allocation54_spill]] %s7481_s20 }
  0x30   :  { %s7501_s20 = sld [smem:[%s8648_s0 + %s7299_s15]]  }
  0x31   :  { %68 = vsyncpa [#allocation4], 0 }
  0x32   :  { %69 = vsyncpa [#allocation7], 0 }
  0x33   :  { %70 = vsyncpa [#allocation10], 0 }
  0x34   :  { %71 = vsyncpa [#allocation13], 0 }
  0x35   :  { %72 = vsyncpa [#allocation16], 0 }
  0x36   :  { %73 = vsyncpa [#allocation19], 0 }
  0x37   :  { %74 = vsyncpa [#allocation22], 0 }
  0x38   :  { %75 = vsyncpa [#allocation25], 0 }
  0x39   :  { %76 = vsyncpa [#allocation28], 0 }
  0x3a   :  { %77 = vsyncpa [#allocation5], 0  ;;  %s7300_s22 = smov [#allocation6]   ;;  %s6853_s26 = scalar_lea.hbm %s7356_s13, 256 }
  0x3b   :  { %s97_s23 = sshll.u32 %s7300_s22, 4  ;;  %p6854_p0 = scmp.ne.s32.totalorder %s7356_s13, %s6853_s26  ;;  %s98_s23 = int_to_ptr.vmem [resolvable:$true] %s97_s23 }
  0x3c   :  { %p6857_p1 = scmp.lt.u32.totalorder %s6853_s26, %s7356_s13 }
  0x3e   :  { %p6859_p2 = pnand %p6857_p1, %p6854_p0 }
  0x40   :  { %6862 = shalt.err (!%p6859_p2)
}
  0x41   :  { %s6863_s0 = scalar_lea.vmem %s98_s23, 256  ;;  %p6868_p4 = scmp.lt.s32.totalorder %s98_s23, %s98_s23 }
  0x42   :  { %p6864_p3 = scmp.ne.s32.totalorder %s98_s23, %s6863_s0  ;;  %p6869_p5 = scmp.lt.s32.totalorder %s6863_s0, %s6863_s0 }
  0x44   :  { %p6870_p6 = por %p6869_p5, %p6868_p4 }
  0x46   :  { %p6871_p7 = pnand %p6870_p6, %p6864_p3 }
  0x48   :  { %6874 = shalt.err (!%p6871_p7)
}
  0x49   :  { %s7301_s28 = smov 64   ;;  %s7302_s1 = smov 4  }
  0x4a   :  { %103 = dma.hbm_to_vmem [thread:$0]  %s7356_s13, 256, %s98_s23, [#allocation7], %s7301_s28, %s7301_s28, %s7302_s1  }
  0x4b   :  { %s7303_s2 = smov [#allocation9]   ;;  %s7304_s10 = smov [#allocation12]  }
  0x4c   :  { %s120_s7 = sshll.u32 %s7303_s2, 4  ;;  %s144_s11 = sshll.u32 %s7304_s10, 4  ;;  %s121_s7 = int_to_ptr.vmem [resolvable:$true] %s120_s7  ;;  %s145_s11 = int_to_ptr.vmem [resolvable:$true] %s144_s11 }
  0x4d   :  { %s6875_s15 = scalar_lea.hbm %s7366_s21, 16 }
  0x4e   :  { %p6876_p8 = scmp.ne.s32.totalorder %s7366_s21, %s6875_s15  ;;  %p6879_p9 = scmp.lt.u32.totalorder %s6875_s15, %s7366_s21 }
  0x50   :  { %p6881_p10 = pnand %p6879_p9, %p6876_p8 }
  0x52   :  { %6884 = shalt.err (!%p6881_p10)
}
  0x53   :  { %s6885_s16 = scalar_lea.vmem %s121_s7, 16  ;;  %s6889_s18 = scalar_lea.vmem %s121_s7, 32 }
  0x54   :  { %p6886_p11 = scmp.ne.s32.totalorder %s121_s7, %s6885_s16  ;;  %p6890_p12 = scmp.lt.s32.totalorder %s121_s7, %s121_s7 }
  0x55   :  { %p6891_p13 = scmp.lt.s32.totalorder %s6889_s18, %s6885_s16 }
  0x57   :  { %p6892_p0 = por %p6891_p13, %p6890_p12 }
  0x59   :  { %p6893_p1 = pnand %p6892_p0, %p6886_p11 }
  0x5b   :  { %6896 = shalt.err (!%p6893_p1)
}
  0x5c   :  { %123 = dma.hbm_to_vmem [thread:$0]  %s7366_s21, 16, %s121_s7, [#allocation10]  }
  0x5d   :  { %s6897_s13 = scalar_lea.hbm %s7386_s8, 16 }
  0x5e   :  { %p6898_p2 = scmp.ne.s32.totalorder %s7386_s8, %s6897_s13  ;;  %p6901_p3 = scmp.lt.u32.totalorder %s6897_s13, %s7386_s8 }
  0x60   :  { %p6903_p4 = pnand %p6901_p3, %p6898_p2 }
  0x62   :  { %6906 = shalt.err (!%p6903_p4)
}
  0x63   :  { %s6907_s22 = scalar_lea.vmem %s145_s11, 16  ;;  %s6911_s23 = scalar_lea.vmem %s145_s11, 32 }
  0x64   :  { %p6908_p5 = scmp.ne.s32.totalorder %s145_s11, %s6907_s22  ;;  %p6912_p6 = scmp.lt.s32.totalorder %s145_s11, %s145_s11 }
  0x65   :  { %p6913_p7 = scmp.lt.s32.totalorder %s6911_s23, %s6907_s22 }
  0x67   :  { %p6914_p8 = por %p6913_p7, %p6912_p6 }
  0x69   :  { %p6915_p9 = pnand %p6914_p8, %p6908_p5 }
  0x6b   :  { %6918 = shalt.err (!%p6915_p9)
}
  0x6c   :  { %147 = dma.hbm_to_vmem [thread:$0]  %s7386_s8, 16, %s145_s11, [#allocation13]  }
  0x6d   :  { %s7305_s21 = smov [#allocation15]   ;;  %s7306_s0 = smov [#allocation18]  }
  0x6e   :  { %s164_s26 = sshll.u32 %s7305_s21, 4  ;;  %s185_s2 = sshll.u32 %s7306_s0, 4  ;;  %s165_s26 = int_to_ptr.vmem [resolvable:$true] %s164_s26  ;;  %s186_s2 = int_to_ptr.vmem [resolvable:$true] %s185_s2 }
  0x6f   :  { %s6919_s7 = scalar_lea.hbm %s7396_s19, 16 }
  0x70   :  { %p6920_p10 = scmp.ne.s32.totalorder %s7396_s19, %s6919_s7  ;;  %p6923_p11 = scmp.lt.u32.totalorder %s6919_s7, %s7396_s19 }
  0x72   :  { %p6925_p12 = pnand %p6923_p11, %p6920_p10 }
  0x74   :  { %6928 = shalt.err (!%p6925_p12)
}
  0x75   :  { %s6929_s10 = scalar_lea.vmem %s165_s26, 16  ;;  %s6933_s15 = scalar_lea.vmem %s165_s26, 32 }
  0x76   :  { %p6930_p13 = scmp.ne.s32.totalorder %s165_s26, %s6929_s10  ;;  %p6934_p0 = scmp.lt.s32.totalorder %s165_s26, %s165_s26 }
  0x77   :  { %p6935_p1 = scmp.lt.s32.totalorder %s6933_s15, %s6929_s10 }
  0x79   :  { %p6936_p2 = por %p6935_p1, %p6934_p0 }
  0x7b   :  { %p6937_p3 = pnand %p6936_p2, %p6930_p13 }
  0x7d   :  { %6940 = shalt.err (!%p6937_p3)
}
  0x7e   :  { %167 = dma.hbm_to_vmem [thread:$0]  %s7396_s19, 16, %s165_s26, [#allocation16]  }
  0x7f   :  { %s6941_s8 = scalar_lea.hbm %s7411_s6, 256 }
  0x80   :  { %p6942_p4 = scmp.ne.s32.totalorder %s7411_s6, %s6941_s8  ;;  %p6945_p5 = scmp.lt.u32.totalorder %s6941_s8, %s7411_s6 }
  0x82   :  { %p6947_p6 = pnand %p6945_p5, %p6942_p4 }
  0x84   :  { %6950 = shalt.err (!%p6947_p6)
}
  0x85   :  { %s6951_s11 = scalar_lea.vmem %s186_s2, 256  ;;  %p6956_p8 = scmp.lt.s32.totalorder %s186_s2, %s186_s2 }
  0x86   :  { %p6952_p7 = scmp.ne.s32.totalorder %s186_s2, %s6951_s11  ;;  %p6957_p9 = scmp.lt.s32.totalorder %s6951_s11, %s6951_s11 }
  0x88   :  { %p6958_p10 = por %p6957_p9, %p6956_p8 }
  0x8a   :  { %p6959_p11 = pnand %p6958_p10, %p6952_p7 }
  0x8c   :  { %6962 = shalt.err (!%p6959_p11)
}
  0x8d   :  { %191 = dma.hbm_to_vmem [thread:$0]  %s7411_s6, 256, %s186_s2, [#allocation19], %s7301_s28, %s7301_s28, %s7302_s1  }
  0x8e   :  { %s7307_s19 = smov [#allocation21]   ;;  %s7308_s18 = smov [#allocation24]  }
  0x8f   :  { %s210_s16 = sshll.u32 %s7307_s19, 4  ;;  %s238_s13 = sshll.u32 %s7308_s18, 4  ;;  %s211_s16 = int_to_ptr.vmem [resolvable:$true] %s210_s16  ;;  %s239_s13 = int_to_ptr.vmem [resolvable:$true] %s238_s13 }
  0x90   :  { %s6963_s22 = scalar_lea.hbm %s7426_s27, 16 }
  0x91   :  { %p6964_p12 = scmp.ne.s32.totalorder %s7426_s27, %s6963_s22  ;;  %p6967_p13 = scmp.lt.u32.totalorder %s6963_s22, %s7426_s27 }
  0x93   :  { %p6969_p0 = pnand %p6967_p13, %p6964_p12 }
  0x95   :  { %6972 = shalt.err (!%p6969_p0)
}
  0x96   :  { %s6973_s23 = scalar_lea.vmem %s211_s16, 16  ;;  %s6977_s21 = scalar_lea.vmem %s211_s16, 32 }
  0x97   :  { %p6974_p1 = scmp.ne.s32.totalorder %s211_s16, %s6973_s23  ;;  %p6978_p2 = scmp.lt.s32.totalorder %s211_s16, %s211_s16 }
  0x98   :  { %p6979_p3 = scmp.lt.s32.totalorder %s6977_s21, %s6973_s23 }
  0x9a   :  { %p6980_p4 = por %p6979_p3, %p6978_p2 }
  0x9c   :  { %p6981_p5 = pnand %p6980_p4, %p6974_p1 }
  0x9e   :  { %6984 = shalt.err (!%p6981_p5)
}
  0x9f   :  { %213 = dma.hbm_to_vmem [thread:$0]  %s7426_s27, 16, %s211_s16, [#allocation22]  }
  0xa0   :  { %s6985_s6 = scalar_lea.hbm %s7456_s24, 16 }
  0xa1   :  { %p6986_p6 = scmp.ne.s32.totalorder %s7456_s24, %s6985_s6  ;;  %p6989_p7 = scmp.lt.u32.totalorder %s6985_s6, %s7456_s24 }
  0xa3   :  { %p6991_p8 = pnand %p6989_p7, %p6986_p6 }
  0xa5   :  { %6994 = shalt.err (!%p6991_p8)
}
  0xa6   :  { %s6995_s26 = scalar_lea.vmem %s239_s13, 16  ;;  %s6999_s0 = scalar_lea.vmem %s239_s13, 32 }
  0xa7   :  { %p6996_p9 = scmp.ne.s32.totalorder %s239_s13, %s6995_s26  ;;  %p7000_p10 = scmp.lt.s32.totalorder %s239_s13, %s239_s13 }
  0xa8   :  { %p7001_p11 = scmp.lt.s32.totalorder %s6999_s0, %s6995_s26 }
  0xaa   :  { %p7002_p12 = por %p7001_p11, %p7000_p10 }
  0xac   :  { %p7003_p13 = pnand %p7002_p12, %p6996_p9 }
  0xae   :  { %7006 = shalt.err (!%p7003_p13)
}
  0xaf   :  { %241 = dma.hbm_to_vmem [thread:$0]  %s7456_s24, 16, %s239_s13, [#allocation25]  }
  0xb0   :  { %s7309_s27 = smov [#allocation27]   ;;  %s7310_s7 = smov [#allocation3]  }
  0xb1   :  { %s258_s2 = sshll.u32 %s7309_s27, 4  ;;  %s85_s10 = sshll.u32 %s7310_s7, 4  ;;  %s259_s2 = int_to_ptr.vmem [resolvable:$true] %s258_s2  ;;  %s86_s10 = int_to_ptr.vmem [resolvable:$true] %s85_s10 }
  0xb2   :  { %s7007_s15 = scalar_lea.hbm %s7466_s3, 16 }
  0xb3   :  { %p7008_p0 = scmp.ne.s32.totalorder %s7466_s3, %s7007_s15  ;;  %p7011_p1 = scmp.lt.u32.totalorder %s7007_s15, %s7466_s3 }
  0xb5   :  { %p7013_p2 = pnand %p7011_p1, %p7008_p0 }
  0xb7   :  { %7016 = shalt.err (!%p7013_p2)
}
  0xb8   :  { %s7017_s8 = scalar_lea.vmem %s259_s2, 16  ;;  %s7021_s11 = scalar_lea.vmem %s259_s2, 32 }
  0xb9   :  { %p7018_p3 = scmp.ne.s32.totalorder %s259_s2, %s7017_s8  ;;  %p7022_p4 = scmp.lt.s32.totalorder %s259_s2, %s259_s2 }
  0xba   :  { %p7023_p5 = scmp.lt.s32.totalorder %s7021_s11, %s7017_s8 }
  0xbc   :  { %p7024_p6 = por %p7023_p5, %p7022_p4 }
  0xbe   :  { %p7025_p7 = pnand %p7024_p6, %p7018_p3 }
  0xc0   :  { %7028 = shalt.err (!%p7025_p7)
}
  0xc1   :  { %261 = dma.hbm_to_vmem [thread:$0]  %s7466_s3, 16, %s259_s2, [#allocation28]  }
  0xc2   :  { %s7029_s24 = scalar_lea.hbm %s7351_s9, 32 }
  0xc3   :  { %p7030_p8 = scmp.ne.s32.totalorder %s7351_s9, %s7029_s24  ;;  %p7033_p9 = scmp.lt.u32.totalorder %s7029_s24, %s7351_s9 }
  0xc5   :  { %p7035_p10 = pnand %p7033_p9, %p7030_p8 }
  0xc7   :  { %7038 = shalt.err (!%p7035_p10)
}
  0xc8   :  { %s7039_s19 = scalar_lea.vmem %s86_s10, 32  ;;  %p7044_p12 = scmp.lt.s32.totalorder %s86_s10, %s86_s10 }
  0xc9   :  { %p7040_p11 = scmp.ne.s32.totalorder %s86_s10, %s7039_s19  ;;  %p7045_p13 = scmp.lt.s32.totalorder %s7039_s19, %s7039_s19 }
  0xcb   :  { %p7046_p0 = por %p7045_p13, %p7044_p12 }
  0xcd   :  { %p7047_p1 = pnand %p7046_p0, %p7040_p11 }
  0xcf   :  { %7050 = shalt.err (!%p7047_p1)
}
  0xd0   :  { %s7311_s16 = smov 16   ;;  %s7312_s18 = smov 1  }
  0xd1   :  { %91 = dma.hbm_to_vmem [thread:$0]  %s7351_s9, 32, %s86_s10, [#allocation4], %s7311_s16, %s7311_s16, %s7312_s18  }
  0xd2   :  { %s7313_s3 = smov [#allocation8]   ;;  %s7314_s22 = smov [#allocation11]  }
  0xd3   :  { %s110_s13 = sshll.u32 %s7313_s3, 4  ;;  %s132_s23 = sshll.u32 %s7314_s22, 4  ;;  %s111_s13 = int_to_ptr.vmem [resolvable:$true] %s110_s13  ;;  %s133_s23 = int_to_ptr.vmem [resolvable:$true] %s132_s23 }
  0xd4   :  { %s7051_s21 = scalar_lea.hbm %s7361_s17, 16 }
  0xd5   :  { %p7052_p2 = scmp.ne.s32.totalorder %s7361_s17, %s7051_s21  ;;  %p7055_p3 = scmp.lt.u32.totalorder %s7051_s21, %s7361_s17 }
  0xd7   :  { %p7057_p4 = pnand %p7055_p3, %p7052_p2 }
  0xd9   :  { %7060 = shalt.err (!%p7057_p4)
}
  0xda   :  { %s7061_s6 = scalar_lea.vmem %s111_s13, 16  ;;  %s7065_s26 = scalar_lea.vmem %s111_s13, 32 }
  0xdb   :  { %p7062_p5 = scmp.ne.s32.totalorder %s111_s13, %s7061_s6  ;;  %p7066_p6 = scmp.lt.s32.totalorder %s111_s13, %s111_s13 }
  0xdc   :  { %p7067_p7 = scmp.lt.s32.totalorder %s7065_s26, %s7061_s6 }
  0xde   :  { %p7068_p8 = por %p7067_p7, %p7066_p6 }
  0xe0   :  { %p7069_p9 = pnand %p7068_p8, %p7062_p5 }
  0xe2   :  { %7072 = shalt.err (!%p7069_p9)
}
  0xe3   :  { %113 = dma.hbm_to_vmem [thread:$0]  %s7361_s17, 16, %s111_s13, [#allocation7]  }
  0xe4   :  { %s7073_s9 = scalar_lea.hbm %s7376_s29, 32 }
  0xe5   :  { %p7074_p10 = scmp.ne.s32.totalorder %s7376_s29, %s7073_s9  ;;  %p7077_p11 = scmp.lt.u32.totalorder %s7073_s9, %s7376_s29 }
  0xe7   :  { %p7079_p12 = pnand %p7077_p11, %p7074_p10 }
  0xe9   :  { %7082 = shalt.err (!%p7079_p12)
}
  0xea   :  { %s7083_s0 = scalar_lea.vmem %s133_s23, 32  ;;  %p7088_p0 = scmp.lt.s32.totalorder %s133_s23, %s133_s23 }
  0xeb   :  { %p7084_p13 = scmp.ne.s32.totalorder %s133_s23, %s7083_s0  ;;  %p7089_p1 = scmp.lt.s32.totalorder %s7083_s0, %s7083_s0 }
  0xed   :  { %p7090_p2 = por %p7089_p1, %p7088_p0 }
  0xef   :  { %p7091_p3 = pnand %p7090_p2, %p7084_p13 }
  0xf1   :  { %7094 = shalt.err (!%p7091_p3)
}
  0xf2   :  { %135 = dma.hbm_to_vmem [thread:$0]  %s7376_s29, 32, %s133_s23, [#allocation10]  }
  0xf3   :  { %s7315_s27 = smov [#allocation14]   ;;  %s7316_s2 = smov [#allocation17]  }
  0xf4   :  { %s154_s17 = sshll.u32 %s7315_s27, 4  ;;  %s176_s7 = sshll.u32 %s7316_s2, 4  ;;  %s155_s17 = int_to_ptr.vmem [resolvable:$true] %s154_s17  ;;  %s177_s7 = int_to_ptr.vmem [resolvable:$true] %s176_s7 }
  0xf5   :  { %s7095_s10 = scalar_lea.hbm %s7391_s14, 16 }
  0xf6   :  { %p7096_p4 = scmp.ne.s32.totalorder %s7391_s14, %s7095_s10  ;;  %p7099_p5 = scmp.lt.u32.totalorder %s7095_s10, %s7391_s14 }
  0xf8   :  { %p7101_p6 = pnand %p7099_p5, %p7096_p4 }
  0xfa   :  { %7104 = shalt.err (!%p7101_p6)
}
  0xfb   :  { %s7105_s15 = scalar_lea.vmem %s155_s17, 16  ;;  %s7109_s8 = scalar_lea.vmem %s155_s17, 32 }
  0xfc   :  { %p7106_p7 = scmp.ne.s32.totalorder %s155_s17, %s7105_s15  ;;  %p7110_p8 = scmp.lt.s32.totalorder %s155_s17, %s155_s17 }
  0xfd   :  { %p7111_p9 = scmp.lt.s32.totalorder %s7109_s8, %s7105_s15 }
  0xff   :  { %p7112_p10 = por %p7111_p9, %p7110_p8 }
 0x101   :  { %p7113_p11 = pnand %p7112_p10, %p7106_p7 }
 0x103   :  { %7116 = shalt.err (!%p7113_p11)
}
 0x104   :  { %157 = dma.hbm_to_vmem [thread:$0]  %s7391_s14, 16, %s155_s17, [#allocation13]  }
 0x105   :  { %s7117_s29 = scalar_lea.hbm %s7406_s30, 16 }
 0x106   :  { %p7118_p12 = scmp.ne.s32.totalorder %s7406_s30, %s7117_s29  ;;  %p7121_p13 = scmp.lt.u32.totalorder %s7117_s29, %s7406_s30 }
 0x108   :  { %p7123_p0 = pnand %p7121_p13, %p7118_p12 }
 0x10a   :  { %7126 = shalt.err (!%p7123_p0)
}
 0x10b   :  { %s7127_s11 = scalar_lea.vmem %s177_s7, 16  ;;  %s7131_s24 = scalar_lea.vmem %s177_s7, 32 }
 0x10c   :  { %p7128_p1 = scmp.ne.s32.totalorder %s177_s7, %s7127_s11  ;;  %p7132_p2 = scmp.lt.s32.totalorder %s177_s7, %s177_s7 }
 0x10d   :  { %p7133_p3 = scmp.lt.s32.totalorder %s7131_s24, %s7127_s11 }
 0x10f   :  { %p7134_p4 = por %p7133_p3, %p7132_p2 }
 0x111   :  { %p7135_p5 = pnand %p7134_p4, %p7128_p1 }
 0x113   :  { %7138 = shalt.err (!%p7135_p5)
}
 0x114   :  { %179 = dma.hbm_to_vmem [thread:$0]  %s7406_s30, 16, %s177_s7, [#allocation16]  }
 0x115   :  { %s7317_s14 = smov [#allocation20]   ;;  %s7318_s18 = smov [#allocation23]  }
 0x116   :  { %s198_s19 = sshll.u32 %s7317_s14, 4  ;;  %s220_s3 = sshll.u32 %s7318_s18, 4  ;;  %s199_s19 = int_to_ptr.vmem [resolvable:$true] %s198_s19  ;;  %s221_s3 = int_to_ptr.vmem [resolvable:$true] %s220_s3 }
 0x117   :  { %s7139_s13 = scalar_lea.hbm %s7416_s12, 16 }
 0x118   :  { %p7140_p6 = scmp.ne.s32.totalorder %s7416_s12, %s7139_s13  ;;  %p7143_p7 = scmp.lt.u32.totalorder %s7139_s13, %s7416_s12 }
 0x11a   :  { %p7145_p8 = pnand %p7143_p7, %p7140_p6 }
 0x11c   :  { %7148 = shalt.err (!%p7145_p8)
}
 0x11d   :  { %s7149_s22 = scalar_lea.vmem %s199_s19, 16  ;;  %s7153_s23 = scalar_lea.vmem %s199_s19, 32 }
 0x11e   :  { %p7150_p9 = scmp.ne.s32.totalorder %s199_s19, %s7149_s22  ;;  %p7154_p10 = scmp.lt.s32.totalorder %s199_s19, %s199_s19 }
 0x11f   :  { %p7155_p11 = scmp.lt.s32.totalorder %s7153_s23, %s7149_s22 }
 0x121   :  { %p7156_p12 = por %p7155_p11, %p7154_p10 }
 0x123   :  { %p7157_p13 = pnand %p7156_p12, %p7150_p9 }
 0x125   :  { %7160 = shalt.err (!%p7157_p13)
}
 0x126   :  { %s8675_s30 = sld [smem:[#allocation46_spill]] }
 0x127   :  { %201 = dma.hbm_to_vmem [thread:$0]  %s7416_s12, 16, %s199_s19, [#allocation19]  }
 0x12c   :  { %s7161_s21 = scalar_lea.hbm %s8675_s30, 16 }
 0x12d   :  { %p7162_p0 = scmp.ne.s32.totalorder %s8675_s30, %s7161_s21  ;;  %p7165_p1 = scmp.lt.u32.totalorder %s7161_s21, %s8675_s30 }
 0x12f   :  { %p7167_p2 = pnand %p7165_p1, %p7162_p0 }
 0x131   :  { %7170 = shalt.err (!%p7167_p2)
}
 0x132   :  { %s7171_s6 = scalar_lea.vmem %s221_s3, 16  ;;  %s7175_s26 = scalar_lea.vmem %s221_s3, 32 }
 0x133   :  { %p7172_p3 = scmp.ne.s32.totalorder %s221_s3, %s7171_s6  ;;  %p7176_p4 = scmp.lt.s32.totalorder %s221_s3, %s221_s3 }
 0x134   :  { %p7177_p5 = scmp.lt.s32.totalorder %s7175_s26, %s7171_s6 }
 0x136   :  { %p7178_p6 = por %p7177_p5, %p7176_p4 }
 0x138   :  { %p7179_p7 = pnand %p7178_p6, %p7172_p3 }
 0x13a   :  { %7182 = shalt.err (!%p7179_p7)
}
 0x13b   :  { %s8676_s9 = sld [smem:[#allocation51_spill]]  ;;  %s7319_s12 = smov [#allocation26]  }
 0x13c   :  { %223 = dma.hbm_to_vmem [thread:$0]  %s8675_s30, 16, %s221_s3, [#allocation22]  }
 0x13d   :  { %s248_s0 = sshll.u32 %s7319_s12, 4  ;;  %s7320_s27 = smov [#allocation29]   ;;  %s249_s0 = int_to_ptr.vmem [resolvable:$true] %s248_s0 }
 0x13e   :  { %s270_s17 = sshll.u32 %s7320_s27, 4  ;;  %s271_s17 = int_to_ptr.vmem [resolvable:$true] %s270_s17 }
 0x141   :  { %s7183_s2 = scalar_lea.hbm %s8676_s9, 16 }
 0x142   :  { %p7184_p8 = scmp.ne.s32.totalorder %s8676_s9, %s7183_s2  ;;  %p7187_p9 = scmp.lt.u32.totalorder %s7183_s2, %s8676_s9 }
 0x144   :  { %p7189_p10 = pnand %p7187_p9, %p7184_p8 }
 0x146   :  { %7192 = shalt.err (!%p7189_p10)
}
 0x147   :  { %s7193_s7 = scalar_lea.vmem %s249_s0, 16  ;;  %s7197_s10 = scalar_lea.vmem %s249_s0, 32 }
 0x148   :  { %p7194_p11 = scmp.ne.s32.totalorder %s249_s0, %s7193_s7  ;;  %p7198_p12 = scmp.lt.s32.totalorder %s249_s0, %s249_s0 }
 0x149   :  { %p7199_p13 = scmp.lt.s32.totalorder %s7197_s10, %s7193_s7 }
 0x14b   :  { %p7200_p0 = por %p7199_p13, %p7198_p12 }
 0x14d   :  { %p7201_p1 = pnand %p7200_p0, %p7194_p11 }
 0x14f   :  { %7204 = shalt.err (!%p7201_p1)
}
 0x150   :  { %s8677_s15 = sld [smem:[#allocation53_spill]] }
 0x151   :  { %251 = dma.hbm_to_vmem [thread:$0]  %s8676_s9, 16, %s249_s0, [#allocation25]  }
 0x156   :  { %s7205_s8 = scalar_lea.hbm %s8677_s15, 16 }
 0x157   :  { %p7206_p2 = scmp.ne.s32.totalorder %s8677_s15, %s7205_s8  ;;  %p7209_p3 = scmp.lt.u32.totalorder %s7205_s8, %s8677_s15 }
 0x159   :  { %p7211_p4 = pnand %p7209_p3, %p7206_p2 }
 0x15b   :  { %7214 = shalt.err (!%p7211_p4)
}
 0x15c   :  { %s7215_s29 = scalar_lea.vmem %s271_s17, 16  ;;  %s7219_s11 = scalar_lea.vmem %s271_s17, 32 }
 0x15d   :  { %p7216_p5 = scmp.ne.s32.totalorder %s271_s17, %s7215_s29  ;;  %p7220_p6 = scmp.lt.s32.totalorder %s271_s17, %s271_s17 }
 0x15e   :  { %p7221_p7 = scmp.lt.s32.totalorder %s7219_s11, %s7215_s29 }
 0x160   :  { %p7222_p8 = por %p7221_p7, %p7220_p6 }
 0x162   :  { %p7223_p9 = pnand %p7222_p8, %p7216_p5 }
 0x164   :  { %7226 = shalt.err (!%p7223_p9)
}
 0x165   :  { %273 = dma.hbm_to_vmem [thread:$0]  %s8677_s15, 16, %s271_s17, [#allocation28]  }
 0x166   :  { %7249 = dma.done.wait [#allocation4], 32  }
 0x167   :  { %7250 = vsyncadd [#allocation4], 4294967264 }
 0x168   :  { %7251 = dma.done.wait [#allocation7], 272  }
 0x169   :  { %7252 = vsyncadd [#allocation7], 4294967024 }
 0x16a   :  { %7253 = dma.done.wait [#allocation10], 48  }
 0x16b   :  { %7254 = vsyncadd [#allocation10], 4294967248 }
 0x16c   :  { %7255 = dma.done.wait [#allocation13], 32  }
 0x16d   :  { %7256 = vsyncadd [#allocation13], 4294967264 }
 0x16e   :  { %7257 = dma.done.wait [#allocation16], 32  }
 0x16f   :  { %7258 = vsyncadd [#allocation16], 4294967264 }
 0x170   :  { %7259 = dma.done.wait [#allocation19], 272  }
 0x171   :  { %7260 = vsyncadd [#allocation19], 4294967024 }
 0x172   :  { %7261 = dma.done.wait [#allocation22], 32  }
 0x173   :  { %7262 = vsyncadd [#allocation22], 4294967264 }
 0x174   :  { %7263 = dma.done.wait [#allocation25], 32  }
 0x175   :  { %7264 = vsyncadd [#allocation25], 4294967264 }
 0x176   :  { %7265 = dma.done.wait [#allocation28], 32  }
 0x177   :  { %7266 = vsyncadd [#allocation28], 4294967264  ;;  %s8678_s24 = sld [smem:[#allocation41_spill]]  ;;  %vm342_vm0 = vcmask 523264   ;;  %s8679_s14 = sld [smem:[#allocation42_spill]]  ;;  %v7321_v33 = vmov 0  }
 0x178   :  { %516 = vmatprep.mubr.bf16.mxu0 %v7321_v33  ;;  %v5678_v51 = vld [vmem:[#allocation8] ss:$0 sm:$0xff]  ;;  %v5679_v56 = vld [vmem:[#allocation9] ss:$0 sm:$0xff]  ;;  %vm7323_vm1 = vmmov 0   ;;  %vm544_vm2 = vcmask 64512  }
 0x179   :  { %vm662_vm3 = vcmask 130048   ;;  %s7324_s19 = smov 56   ;;  %s7325_s18 = smov 120   ;;  %vm1069_vm4 = vcmask 130112   ;;  %vm1340_vm5 = vcmask 195712   ;;  %vm1611_vm6 = vcmask 261312  }
 0x17a   :  { %s7326_s3 = smov 48   ;;  %s7327_s13 = smov 112   ;;  %vm1882_vm7 = vcmask 326912   ;;  %vm2153_vm8 = vcmask 392512   ;;  %vm2424_vm9 = vcmask 458112   ;;  %vm2695_vm10 = vcmask 523712  }
 0x17b   :  { %s7328_s22 = smov 40   ;;  %s7329_s23 = smov 104   ;;  %vm2999_vm11 = vcmask 261120  }
 0x17c   :  { %s7330_s30 = smov 32   ;;  %s7331_s21 = smov 96  }
 0x17d   :  { %v336_v0 = vld [vmem:[%s8678_s24] sm:$0xff]  ;;  %v338_v1 = vld [vmem:[%s8678_s24 + $0x10] sm:$0xff]  ;;  %v337_v2 = vld [vmem:[%s8678_s24 + $0x8] sm:$0xff]  ;;  %s7332_s6 = smov 24   ;;  %s7333_s26 = smov 88  }
 0x17e   :  { %v343_v3 = vsel %vm342_vm0, %v336_v0, 0.0  ;;  %v349_v4 = vsel %vm342_vm0, %v338_v1, 0.0  ;;  %v339_v5 = vld [vmem:[%s8678_s24 + $0x18] sm:$0xff]  ;;  %v346_v6 = vsel %vm342_vm0, %v337_v2, 0.0  ;;  %v6557_v28 = vld [vmem:[%s8679_s14 + $0x4] ss:$8 sps:$4 sm:$0xff]  }
 0x17f   :  { %344 = vadd.xlane.f32.xlu0 %v343_v3  ;;  %350 = vadd.xlane.f32.xlu1 %v349_v4  ;;  %v352_v7 = vsel %vm342_vm0, %v339_v5, 0.0  ;;  %v6559_v29 = vld [vmem:[%s8679_s14] ss:$8 sps:$4 sm:$0xff]   ;;  %v6560_v30 = vld [vmem:[%s8679_s14 + $0x14] ss:$8 sps:$4 sm:$0xff]   ;;  %s7334_s9 = smov 80  }
 0x180   :  { %484 = vmatprep.subr.bf16.mxu0 %v6557_v28  ;;  %v6562_v31 = vld [vmem:[%s8679_s14 + $0x10] ss:$8 sps:$4 sm:$0xff]   ;;  %v6563_v32 = vld [vmem:[%s8679_s14 + $0x24] ss:$8 sps:$4 sm:$0xff]   ;;  %v6565_v34 = vld [vmem:[%s8679_s14 + $0x20] ss:$8 sps:$4 sm:$0xff]  }
 0x181   :  { %485 = vmatpush1.bf16.msra.mxu0 %v6559_v29  ;;  %v6566_v35 = vld [vmem:[%s8679_s14 + $0x34] ss:$8 sps:$4 sm:$0xff]   ;;  %v6568_v36 = vld [vmem:[%s8679_s14 + $0x30] ss:$8 sps:$4 sm:$0xff]   ;;  %s7335_s12 = smov 8   ;;  %s7336_s0 = smov 72  }
 0x182   :  { %486 = vmatprep.subr.bf16.mxu0 %v6560_v30  ;;  %s8680_s27 = sld [smem:[#allocation43_spill]]  ;;  %s8681_s17 = sld [smem:[#allocation44_spill]] }
 0x183   :  { %347 = vadd.xlane.f32.xlu0 %v346_v6  ;;  %353 = vadd.xlane.f32.xlu1 %v352_v7  ;;  %s8683_s2 = sld [smem:[#allocation48_spill]]  ;;  %s8684_s7 = sld [smem:[#allocation47_spill]] }
 0x184   :  { %s8685_s10 = sld [smem:[#allocation52_spill]]  ;;  %s8686_s15 = sld [smem:[#allocation50_spill]] }
 0x185   :  { %487 = vmatpush1.bf16.msra.mxu0 %v6562_v31  ;;  %s8687_s8 = sld [smem:[#allocation54_spill]]  ;;  %s8688_s29 = sld [smem:[#allocation49_spill]] }
 0x186   :  { %488 = vmatprep.subr.bf16.mxu0 %v6563_v32 }
 0x189   :  { %489 = vmatpush1.bf16.msra.mxu0 %v6565_v34 }
 0x18a   :  { %490 = vmatprep.subr.bf16.mxu0 %v6566_v35 }
 0x18d   :  { %491 = vmatpush1.bf16.msra.mxu0 %v6568_v36 }
 0x20c   :  { %v345_v8 = vpop.xlane.xlu0 %344  ;;  %v351_v9 = vpop.xlane.xlu1 %350 }
 0x20d   :  { %v356_v10 = vmul.f32 0.015625, %v345_v8  ;;  %v358_v11 = vmul.f32 0.015625, %v351_v9  ;;  %v7322_v8 = vmov 0.0   ;;  %v426_v9 = vld [vmem:[#allocation11] sm:$0x3] }
 0x20e   :  { %5996 = vmatprep.subr.bf16.mxu0 %v7322_v8  ;;  %6002 = vmatprep.subr.bf16.mxu1 %v7322_v8 }
 0x20f   :  { %v360_v12 = vsub.f32 %v336_v0, %v356_v10  ;;  %v7587_v13 = vsub.f32 %v338_v1, %v358_v11  ;;  %6004 = vmatprep.mubr.msk.bf16.mxu1 %vm7323_vm1, %v7322_v8 }
 0x210   :  { %v348_v14 = vpop.xlane.xlu0 %347  ;;  %v354_v15 = vpop.xlane.xlu1 %353 }
 0x211   :  { %v357_v16 = vmul.f32 0.015625, %v348_v14  ;;  %v359_v17 = vmul.f32 0.015625, %v354_v15  ;;  %v364_v18 = vmul.f32 %v360_v12, %v360_v12  ;;  %v366_v19 = vmul.f32 %v7587_v13, %v7587_v13 }
 0x213   :  { %v361_v20 = vsub.f32 %v337_v2, %v357_v16  ;;  %v363_v21 = vsub.f32 %v339_v5, %v359_v17  ;;  %v368_v22 = vsel %vm342_vm0, %v364_v18, 0.0  ;;  %v374_v23 = vsel %vm342_vm0, %v366_v19, 0.0 }
 0x214   :  { %369 = vadd.xlane.f32.xlu0 %v368_v22  ;;  %v428_v5 = vlaneseq }
 0x215   :  { %v365_v24 = vmul.f32 %v361_v20, %v361_v20  ;;  %v367_v25 = vmul.f32 %v363_v21, %v363_v21 }
 0x216   :  { %v429_v6 = vshrl.u32 %v428_v5, 7 }
 0x217   :  { %v371_v26 = vsel %vm342_vm0, %v365_v24, 0.0  ;;  %v377_v27 = vsel %vm342_vm0, %v367_v25, 0.0 }
 0x218   :  { %375 = vadd.xlane.f32.xlu0 %v374_v23  ;;  %372 = vadd.xlane.f32.xlu1 %v371_v26  ;;  %v430_v7 = vsub.s32 0, %v429_v6  ;;  %v434_v10 = vsub.s32 1, %v429_v6 }
 0x21a   :  { %v431_v11 = vrot.slane %v426_v9, %v430_v7 }
 0x21c   :  { %378 = vadd.xlane.f32.xlu1 %v377_v27 }
 0x2a1   :  { %v370_v37 = vpop.xlane.xlu0 %369 }
 0x2a2   :  { %v380_v38 = vmul.f32 0.015625, %v370_v37 }
 0x2a4   :  { %v384_v39 = vadd.f32 1e-12, %v380_v38  ;;  %v7652_v38 = vld [vmem:[#allocation3] ss:$0 sm:$0xff] }
 0x2a5   :  { %v373_v40 = vpop.xlane.xlu1 %372  ;;  %v376_v41 = vpop.xlane.xlu0 %375 }
 0x2a6   :  { %6609 = vrsqrt.f32 %v384_v39  ;;  %v381_v42 = vmul.f32 0.015625, %v373_v40  ;;  %v382_v43 = vmul.f32 0.015625, %v376_v41 }
 0x2a8   :  { %v385_v44 = vadd.f32 1e-12, %v381_v42  ;;  %v386_v45 = vadd.f32 1e-12, %v382_v43 }
 0x2a9   :  { %v379_v46 = vpop.xlane.xlu1 %378 }
 0x2aa   :  { %6611 = vrsqrt.f32 %v385_v44  ;;  %v383_v47 = vmul.f32 0.015625, %v379_v46 }
 0x2ab   :  { %6613 = vrsqrt.f32 %v386_v45 }
 0x2ac   :  { %v387_v48 = vadd.f32 1e-12, %v383_v47 }
 0x2ae   :  { %6615 = vrsqrt.f32 %v387_v48 }
 0x2b0   :  { %v6610_v49 = vpop.eup %6609 }
 0x2b1   :  { %v392_v50 = vmul.f32 %v6610_v49, %v360_v12  ;;  %v7658_v49 = vld [vmem:[#allocation3 + $0x1] ss:$0 sm:$0xff] }
 0x2b3   :  { %v402_v54 = vmul.f32 %v5678_v51, %v392_v50 }
 0x2b4   :  { %v6612_v52 = vpop.eup %6611 }
 0x2b5   :  { %v393_v53 = vmul.f32 %v6612_v52, %v361_v20  ;;  %v6614_v55 = vpop.eup %6613  ;;  %v7603_v59 = vadd.f32 %v5679_v56, %v402_v54 }
 0x2b6   :  { %v394_v61 = vmul.f32 %v6614_v55, %v7587_v13  ;;  %v435_v13 = vrot.slane %v426_v9, %v434_v10 }
 0x2b7   :  { %v403_v57 = vmul.f32 %v5678_v51, %v393_v53 }
 0x2b8   :  { %v6616_v58 = vpop.eup %6615  ;;  %v404_v1 = vmul.f32 %v5678_v51, %v394_v61 }
 0x2b9   :  { %v7605_v60 = vadd.f32 %v5679_v56, %v403_v57  ;;  %v395_v62 = vmul.f32 %v6616_v58, %v363_v21 }
 0x2ba   :  { %v7613_v3 = vadd.f32 %v5679_v56, %v404_v1 }
 0x2bb   :  { %v416_v63 = vpack.c.bf16 %v7605_v60, %v7603_v59  ;;  %v405_v0 = vmul.f32 %v5678_v51, %v395_v62 }
 0x2bd   :  { %5688 = vmatmul.mubr.msk.bf16.vlgmr.msra.gmra.mrb[0].mxu0 %vm342_vm0, %v416_v63  ;;  %v7611_v2 = vadd.f32 %v5679_v56, %v405_v0 }
 0x2be   :  { %526 = vmatprep.mubr.bf16.mxu0 %v7321_v33 }
 0x2bf   :  { %v417_v4 = vpack.c.bf16 %v7611_v2, %v7613_v3 }
 0x2c5   :  { %5689 = vmatmul.mubr.msk.bf16.gmra.mrb[4].mxu0 %vm342_vm0, %v417_v4 }
 0x2c6   :  { %5998 = vmatprep.mubr.msk.bf16.mxu0 %vm7323_vm1, %v7322_v8 }
 0x390   :  { %v518_v12 = vpop.f32.mrb[0].mxu0 }
 0x391   :  { %v520_v14 = vpop.f32.mrb[1].mxu0  ;;  %v519_v16 = vadd.f32 %v518_v12, %v431_v11 }
 0x392   :  { %v522_v15 = vpop.f32.mrb[2].mxu0  ;;  %v521_v19 = vadd.f32 %v520_v14, %v435_v13 }
 0x393   :  { %v523_v17 = vadd.f32 %v522_v15, %v431_v11  ;;  %v524_v18 = vpop.f32.mrb[3].mxu0 }
 0x394   :  { %v525_v20 = vadd.f32 %v524_v18, %v435_v13 }
 0x395   :  { %v7624_v21 = vpack.c.bf16 %v523_v17, %v519_v16 }
 0x396   :  { %v7626_v22 = vpack.c.bf16 %v525_v20, %v521_v19 }
 0x397   :  { %542 = vrot.lane.b32.xlu0 %v7624_v21, %s7301_s28 }
 0x398   :  { %v528_v23 = vpop.f32.mrb[4].mxu0 }
 0x399   :  { %v530_v24 = vpop.f32.mrb[5].mxu0  ;;  %v529_v26 = vadd.f32 %v528_v23, %v431_v11 }
 0x39a   :  { %v532_v25 = vpop.f32.mrb[6].mxu0  ;;  %v531_v29 = vadd.f32 %v530_v24, %v435_v13 }
 0x39b   :  { %v533_v27 = vadd.f32 %v532_v25, %v431_v11  ;;  %v534_v28 = vpop.f32.mrb[7].mxu0 }
 0x39c   :  { %v535_v30 = vadd.f32 %v534_v28, %v435_v13 }
 0x39d   :  { %v7630_v31 = vpack.c.bf16 %v533_v27, %v529_v26 }
 0x39e   :  { %v7632_v32 = vpack.c.bf16 %v535_v30, %v531_v29 }
 0x39f   :  { %593 = vrot.lane.b32.xlu1 %v7630_v31, %s7301_s28 }
 0x409   :  { %v543_v33 = vpop.permute.xlu0 %542 }
 0x40a   :  { %v549_v34 = vsel %vm544_vm2, %v543_v33, 0 }
 0x40b   :  { %5997 = vmatpush3.bf16.xpose.msra.mxu0 %v549_v34 }
 0x40c   :  { %6014 = vmatprep.subr.bf16.mxu0 %v7322_v8 }
 0x411   :  { %v594_v35 = vpop.permute.xlu1 %593 }
 0x412   :  { %5999 = vmatmul.mubr.msk.bf16.vlgmr.msra.gmra.mrb[8].mxu0 %vm544_vm2, %v7624_v21  ;;  %v599_v36 = vsel %vm544_vm2, %v594_v35, 0 }
 0x413   :  { %6003 = vmatpush3.bf16.xpose.msra.mxu1 %v599_v36  ;;  %6015 = vmatpush3.bf16.msra.mxu0 %v7632_v32 }
 0x414   :  { %6008 = vmatprep.subr.bf16.mxu1 %v7322_v8  ;;  %6016 = vmatprep.mubr.msk.bf16.mxu0 %vm7323_vm1, %v7322_v8 }
 0x415   :  { %6026 = vmatprep.subr.bf16.mxu0 %v7322_v8 }
 0x41a   :  { %6005 = vmatmul.mubr.msk.bf16.vlgmr.msra.gmra.mrb[0].mxu1 %vm544_vm2, %v7630_v31 }
 0x41b   :  { %6009 = vmatpush3.bf16.msra.mxu1 %v7626_v22  ;;  %6010 = vmatprep.mubr.msk.bf16.mxu1 %vm7323_vm1, %v7322_v8 }
 0x41c   :  { %6020 = vmatprep.subr.bf16.mxu1 %v7322_v8 }
 0x4e5   :  { %v585_v37 = vpop.f32.mrb[8].mxu0 }
 0x4e6   :  { %v642_v39 = vmul.f32 0.35355338, %v585_v37  ;;  %v6000_v40 = vpop.f32.mrb[9].mxu0 }
 0x4e7   :  { %v588_v41 = vpop.f32.mrb[10].mxu0 }
 0x4e8   :  { %v643_v42 = vmul.f32 0.35355338, %v588_v41  ;;  %v6001_v43 = vpop.f32.mrb[11].mxu0  ;;  %v658_v44 = vadd.f32 %v7652_v38, %v642_v39 }
 0x4ea   :  { %v663_v45 = vsel %vm662_vm3, %v658_v44, -inf  ;;  %v659_v46 = vadd.f32 %v7652_v38, %v643_v42 }
 0x4eb   :  { %664 = vmax.xlane.f32.xlu1 %v663_v45 }
 0x4ec   :  { %v666_v47 = vsel %vm662_vm3, %v659_v46, -inf }
 0x4ed   :  { %v635_v48 = vpop.f32.mrb[0].mxu1  ;;  %667 = vmax.xlane.f32.xlu0 %v666_v47 }
 0x4ee   :  { %v644_v50 = vmul.f32 0.35355338, %v635_v48  ;;  %v6006_v51 = vpop.f32.mrb[1].mxu1 }
 0x4ef   :  { %v638_v52 = vpop.f32.mrb[2].mxu1 }
 0x4f0   :  { %v645_v53 = vmul.f32 0.35355338, %v638_v52  ;;  %v6007_v54 = vpop.f32.mrb[3].mxu1  ;;  %v660_v55 = vadd.f32 %v7658_v49, %v644_v50 }
 0x4f2   :  { %v669_v56 = vsel %vm662_vm3, %v660_v55, -inf  ;;  %v661_v57 = vadd.f32 %v7658_v49, %v645_v53 }
 0x4f3   :  { %670 = vmax.xlane.f32.xlu0 %v669_v56 }
 0x4f4   :  { %v672_v58 = vsel %vm662_vm3, %v661_v57, -inf }
 0x4f5   :  { %673 = vmax.xlane.f32.xlu1 %v672_v58 }
 0x578   :  { %v665_v61 = vpop.xlane.xlu1 %664 }
 0x579   :  { %v675_v62 = vsub.f32 %v658_v44, %v665_v61 }
 0x57a   :  { %v668_v63 = vpop.xlane.xlu0 %667 }
 0x57b   :  { %v679_v0 = vmul.f32 1.442695, %v675_v62  ;;  %v676_v1 = vsub.f32 %v659_v46, %v668_v63 }
 0x57d   :  { %6617 = vpow2.f32 %v679_v0  ;;  %v681_v4 = vmul.f32 1.442695, %v676_v1 }
 0x57f   :  { %6619 = vpow2.f32 %v681_v4 }
 0x580   :  { %v671_v5 = vpop.xlane.xlu0 %670 }
 0x581   :  { %v677_v6 = vsub.f32 %v660_v55, %v671_v5 }
 0x582   :  { %v674_v15 = vpop.xlane.xlu1 %673 }
 0x583   :  { %v683_v7 = vmul.f32 1.442695, %v677_v6  ;;  %v678_v16 = vsub.f32 %v661_v57, %v674_v15 }
 0x585   :  { %6621 = vpow2.f32 %v683_v7  ;;  %v685_v17 = vmul.f32 1.442695, %v678_v16 }
 0x587   :  { %v6618_v9 = vpop.eup %6617  ;;  %6623 = vpow2.f32 %v685_v17 }
 0x588   :  { %v687_v10 = vsel %vm662_vm3, %v6618_v9, 0.0 }
 0x589   :  { %v6620_v11 = vpop.eup %6619  ;;  %688 = vadd.xlane.f32.xlu0 %v687_v10 }
 0x58a   :  { %v690_v12 = vsel %vm662_vm3, %v6620_v11, 0.0 }
 0x58b   :  { %691 = vadd.xlane.f32.xlu1 %v690_v12 }
 0x58f   :  { %v6622_v13 = vpop.eup %6621 }
 0x590   :  { %v693_v14 = vsel %vm662_vm3, %v6622_v13, 0.0 }
 0x591   :  { %694 = vadd.xlane.f32.xlu0 %v693_v14  ;;  %v6624_v18 = vpop.eup %6623 }
 0x592   :  { %v696_v19 = vsel %vm662_vm3, %v6624_v18, 0.0 }
 0x59c   :  { %854 = vrot.lane.b32.xlu1 %v7630_v31, %s7324_s19 }
 0x5a7   :  { %803 = vrot.lane.b32.xlu0 %v7624_v21, %s7324_s19 }
 0x5c0   :  { %697 = vadd.xlane.f32.xlu1 %v696_v19 }
 0x5d1   :  { %801 = vrot.lane.b32.xlu1 %v7624_v21, %s7325_s18 }
 0x5d5   :  { %852 = vrot.lane.b32.xlu1 %v7630_v31, %s7325_s18 }
 0x616   :  { %v689_v20 = vpop.xlane.xlu0 %688 }
 0x617   :  { %6625 = vrcp.f32 %v689_v20 }
 0x618   :  { %v692_v23 = vpop.xlane.xlu1 %691 }
 0x619   :  { %6627 = vrcp.f32 %v692_v23 }
 0x61c   :  { %v855_v34 = vpop.permute.xlu1 %854 }
 0x61d   :  { %v860_v43 = vsel %vm544_vm2, %v855_v34, 0 }
 0x61e   :  { %v695_v24 = vpop.xlane.xlu0 %694 }
 0x61f   :  { %6629 = vrcp.f32 %v695_v24 }
 0x621   :  { %v6626_v25 = vpop.eup %6625 }
 0x622   :  { %v703_v27 = vmul.f32 %v6626_v25, %v6618_v9  ;;  %v804_v29 = vpop.permute.xlu0 %803 }
 0x623   :  { %v6628_v26 = vpop.eup %6627  ;;  %v809_v33 = vsel %vm544_vm2, %v804_v29, 0 }
 0x624   :  { %v704_v28 = vmul.f32 %v6628_v26, %v6620_v11 }
 0x626   :  { %v707_v30 = vpack.c.bf16 %v704_v28, %v703_v27 }
 0x628   :  { %6011 = vmatmul.mubr.msk.bf16.vlgmr.msra.gmra.mrb[4].mxu1 %vm662_vm3, %v707_v30 }
 0x629   :  { %6021 = vmatpush3.bf16.xpose.msra.mxu1 %v809_v33  ;;  %6022 = vmatprep.mubr.msk.bf16.mxu1 %vm7323_vm1, %v7322_v8  ;;  %v6630_v37 = vpop.eup %6629 }
 0x62a   :  { %6032 = vmatprep.subr.bf16.mxu1 %v7322_v8  ;;  %v705_v40 = vmul.f32 %v6630_v37, %v6622_v13 }
 0x64d   :  { %v698_v35 = vpop.xlane.xlu1 %697 }
 0x64e   :  { %6631 = vrcp.f32 %v698_v35 }
 0x651   :  { %v802_v36 = vpop.permute.xlu1 %801 }
 0x652   :  { %6023 = vmatmul.mubr.msk.bf16.vlgmr.msra.gmra.mrb[8].mxu1 %vm544_vm2, %v802_v36 }
 0x653   :  { %6034 = vmatprep.mubr.msk.bf16.mxu1 %vm7323_vm1, %v7322_v8 }
 0x655   :  { %v853_v44 = vpop.permute.xlu1 %852 }
 0x658   :  { %v6632_v39 = vpop.eup %6631 }
 0x659   :  { %v706_v41 = vmul.f32 %v6632_v39, %v6624_v18 }
 0x65b   :  { %v708_v42 = vpack.c.bf16 %v706_v41, %v705_v40 }
 0x65d   :  { %6017 = vmatmul.mubr.msk.bf16.vlgmr.msra.gmra.mrb[12].mxu0 %vm662_vm3, %v708_v42 }
 0x65e   :  { %6027 = vmatpush3.bf16.xpose.msra.mxu0 %v860_v43  ;;  %6028 = vmatprep.mubr.msk.bf16.mxu0 %vm7323_vm1, %v7322_v8 }
 0x65f   :  { %6038 = vmatprep.subr.bf16.mxu0 %v7322_v8 }
 0x665   :  { %6029 = vmatmul.mubr.msk.bf16.vlgmr.msra.gmra.mrb[16].mxu0 %vm544_vm2, %v853_v44 }
 0x666   :  { %6040 = vmatprep.mubr.msk.bf16.mxu0 %vm7323_vm1, %v7322_v8 }
 0x6fb   :  { %v746_v45 = vpop.f32.mrb[4].mxu1 }
 0x6fc   :  { %797 = vst.msk [vmem:[#allocation2] sm:$0xff] %vm544_vm2, %v746_v45  ;;  %v6012_v46 = vpop.f32.mrb[5].mxu1 }
 0x6fd   :  { %v749_v47 = vpop.f32.mrb[6].mxu1 }
 0x6fe   :  { %798 = vst.msk [vmem:[#allocation2 + $0x8] sm:$0xff] %vm544_vm2, %v749_v47  ;;  %v6013_v48 = vpop.f32.mrb[7].mxu1 }
 0x725   :  { %v845_v50 = vpop.f32.mrb[8].mxu1 }
 0x726   :  { %v903_v51 = vmul.f32 0.35355338, %v845_v50  ;;  %v6024_v52 = vpop.f32.mrb[9].mxu1 }
 0x727   :  { %v848_v53 = vpop.f32.mrb[10].mxu1 }
 0x728   :  { %v904_v54 = vmul.f32 0.35355338, %v848_v53  ;;  %v6025_v55 = vpop.f32.mrb[11].mxu1  ;;  %v907_v56 = vadd.f32 %v7652_v38, %v903_v51 }
 0x72a   :  { %v911_v57 = vsel %vm662_vm3, %v907_v56, -inf  ;;  %v908_v58 = vadd.f32 %v7652_v38, %v904_v54 }
 0x72b   :  { %912 = vmax.xlane.f32.xlu0 %v911_v57 }
 0x72c   :  { %v914_v61 = vsel %vm662_vm3, %v908_v58, -inf }
 0x72d   :  { %915 = vmax.xlane.f32.xlu1 %v914_v61 }
 0x730   :  { %v790_v62 = vpop.f32.mrb[12].mxu0 }
 0x731   :  { %799 = vst.msk [vmem:[#allocation2 + $0x10] sm:$0xff] %vm544_vm2, %v790_v62  ;;  %v6018_v63 = vpop.f32.mrb[13].mxu0 }
 0x732   :  { %v793_v0 = vpop.f32.mrb[14].mxu0 }
 0x733   :  { %800 = vst.msk [vmem:[#allocation2 + $0x18] sm:$0xff] %vm544_vm2, %v793_v0  ;;  %v6019_v1 = vpop.f32.mrb[15].mxu0 }
 0x738   :  { %v896_v4 = vpop.f32.mrb[16].mxu0 }
 0x739   :  { %v905_v5 = vmul.f32 0.35355338, %v896_v4  ;;  %v6030_v6 = vpop.f32.mrb[17].mxu0 }
 0x73a   :  { %v899_v7 = vpop.f32.mrb[18].mxu0 }
 0x73b   :  { %v906_v9 = vmul.f32 0.35355338, %v899_v7  ;;  %v6031_v10 = vpop.f32.mrb[19].mxu0  ;;  %v909_v11 = vadd.f32 %v7658_v49, %v905_v5 }
 0x73d   :  { %v917_v12 = vsel %vm662_vm3, %v909_v11, -inf  ;;  %v910_v13 = vadd.f32 %v7658_v49, %v906_v9 }
 0x73e   :  { %918 = vmax.xlane.f32.xlu0 %v917_v12 }
 0x73f   :  { %v920_v14 = vsel %vm662_vm3, %v910_v13, -inf }
 0x742   :  { %921 = vmax.xlane.f32.xlu0 %v920_v14 }
 0x7b8   :  { %v913_v15 = vpop.xlane.xlu0 %912 }
 0x7b9   :  { %v923_v16 = vsub.f32 %v907_v56, %v913_v15 }
 0x7ba   :  { %v916_v17 = vpop.xlane.xlu1 %915 }
 0x7bb   :  { %v927_v18 = vmul.f32 1.442695, %v923_v16  ;;  %v924_v19 = vsub.f32 %v908_v58, %v916_v17 }
 0x7bd   :  { %6633 = vpow2.f32 %v927_v18  ;;  %v929_v20 = vmul.f32 1.442695, %v924_v19 }
 0x7bf   :  { %6635 = vpow2.f32 %v929_v20 }
 0x7c7   :  { %v6634_v23 = vpop.eup %6633 }
 0x7c8   :  { %v935_v24 = vsel %vm662_vm3, %v6634_v23, 0.0 }
 0x7c9   :  { %v6636_v25 = vpop.eup %6635  ;;  %936 = vadd.xlane.f32.xlu0 %v935_v24 }
 0x7ca   :  { %v938_v26 = vsel %vm662_vm3, %v6636_v25, 0.0 }
 0x7cb   :  { %v919_v27 = vpop.xlane.xlu0 %918  ;;  %939 = vadd.xlane.f32.xlu1 %v938_v26 }
 0x7cc   :  { %v925_v28 = vsub.f32 %v909_v11, %v919_v27 }
 0x7ce   :  { %v931_v29 = vmul.f32 1.442695, %v925_v28 }
 0x7cf   :  { %v922_v34 = vpop.xlane.xlu0 %921 }
 0x7d0   :  { %6637 = vpow2.f32 %v931_v29  ;;  %v926_v35 = vsub.f32 %v910_v13, %v922_v34 }
 0x7d2   :  { %v933_v36 = vmul.f32 1.442695, %v926_v35 }
 0x7d4   :  { %6639 = vpow2.f32 %v933_v36 }
 0x7da   :  { %v6638_v30 = vpop.eup %6637 }
 0x7db   :  { %v941_v33 = vsel %vm662_vm3, %v6638_v30, 0.0 }
 0x7dc   :  { %942 = vadd.xlane.f32.xlu0 %v941_v33  ;;  %1006 = vrot.lane.b32.xlu1 %v7632_v32, %s7325_s18 }
 0x7de   :  { %v6640_v37 = vpop.eup %6639 }
 0x7df   :  { %v944_v39 = vsel %vm662_vm3, %v6640_v37, 0.0 }
 0x7e0   :  { %1076 = vrot.lane.b32.xlu1 %v7624_v21, %s7326_s3 }
 0x7f2   :  { %958 = vrot.lane.b32.xlu0 %v7626_v22, %s7325_s18 }
 0x7f6   :  { %1074 = vrot.lane.b32.xlu0 %v7624_v21, %s7327_s13 }
 0x804   :  { %945 = vadd.xlane.f32.xlu1 %v944_v39 }
 0x815   :  { %1127 = vrot.lane.b32.xlu1 %v7630_v31, %s7326_s3 }
 0x819   :  { %1125 = vrot.lane.b32.xlu1 %v7630_v31, %s7327_s13 }
 0x856   :  { %v937_v42 = vpop.xlane.xlu0 %936 }
 0x858   :  { %v940_v40 = vpop.xlane.xlu1 %939 }
 0x859   :  { %6641 = vrcp.f32 %v940_v40 }
 0x85a   :  { %6643 = vrcp.f32 %v937_v42 }
 0x85c   :  { %v1007_v41 = vpop.permute.xlu1 %1006 }
 0x85d   :  { %6039 = vmatpush3.bf16.msra.mxu0 %v1007_v41 }
 0x85e   :  { %6050 = vmatprep.subr.bf16.mxu0 %v7322_v8 }
 0x860   :  { %v1077_v51 = vpop.permute.xlu1 %1076 }
 0x861   :  { %v1082_v52 = vsel %vm544_vm2, %v1077_v51, 0 }
 0x863   :  { %v6642_v43 = vpop.eup %6641 }
 0x864   :  { %v6644_v45 = vpop.eup %6643  ;;  %v952_v46 = vmul.f32 %v6642_v43, %v6636_v25 }
 0x865   :  { %v951_v47 = vmul.f32 %v6644_v45, %v6634_v23 }
 0x867   :  { %v955_v50 = vpack.c.bf16 %v952_v46, %v951_v47 }
 0x869   :  { %v943_v44 = vpop.xlane.xlu0 %942 }
 0x86a   :  { %6645 = vrcp.f32 %v943_v44 }
 0x86d   :  { %v959_v48 = vpop.permute.xlu0 %958 }
 0x86e   :  { %6033 = vmatpush3.bf16.msra.mxu1 %v959_v48 }
 0x86f   :  { %6044 = vmatprep.subr.bf16.mxu1 %v7322_v8 }
 0x871   :  { %6035 = vmatmul.mubr.msk.bf16.vlgmr.msra.gmra.mrb[12].mxu1 %vm662_vm3, %v955_v50  ;;  %v1075_v53 = vpop.permute.xlu0 %1074 }
 0x872   :  { %6046 = vmatprep.mubr.msk.bf16.mxu1 %vm7323_vm1, %v7322_v8 }
 0x874   :  { %v6646_v55 = vpop.eup %6645 }
 0x875   :  { %v953_v57 = vmul.f32 %v6646_v55, %v6638_v30 }
 0x877   :  { %6045 = vmatpush3.bf16.xpose.msra.mxu1 %v1082_v52 }
 0x878   :  { %6056 = vmatprep.subr.bf16.mxu1 %v7322_v8 }
 0x87e   :  { %6047 = vmatmul.mubr.msk.bf16.vlgmr.msra.gmra.mrb[16].mxu1 %vm544_vm2, %v1075_v53 }
 0x87f   :  { %6058 = vmatprep.mubr.msk.bf16.mxu1 %vm7323_vm1, %v7322_v8 }
 0x891   :  { %v946_v54 = vpop.xlane.xlu1 %945 }
 0x892   :  { %6647 = vrcp.f32 %v946_v54 }
 0x895   :  { %v1128_v61 = vpop.permute.xlu1 %1127 }
 0x896   :  { %v1133_v63 = vsel %vm544_vm2, %v1128_v61, 0 }
 0x899   :  { %v1126_v0 = vpop.permute.xlu1 %1125 }
 0x89c   :  { %v6648_v56 = vpop.eup %6647 }
 0x89d   :  { %v954_v58 = vmul.f32 %v6648_v56, %v6640_v37 }
 0x89f   :  { %v956_v62 = vpack.c.bf16 %v954_v58, %v953_v57 }
 0x8a1   :  { %6041 = vmatmul.mubr.msk.bf16.vlgmr.msra.gmra.mrb[20].mxu0 %vm662_vm3, %v956_v62 }
 0x8a2   :  { %6051 = vmatpush3.bf16.xpose.msra.mxu0 %v1133_v63  ;;  %6052 = vmatprep.mubr.msk.bf16.mxu0 %vm7323_vm1, %v7322_v8 }
 0x8a3   :  { %6062 = vmatprep.subr.bf16.mxu0 %v7322_v8 }
 0x8a9   :  { %6053 = vmatmul.mubr.msk.bf16.vlgmr.msra.gmra.mrb[24].mxu0 %vm544_vm2, %v1126_v0 }
 0x8aa   :  { %6064 = vmatprep.mubr.msk.bf16.mxu0 %vm7323_vm1, %v7322_v8 }
 0x944   :  { %v7738_v1 = vpop.f32.mrb[12].mxu1 }
 0x945   :  { %v6036_v4 = vpop.f32.mrb[13].mxu1 }
 0x946   :  { %v7740_v5 = vpop.f32.mrb[14].mxu1 }
 0x947   :  { %v6037_v6 = vpop.f32.mrb[15].mxu1 }
 0x951   :  { %v1118_v7 = vpop.f32.mrb[16].mxu1 }
 0x952   :  { %v1176_v9 = vmul.f32 0.35355338, %v1118_v7  ;;  %v6048_v10 = vpop.f32.mrb[17].mxu1 }
 0x953   :  { %v1121_v11 = vpop.f32.mrb[18].mxu1 }
 0x954   :  { %v1177_v12 = vmul.f32 0.35355338, %v1121_v11  ;;  %v6049_v13 = vpop.f32.mrb[19].mxu1  ;;  %v1180_v14 = vadd.f32 %v7652_v38, %v1176_v9 }
 0x956   :  { %v1184_v15 = vsel %vm662_vm3, %v1180_v14, -inf  ;;  %v1181_v16 = vadd.f32 %v7652_v38, %v1177_v12 }
 0x957   :  { %1185 = vmax.xlane.f32.xlu0 %v1184_v15 }
 0x958   :  { %v1187_v17 = vsel %vm662_vm3, %v1181_v16, -inf }
 0x959   :  { %1188 = vmax.xlane.f32.xlu1 %v1187_v17 }
 0x974   :  { %v7746_v18 = vpop.f32.mrb[20].mxu0 }
 0x975   :  { %v6042_v19 = vpop.f32.mrb[21].mxu0 }
 0x976   :  { %v7748_v20 = vpop.f32.mrb[22].mxu0 }
 0x977   :  { %v6043_v23 = vpop.f32.mrb[23].mxu0 }
 0x97c   :  { %v1169_v24 = vpop.f32.mrb[24].mxu0 }
 0x97d   :  { %v1178_v25 = vmul.f32 0.35355338, %v1169_v24  ;;  %v6054_v26 = vpop.f32.mrb[25].mxu0 }
 0x97e   :  { %v1172_v27 = vpop.f32.mrb[26].mxu0 }
 0x97f   :  { %v1179_v28 = vmul.f32 0.35355338, %v1172_v27  ;;  %v6055_v29 = vpop.f32.mrb[27].mxu0  ;;  %v1182_v30 = vadd.f32 %v7658_v49, %v1178_v25 }
 0x981   :  { %v1190_v33 = vsel %vm662_vm3, %v1182_v30, -inf  ;;  %v1183_v34 = vadd.f32 %v7658_v49, %v1179_v28 }
 0x982   :  { %1191 = vmax.xlane.f32.xlu0 %v1190_v33 }
 0x983   :  { %v1193_v35 = vsel %vm662_vm3, %v1183_v34, -inf }
 0x986   :  { %1194 = vmax.xlane.f32.xlu0 %v1193_v35 }
 0x9e4   :  { %v1186_v36 = vpop.xlane.xlu0 %1185 }
 0x9e5   :  { %v1196_v37 = vsub.f32 %v1180_v14, %v1186_v36 }
 0x9e6   :  { %v1189_v39 = vpop.xlane.xlu1 %1188 }
 0x9e7   :  { %v1200_v40 = vmul.f32 1.442695, %v1196_v37  ;;  %v1197_v41 = vsub.f32 %v1181_v16, %v1189_v39 }
 0x9e9   :  { %6649 = vpow2.f32 %v1200_v40  ;;  %v1202_v42 = vmul.f32 1.442695, %v1197_v41 }
 0x9eb   :  { %6651 = vpow2.f32 %v1202_v42 }
 0x9f3   :  { %v6650_v43 = vpop.eup %6649 }
 0x9f4   :  { %v1208_v44 = vsel %vm662_vm3, %v6650_v43, 0.0 }
 0x9f5   :  { %v6652_v45 = vpop.eup %6651  ;;  %1209 = vadd.xlane.f32.xlu0 %v1208_v44 }
 0x9f6   :  { %v1211_v46 = vsel %vm662_vm3, %v6652_v45, 0.0 }
 0x9f7   :  { %1212 = vadd.xlane.f32.xlu1 %v1211_v46 }
 0xa08   :  { %1277 = vrot.lane.b32.xlu1 %v7632_v32, %s7327_s13 }
 0xa0c   :  { %1347 = vrot.lane.b32.xlu1 %v7624_v21, %s7328_s22 }
 0xa0f   :  { %v1192_v47 = vpop.xlane.xlu0 %1191 }
 0xa10   :  { %v1198_v48 = vsub.f32 %v1182_v30, %v1192_v47 }
 0xa12   :  { %v1204_v50 = vmul.f32 1.442695, %v1198_v48 }
 0xa13   :  { %v1195_v51 = vpop.xlane.xlu0 %1194 }
 0xa14   :  { %6653 = vpow2.f32 %v1204_v50  ;;  %v1199_v52 = vsub.f32 %v1183_v34, %v1195_v51 }
 0xa16   :  { %v1206_v54 = vmul.f32 1.442695, %v1199_v52 }
 0xa18   :  { %6655 = vpow2.f32 %v1206_v54 }
 0xa1e   :  { %v6654_v53 = vpop.eup %6653 }
 0xa1f   :  { %v1214_v55 = vsel %vm662_vm3, %v6654_v53, 0.0 }
 0xa20   :  { %1215 = vadd.xlane.f32.xlu0 %v1214_v55 }
 0xa22   :  { %v6656_v56 = vpop.eup %6655 }
 0xa23   :  { %v1217_v57 = vsel %vm662_vm3, %v6656_v56, 0.0 }
 0xa30   :  { %1218 = vadd.xlane.f32.xlu1 %v1217_v57 }
 0xa36   :  { %1230 = vrot.lane.b32.xlu0 %v7626_v22, %s7327_s13 }
 0xa3a   :  { %1345 = vrot.lane.b32.xlu0 %v7624_v21, %s7329_s23 }
 0xa41   :  { %1398 = vrot.lane.b32.xlu1 %v7630_v31, %s7328_s22 }
 0xa45   :  { %1396 = vrot.lane.b32.xlu1 %v7630_v31, %s7329_s23 }
 0xa82   :  { %v1210_v62 = vpop.xlane.xlu0 %1209 }
 0xa84   :  { %v1213_v58 = vpop.xlane.xlu1 %1212 }
 0xa85   :  { %6657 = vrcp.f32 %v1213_v58 }
 0xa86   :  { %6659 = vrcp.f32 %v1210_v62 }
 0xa88   :  { %v1278_v61 = vpop.permute.xlu1 %1277 }
 0xa89   :  { %6063 = vmatpush3.bf16.msra.mxu0 %v1278_v61 }
 0xa8a   :  { %6074 = vmatprep.subr.bf16.mxu0 %v7322_v8 }
 0xa8c   :  { %v1348_v11 = vpop.permute.xlu1 %1347 }
 0xa8d   :  { %v1353_v12 = vsel %vm544_vm2, %v1348_v11, 0 }
 0xa8f   :  { %v6658_v63 = vpop.eup %6657 }
 0xa90   :  { %v6660_v4 = vpop.eup %6659  ;;  %v1225_v6 = vmul.f32 %v6658_v63, %v6652_v45 }
 0xa91   :  { %v1224_v7 = vmul.f32 %v6660_v4, %v6650_v43 }
 0xa93   :  { %v1228_v10 = vpack.c.bf16 %v1225_v6, %v1224_v7 }
 0xaad   :  { %v1216_v0 = vpop.xlane.xlu0 %1215 }
 0xaae   :  { %6661 = vrcp.f32 %v1216_v0 }
 0xab1   :  { %v1231_v9 = vpop.permute.xlu0 %1230 }
 0xab2   :  { %6057 = vmatpush3.bf16.msra.mxu1 %v1231_v9 }
 0xab3   :  { %6068 = vmatprep.subr.bf16.mxu1 %v7322_v8 }
 0xab5   :  { %6059 = vmatmul.mubr.msk.bf16.vlgmr.msra.gmra.mrb[20].mxu1 %vm662_vm3, %v1228_v10  ;;  %v1346_v14 = vpop.permute.xlu0 %1345 }
 0xab6   :  { %6070 = vmatprep.mubr.msk.bf16.mxu1 %vm7323_vm1, %v7322_v8 }
 0xab8   :  { %v6662_v15 = vpop.eup %6661 }
 0xab9   :  { %v1226_v17 = vmul.f32 %v6662_v15, %v6654_v53 }
 0xabb   :  { %6069 = vmatpush3.bf16.xpose.msra.mxu1 %v1353_v12 }
 0xabc   :  { %6080 = vmatprep.subr.bf16.mxu1 %v7322_v8 }
 0xabd   :  { %v1219_v13 = vpop.xlane.xlu1 %1218 }
 0xabe   :  { %6663 = vrcp.f32 %v1219_v13 }
 0xac1   :  { %v1399_v23 = vpop.permute.xlu1 %1398 }
 0xac2   :  { %6071 = vmatmul.mubr.msk.bf16.vlgmr.msra.gmra.mrb[24].mxu1 %vm544_vm2, %v1346_v14  ;;  %v1404_v25 = vsel %vm544_vm2, %v1399_v23, 0 }
 0xac3   :  { %6082 = vmatprep.mubr.msk.bf16.mxu1 %vm7323_vm1, %v7322_v8 }
 0xac5   :  { %v1397_v26 = vpop.permute.xlu1 %1396 }
 0xac8   :  { %v6664_v16 = vpop.eup %6663 }
 0xac9   :  { %v1227_v19 = vmul.f32 %v6664_v16, %v6656_v56 }
 0xacb   :  { %v1229_v24 = vpack.c.bf16 %v1227_v19, %v1226_v17 }
 0xacd   :  { %6065 = vmatmul.mubr.msk.bf16.vlgmr.msra.gmra.mrb[28].mxu0 %vm662_vm3, %v1229_v24 }
 0xace   :  { %6075 = vmatpush3.bf16.xpose.msra.mxu0 %v1404_v25  ;;  %6076 = vmatprep.mubr.msk.bf16.mxu0 %vm7323_vm1, %v7322_v8 }
 0xacf   :  { %6086 = vmatprep.subr.bf16.mxu0 %v7322_v8 }
 0xad5   :  { %6077 = vmatmul.mubr.msk.bf16.vlgmr.msra.gmra.mrb[32].mxu0 %vm544_vm2, %v1397_v26 }
 0xad6   :  { %6088 = vmatprep.mubr.msk.bf16.mxu0 %vm7323_vm1, %v7322_v8 }
 0xb88   :  { %v7788_v27 = vpop.f32.mrb[20].mxu1 }
 0xb89   :  { %v6060_v28 = vpop.f32.mrb[21].mxu1 }
 0xb8a   :  { %v7790_v29 = vpop.f32.mrb[22].mxu1 }
 0xb8b   :  { %v6061_v30 = vpop.f32.mrb[23].mxu1 }
 0xb95   :  { %v1389_v33 = vpop.f32.mrb[24].mxu1 }
 0xb96   :  { %v1447_v34 = vmul.f32 0.35355338, %v1389_v33  ;;  %v6072_v35 = vpop.f32.mrb[25].mxu1 }
 0xb97   :  { %v1392_v36 = vpop.f32.mrb[26].mxu1 }
 0xb98   :  { %v1448_v37 = vmul.f32 0.35355338, %v1392_v36  ;;  %v6073_v39 = vpop.f32.mrb[27].mxu1  ;;  %v1451_v40 = vadd.f32 %v7652_v38, %v1447_v34 }
 0xb9a   :  { %v1455_v41 = vsel %vm662_vm3, %v1451_v40, -inf  ;;  %v1452_v42 = vadd.f32 %v7652_v38, %v1448_v37 }
 0xb9b   :  { %1456 = vmax.xlane.f32.xlu0 %v1455_v41 }
 0xb9c   :  { %v1458_v43 = vsel %vm662_vm3, %v1452_v42, -inf }
 0xb9d   :  { %1459 = vmax.xlane.f32.xlu1 %v1458_v43 }
 0xba0   :  { %v7796_v44 = vpop.f32.mrb[28].mxu0 }
 0xba1   :  { %v6066_v45 = vpop.f32.mrb[29].mxu0 }
 0xba2   :  { %v7798_v46 = vpop.f32.mrb[30].mxu0 }
 0xba3   :  { %v6067_v47 = vpop.f32.mrb[31].mxu0 }
 0xba8   :  { %v1440_v48 = vpop.f32.mrb[32].mxu0 }
 0xba9   :  { %v1449_v50 = vmul.f32 0.35355338, %v1440_v48  ;;  %v6078_v51 = vpop.f32.mrb[33].mxu0 }
 0xbaa   :  { %v1443_v52 = vpop.f32.mrb[34].mxu0 }
 0xbab   :  { %v1450_v53 = vmul.f32 0.35355338, %v1443_v52  ;;  %v6079_v54 = vpop.f32.mrb[35].mxu0  ;;  %v1453_v55 = vadd.f32 %v7658_v49, %v1449_v50 }
 0xbad   :  { %v1461_v56 = vsel %vm662_vm3, %v1453_v55, -inf  ;;  %v1454_v57 = vadd.f32 %v7658_v49, %v1450_v53 }
 0xbae   :  { %1462 = vmax.xlane.f32.xlu0 %v1461_v56 }
 0xbaf   :  { %v1464_v58 = vsel %vm662_vm3, %v1454_v57, -inf }
 0xbb2   :  { %1465 = vmax.xlane.f32.xlu0 %v1464_v58 }
 0xc28   :  { %v1457_v61 = vpop.xlane.xlu0 %1456 }
 0xc29   :  { %v1467_v62 = vsub.f32 %v1451_v40, %v1457_v61 }
 0xc2a   :  { %v1460_v63 = vpop.xlane.xlu1 %1459 }
 0xc2b   :  { %v1471_v0 = vmul.f32 1.442695, %v1467_v62  ;;  %v1468_v4 = vsub.f32 %v1452_v42, %v1460_v63 }
 0xc2d   :  { %6665 = vpow2.f32 %v1471_v0  ;;  %v1473_v6 = vmul.f32 1.442695, %v1468_v4 }
 0xc2f   :  { %6667 = vpow2.f32 %v1473_v6 }
 0xc37   :  { %v6666_v7 = vpop.eup %6665 }
 0xc38   :  { %v1479_v9 = vsel %vm662_vm3, %v6666_v7, 0.0 }
 0xc39   :  { %v6668_v10 = vpop.eup %6667  ;;  %1480 = vadd.xlane.f32.xlu0 %v1479_v9 }
 0xc3a   :  { %v1482_v11 = vsel %vm662_vm3, %v6668_v10, 0.0 }
 0xc3b   :  { %v1463_v12 = vpop.xlane.xlu0 %1462  ;;  %1483 = vadd.xlane.f32.xlu1 %v1482_v11 }
 0xc3c   :  { %v1469_v13 = vsub.f32 %v1453_v55, %v1463_v12 }
 0xc3e   :  { %v1475_v14 = vmul.f32 1.442695, %v1469_v13 }
 0xc3f   :  { %v1466_v17 = vpop.xlane.xlu0 %1465 }
 0xc40   :  { %6669 = vpow2.f32 %v1475_v14  ;;  %v1470_v19 = vsub.f32 %v1454_v57, %v1466_v17 }
 0xc42   :  { %v1477_v23 = vmul.f32 1.442695, %v1470_v19 }
 0xc44   :  { %6671 = vpow2.f32 %v1477_v23 }
 0xc4a   :  { %v6670_v15 = vpop.eup %6669 }
 0xc4b   :  { %v1485_v16 = vsel %vm662_vm3, %v6670_v15, 0.0 }
 0xc4c   :  { %1486 = vadd.xlane.f32.xlu0 %v1485_v16  ;;  %1548 = vrot.lane.b32.xlu1 %v7632_v32, %s7329_s23 }
 0xc4e   :  { %v6672_v24 = vpop.eup %6671 }
 0xc4f   :  { %v1488_v25 = vsel %vm662_vm3, %v6672_v24, 0.0 }
 0xc50   :  { %1618 = vrot.lane.b32.xlu1 %v7624_v21, %s7330_s30 }
 0xc62   :  { %1501 = vrot.lane.b32.xlu0 %v7626_v22, %s7329_s23 }
 0xc66   :  { %1616 = vrot.lane.b32.xlu0 %v7624_v21, %s7331_s21 }
 0xc74   :  { %1489 = vadd.xlane.f32.xlu1 %v1488_v25 }
 0xc85   :  { %1669 = vrot.lane.b32.xlu1 %v7630_v31, %s7330_s30 }
 0xc89   :  { %1667 = vrot.lane.b32.xlu1 %v7630_v31, %s7331_s21 }
 0xcc6   :  { %v1481_v30 = vpop.xlane.xlu0 %1480 }
 0xcc8   :  { %v1484_v26 = vpop.xlane.xlu1 %1483 }
 0xcc9   :  { %6673 = vrcp.f32 %v1484_v26 }
 0xcca   :  { %6675 = vrcp.f32 %v1481_v30 }
 0xccc   :  { %v1549_v28 = vpop.permute.xlu1 %1548 }
 0xccd   :  { %6087 = vmatpush3.bf16.msra.mxu0 %v1549_v28 }
 0xcce   :  { %6098 = vmatprep.subr.bf16.mxu0 %v7322_v8 }
 0xcd0   :  { %v1619_v41 = vpop.permute.xlu1 %1618 }
 0xcd1   :  { %v1624_v42 = vsel %vm544_vm2, %v1619_v41, 0 }
 0xcd3   :  { %v6674_v33 = vpop.eup %6673 }
 0xcd4   :  { %v6676_v35 = vpop.eup %6675  ;;  %v1496_v36 = vmul.f32 %v6674_v33, %v6668_v10 }
 0xcd5   :  { %v1495_v37 = vmul.f32 %v6676_v35, %v6666_v7 }
 0xcd7   :  { %v1499_v40 = vpack.c.bf16 %v1496_v36, %v1495_v37 }
 0xcd9   :  { %v1487_v34 = vpop.xlane.xlu0 %1486 }
 0xcda   :  { %6677 = vrcp.f32 %v1487_v34 }
 0xcdd   :  { %v1502_v39 = vpop.permute.xlu0 %1501 }
 0xcde   :  { %6081 = vmatpush3.bf16.msra.mxu1 %v1502_v39 }
 0xcdf   :  { %6092 = vmatprep.subr.bf16.mxu1 %v7322_v8 }
 0xce1   :  { %6083 = vmatmul.mubr.msk.bf16.vlgmr.msra.gmra.mrb[28].mxu1 %vm662_vm3, %v1499_v40  ;;  %v1617_v43 = vpop.permute.xlu0 %1616 }
 0xce2   :  { %6094 = vmatprep.mubr.msk.bf16.mxu1 %vm7323_vm1, %v7322_v8 }
 0xce4   :  { %v6678_v47 = vpop.eup %6677 }
 0xce5   :  { %v1497_v50 = vmul.f32 %v6678_v47, %v6670_v15 }
 0xce7   :  { %6093 = vmatpush3.bf16.xpose.msra.mxu1 %v1624_v42 }
 0xce8   :  { %6104 = vmatprep.subr.bf16.mxu1 %v7322_v8 }
 0xcee   :  { %6095 = vmatmul.mubr.msk.bf16.vlgmr.msra.gmra.mrb[32].mxu1 %vm544_vm2, %v1617_v43 }
 0xcef   :  { %6106 = vmatprep.mubr.msk.bf16.mxu1 %vm7323_vm1, %v7322_v8 }
 0xd01   :  { %v1490_v45 = vpop.xlane.xlu1 %1489 }
 0xd02   :  { %6679 = vrcp.f32 %v1490_v45 }
 0xd05   :  { %v1670_v52 = vpop.permute.xlu1 %1669 }
 0xd06   :  { %v1675_v54 = vsel %vm544_vm2, %v1670_v52, 0 }
 0xd09   :  { %v1668_v55 = vpop.permute.xlu1 %1667 }
 0xd0c   :  { %v6680_v48 = vpop.eup %6679 }
 0xd0d   :  { %v1498_v51 = vmul.f32 %v6680_v48, %v6672_v24 }
 0xd0f   :  { %v1500_v53 = vpack.c.bf16 %v1498_v51, %v1497_v50 }
 0xd11   :  { %6089 = vmatmul.mubr.msk.bf16.vlgmr.msra.gmra.mrb[36].mxu0 %vm662_vm3, %v1500_v53 }
 0xd12   :  { %6099 = vmatpush3.bf16.xpose.msra.mxu0 %v1675_v54  ;;  %6100 = vmatprep.mubr.msk.bf16.mxu0 %vm7323_vm1, %v7322_v8 }
 0xd13   :  { %6110 = vmatprep.subr.bf16.mxu0 %v7322_v8 }
 0xd19   :  { %6101 = vmatmul.mubr.msk.bf16.vlgmr.msra.gmra.mrb[40].mxu0 %vm544_vm2, %v1668_v55 }
 0xd1a   :  { %6112 = vmatprep.mubr.msk.bf16.mxu0 %vm7323_vm1, %v7322_v8 }
 0xdb4   :  { %v7838_v56 = vpop.f32.mrb[28].mxu1 }
 0xdb5   :  { %v6084_v57 = vpop.f32.mrb[29].mxu1 }
 0xdb6   :  { %v7840_v58 = vpop.f32.mrb[30].mxu1 }
 0xdb7   :  { %v6085_v61 = vpop.f32.mrb[31].mxu1 }
 0xdc1   :  { %v1660_v62 = vpop.f32.mrb[32].mxu1 }
 0xdc2   :  { %v1718_v63 = vmul.f32 0.35355338, %v1660_v62  ;;  %v6096_v0 = vpop.f32.mrb[33].mxu1 }
 0xdc3   :  { %v1663_v4 = vpop.f32.mrb[34].mxu1 }
 0xdc4   :  { %v1719_v6 = vmul.f32 0.35355338, %v1663_v4  ;;  %v6097_v7 = vpop.f32.mrb[35].mxu1  ;;  %v1722_v9 = vadd.f32 %v7652_v38, %v1718_v63 }
 0xdc6   :  { %v1726_v10 = vsel %vm662_vm3, %v1722_v9, -inf  ;;  %v1723_v11 = vadd.f32 %v7652_v38, %v1719_v6 }
 0xdc7   :  { %1727 = vmax.xlane.f32.xlu0 %v1726_v10 }
 0xdc8   :  { %v1729_v12 = vsel %vm662_vm3, %v1723_v11, -inf }
 0xdc9   :  { %1730 = vmax.xlane.f32.xlu1 %v1729_v12 }
 0xde4   :  { %v7846_v13 = vpop.f32.mrb[36].mxu0 }
 0xde5   :  { %v6090_v14 = vpop.f32.mrb[37].mxu0 }
 0xde6   :  { %v7848_v15 = vpop.f32.mrb[38].mxu0 }
 0xde7   :  { %v6091_v16 = vpop.f32.mrb[39].mxu0 }
 0xdec   :  { %v1711_v17 = vpop.f32.mrb[40].mxu0 }
 0xded   :  { %v1720_v19 = vmul.f32 0.35355338, %v1711_v17  ;;  %v6102_v23 = vpop.f32.mrb[41].mxu0 }
 0xdee   :  { %v1714_v24 = vpop.f32.mrb[42].mxu0 }
 0xdef   :  { %v1721_v25 = vmul.f32 0.35355338, %v1714_v24  ;;  %v6103_v26 = vpop.f32.mrb[43].mxu0  ;;  %v1724_v28 = vadd.f32 %v7658_v49, %v1720_v19 }
 0xdf1   :  { %v1732_v38 = vsel %vm662_vm3, %v1724_v28, -inf  ;;  %v1725_v30 = vadd.f32 %v7658_v49, %v1721_v25 }
 0xdf2   :  { %1733 = vmax.xlane.f32.xlu0 %v1732_v38 }
 0xdf3   :  { %v1735_v33 = vsel %vm662_vm3, %v1725_v30, -inf }
 0xdf6   :  { %1736 = vmax.xlane.f32.xlu0 %v1735_v33 }
 0xe54   :  { %v1728_v34 = vpop.xlane.xlu0 %1727 }
 0xe55   :  { %v1738_v35 = vsub.f32 %v1722_v9, %v1728_v34 }
 0xe56   :  { %v1731_v36 = vpop.xlane.xlu1 %1730 }
 0xe57   :  { %v1742_v37 = vmul.f32 1.442695, %v1738_v35  ;;  %v1739_v39 = vsub.f32 %v1723_v11, %v1731_v36 }
 0xe59   :  { %6681 = vpow2.f32 %v1742_v37  ;;  %v1744_v40 = vmul.f32 1.442695, %v1739_v39 }
 0xe5b   :  { %6683 = vpow2.f32 %v1744_v40 }
 0xe63   :  { %v6682_v41 = vpop.eup %6681 }
 0xe64   :  { %v1750_v42 = vsel %vm662_vm3, %v6682_v41, 0.0 }
 0xe65   :  { %v6684_v43 = vpop.eup %6683  ;;  %1751 = vadd.xlane.f32.xlu0 %v1750_v42 }
 0xe66   :  { %v1753_v45 = vsel %vm662_vm3, %v6684_v43, 0.0 }
 0xe67   :  { %1754 = vadd.xlane.f32.xlu1 %v1753_v45  ;;  %v7892_v45 = vld [vmem:[#allocation3] ss:$0 sm:$0xff] }
 0xe78   :  { %1819 = vrot.lane.b32.xlu1 %v7632_v32, %s7331_s21 }
 0xe7c   :  { %1889 = vrot.lane.b32.xlu1 %v7624_v21, %s7332_s6 }
 0xe7f   :  { %v1734_v49 = vpop.xlane.xlu0 %1733 }
 0xe80   :  { %v1740_v47 = vsub.f32 %v1724_v28, %v1734_v49 }
 0xe82   :  { %v1746_v48 = vmul.f32 1.442695, %v1740_v47 }
 0xe83   :  { %v1737_v50 = vpop.xlane.xlu0 %1736 }
 0xe84   :  { %6685 = vpow2.f32 %v1746_v48  ;;  %v1741_v51 = vsub.f32 %v1725_v30, %v1737_v50 }
 0xe86   :  { %v1748_v53 = vmul.f32 1.442695, %v1741_v51 }
 0xe88   :  { %6687 = vpow2.f32 %v1748_v53 }
 0xe8e   :  { %v6686_v52 = vpop.eup %6685 }
 0xe8f   :  { %v1756_v54 = vsel %vm662_vm3, %v6686_v52, 0.0 }
 0xe90   :  { %1757 = vadd.xlane.f32.xlu0 %v1756_v54 }
 0xe92   :  { %v6688_v55 = vpop.eup %6687 }
 0xe93   :  { %v1759_v57 = vsel %vm662_vm3, %v6688_v55, 0.0 }
 0xea0   :  { %1760 = vadd.xlane.f32.xlu1 %v1759_v57 }
 0xea6   :  { %1772 = vrot.lane.b32.xlu0 %v7626_v22, %s7331_s21 }
 0xeaa   :  { %1887 = vrot.lane.b32.xlu0 %v7624_v21, %s7333_s26 }
 0xeb1   :  { %1940 = vrot.lane.b32.xlu1 %v7630_v31, %s7332_s6 }
 0xeb5   :  { %1938 = vrot.lane.b32.xlu1 %v7630_v31, %s7333_s26 }
 0xef2   :  { %v1752_v63 = vpop.xlane.xlu0 %1751 }
 0xef4   :  { %v1755_v61 = vpop.xlane.xlu1 %1754 }
 0xef5   :  { %6689 = vrcp.f32 %v1755_v61 }
 0xef6   :  { %6691 = vrcp.f32 %v1752_v63 }
 0xef8   :  { %v1820_v62 = vpop.permute.xlu1 %1819 }
 0xef9   :  { %6111 = vmatpush3.bf16.msra.mxu0 %v1820_v62 }
 0xefa   :  { %6122 = vmatprep.subr.bf16.mxu0 %v7322_v8 }
 0xefc   :  { %v1890_v12 = vpop.permute.xlu1 %1889 }
 0xefd   :  { %v1895_v14 = vsel %vm544_vm2, %v1890_v12, 0 }
 0xeff   :  { %v6690_v0 = vpop.eup %6689 }
 0xf00   :  { %v6692_v6 = vpop.eup %6691  ;;  %v1767_v7 = vmul.f32 %v6690_v0, %v6684_v43 }
 0xf01   :  { %v1766_v9 = vmul.f32 %v6692_v6, %v6682_v41 }
 0xf03   :  { %v1770_v11 = vpack.c.bf16 %v1767_v7, %v1766_v9 }
 0xf1d   :  { %v1758_v4 = vpop.xlane.xlu0 %1757 }
 0xf1e   :  { %6693 = vrcp.f32 %v1758_v4  ;;  %v7902_v4 = vld [vmem:[#allocation3 + $0x1] ss:$0 sm:$0xff] }
 0xf21   :  { %v1773_v10 = vpop.permute.xlu0 %1772 }
 0xf22   :  { %6105 = vmatpush3.bf16.msra.mxu1 %v1773_v10 }
 0xf23   :  { %6116 = vmatprep.subr.bf16.mxu1 %v7322_v8 }
 0xf25   :  { %6107 = vmatmul.mubr.msk.bf16.vlgmr.msra.gmra.mrb[36].mxu1 %vm662_vm3, %v1770_v11  ;;  %v1888_v17 = vpop.permute.xlu0 %1887 }
 0xf26   :  { %6118 = vmatprep.mubr.msk.bf16.mxu1 %vm7323_vm1, %v7322_v8 }
 0xf28   :  { %v6694_v19 = vpop.eup %6693 }
 0xf29   :  { %v1768_v24 = vmul.f32 %v6694_v19, %v6686_v52 }
 0xf2b   :  { %6117 = vmatpush3.bf16.xpose.msra.mxu1 %v1895_v14 }
 0xf2c   :  { %6128 = vmatprep.subr.bf16.mxu1 %v7322_v8 }
 0xf2d   :  { %v1761_v16 = vpop.xlane.xlu1 %1760 }
 0xf2e   :  { %6695 = vrcp.f32 %v1761_v16 }
 0xf31   :  { %v1941_v26 = vpop.permute.xlu1 %1940 }
 0xf32   :  { %6119 = vmatmul.mubr.msk.bf16.vlgmr.msra.gmra.mrb[40].mxu1 %vm544_vm2, %v1888_v17  ;;  %v1946_v38 = vsel %vm544_vm2, %v1941_v26, 0 }
 0xf33   :  { %6130 = vmatprep.mubr.msk.bf16.mxu1 %vm7323_vm1, %v7322_v8 }
 0xf35   :  { %v1939_v30 = vpop.permute.xlu1 %1938 }
 0xf38   :  { %v6696_v23 = vpop.eup %6695 }
 0xf39   :  { %v1769_v25 = vmul.f32 %v6696_v23, %v6688_v55 }
 0xf3b   :  { %v1771_v28 = vpack.c.bf16 %v1769_v25, %v1768_v24 }
 0xf3d   :  { %6113 = vmatmul.mubr.msk.bf16.vlgmr.msra.gmra.mrb[44].mxu0 %vm662_vm3, %v1771_v28 }
 0xf3e   :  { %6123 = vmatpush3.bf16.xpose.msra.mxu0 %v1946_v38  ;;  %6124 = vmatprep.mubr.msk.bf16.mxu0 %vm7323_vm1, %v7322_v8 }
 0xf3f   :  { %6134 = vmatprep.subr.bf16.mxu0 %v7322_v8 }
 0xf45   :  { %6125 = vmatmul.mubr.msk.bf16.vlgmr.msra.gmra.mrb[48].mxu0 %vm544_vm2, %v1939_v30 }
 0xf46   :  { %6136 = vmatprep.mubr.msk.bf16.mxu0 %vm7323_vm1, %v7322_v8 }
 0xff8   :  { %v7888_v33 = vpop.f32.mrb[36].mxu1 }
 0xff9   :  { %v6108_v34 = vpop.f32.mrb[37].mxu1 }
 0xffa   :  { %v7890_v35 = vpop.f32.mrb[38].mxu1 }
 0xffb   :  { %v6109_v36 = vpop.f32.mrb[39].mxu1 }
0x1005   :  { %v1931_v37 = vpop.f32.mrb[40].mxu1 }
0x1006   :  { %v1989_v39 = vmul.f32 0.35355338, %v1931_v37  ;;  %v6120_v40 = vpop.f32.mrb[41].mxu1 }
0x1007   :  { %v1934_v41 = vpop.f32.mrb[42].mxu1 }
0x1008   :  { %v1990_v42 = vmul.f32 0.35355338, %v1934_v41  ;;  %v6121_v43 = vpop.f32.mrb[43].mxu1  ;;  %v1993_v49 = vadd.f32 %v7892_v45, %v1989_v39 }
0x100a   :  { %v1997_v47 = vsel %vm662_vm3, %v1993_v49, -inf  ;;  %v1994_v48 = vadd.f32 %v7892_v45, %v1990_v42 }
0x100b   :  { %1998 = vmax.xlane.f32.xlu0 %v1997_v47 }
0x100c   :  { %v2000_v50 = vsel %vm662_vm3, %v1994_v48, -inf }
0x100d   :  { %2001 = vmax.xlane.f32.xlu1 %v2000_v50 }
0x1010   :  { %v7898_v51 = vpop.f32.mrb[44].mxu0 }
0x1011   :  { %v6114_v52 = vpop.f32.mrb[45].mxu0 }
0x1012   :  { %v7900_v53 = vpop.f32.mrb[46].mxu0 }
0x1013   :  { %v6115_v54 = vpop.f32.mrb[47].mxu0 }
0x1018   :  { %v1982_v55 = vpop.f32.mrb[48].mxu0 }
0x1019   :  { %v1991_v57 = vmul.f32 0.35355338, %v1982_v55  ;;  %v6126_v61 = vpop.f32.mrb[49].mxu0 }
0x101a   :  { %v1985_v62 = vpop.f32.mrb[50].mxu0 }
0x101b   :  { %v1992_v63 = vmul.f32 0.35355338, %v1985_v62  ;;  %v6127_v0 = vpop.f32.mrb[51].mxu0  ;;  %v1995_v6 = vadd.f32 %v7902_v4, %v1991_v57 }
0x101d   :  { %v2003_v7 = vsel %vm662_vm3, %v1995_v6, -inf  ;;  %v1996_v9 = vadd.f32 %v7902_v4, %v1992_v63 }
0x101e   :  { %2004 = vmax.xlane.f32.xlu0 %v2003_v7 }
0x101f   :  { %v2006_v10 = vsel %vm662_vm3, %v1996_v9, -inf }
0x1022   :  { %2007 = vmax.xlane.f32.xlu0 %v2006_v10 }
0x1098   :  { %v1999_v11 = vpop.xlane.xlu0 %1998 }
0x1099   :  { %v2009_v12 = vsub.f32 %v1993_v49, %v1999_v11 }
0x109a   :  { %v2002_v14 = vpop.xlane.xlu1 %2001 }
0x109b   :  { %v2013_v16 = vmul.f32 1.442695, %v2009_v12  ;;  %v2010_v17 = vsub.f32 %v1994_v48, %v2002_v14 }
0x109d   :  { %6697 = vpow2.f32 %v2013_v16  ;;  %v2015_v19 = vmul.f32 1.442695, %v2010_v17 }
0x109f   :  { %6699 = vpow2.f32 %v2015_v19 }
0x10a7   :  { %v6698_v23 = vpop.eup %6697 }
0x10a8   :  { %v2021_v24 = vsel %vm662_vm3, %v6698_v23, 0.0 }
0x10a9   :  { %v6700_v25 = vpop.eup %6699  ;;  %2022 = vadd.xlane.f32.xlu0 %v2021_v24 }
0x10aa   :  { %v2024_v26 = vsel %vm662_vm3, %v6700_v25, 0.0 }
0x10ab   :  { %v2005_v28 = vpop.xlane.xlu0 %2004  ;;  %2025 = vadd.xlane.f32.xlu1 %v2024_v26 }
0x10ac   :  { %v2011_v38 = vsub.f32 %v1995_v6, %v2005_v28 }
0x10ae   :  { %v2017_v30 = vmul.f32 1.442695, %v2011_v38 }
0x10af   :  { %v2008_v37 = vpop.xlane.xlu0 %2007 }
0x10b0   :  { %6701 = vpow2.f32 %v2017_v30  ;;  %v2012_v39 = vsub.f32 %v1996_v9, %v2008_v37 }
0x10b2   :  { %v2019_v40 = vmul.f32 1.442695, %v2012_v39 }
0x10b4   :  { %6703 = vpow2.f32 %v2019_v40 }
0x10ba   :  { %v6702_v34 = vpop.eup %6701 }
0x10bb   :  { %v2027_v36 = vsel %vm662_vm3, %v6702_v34, 0.0 }
0x10bc   :  { %2028 = vadd.xlane.f32.xlu0 %v2027_v36  ;;  %2090 = vrot.lane.b32.xlu1 %v7632_v32, %s7333_s26 }
0x10be   :  { %v6704_v41 = vpop.eup %6703 }
0x10bf   :  { %v2030_v42 = vsel %vm662_vm3, %v6704_v41, 0.0 }
0x10c0   :  { %2160 = vrot.lane.b32.xlu1 %v7624_v21, %s7311_s16 }
0x10d2   :  { %2043 = vrot.lane.b32.xlu0 %v7626_v22, %s7333_s26 }
0x10d6   :  { %2158 = vrot.lane.b32.xlu0 %v7624_v21, %s7334_s9 }
0x10e4   :  { %2031 = vadd.xlane.f32.xlu1 %v2030_v42 }
0x10f5   :  { %2211 = vrot.lane.b32.xlu1 %v7630_v31, %s7311_s16 }
0x10f9   :  { %2209 = vrot.lane.b32.xlu1 %v7630_v31, %s7334_s9 }
0x1136   :  { %v2023_v47 = vpop.xlane.xlu0 %2022 }
0x1138   :  { %v2026_v43 = vpop.xlane.xlu1 %2025 }
0x1139   :  { %6705 = vrcp.f32 %v2026_v43 }
0x113a   :  { %6707 = vrcp.f32 %v2023_v47 }
0x113c   :  { %v2091_v49 = vpop.permute.xlu1 %2090 }
0x113d   :  { %6135 = vmatpush3.bf16.msra.mxu0 %v2091_v49 }
0x113e   :  { %6146 = vmatprep.subr.bf16.mxu0 %v7322_v8 }
0x1140   :  { %v2161_v62 = vpop.permute.xlu1 %2160 }
0x1141   :  { %v2166_v63 = vsel %vm544_vm2, %v2161_v62, 0 }
0x1143   :  { %v6706_v48 = vpop.eup %6705 }
0x1144   :  { %v6708_v52 = vpop.eup %6707  ;;  %v2038_v54 = vmul.f32 %v6706_v48, %v6700_v25 }
0x1145   :  { %v2037_v55 = vmul.f32 %v6708_v52, %v6698_v23 }
0x1147   :  { %v2041_v61 = vpack.c.bf16 %v2038_v54, %v2037_v55 }
0x1149   :  { %v2029_v50 = vpop.xlane.xlu0 %2028 }
0x114a   :  { %6709 = vrcp.f32 %v2029_v50 }
0x114d   :  { %v2044_v57 = vpop.permute.xlu0 %2043 }
0x114e   :  { %6129 = vmatpush3.bf16.msra.mxu1 %v2044_v57 }
0x114f   :  { %6140 = vmatprep.subr.bf16.mxu1 %v7322_v8 }
0x1151   :  { %6131 = vmatmul.mubr.msk.bf16.vlgmr.msra.gmra.mrb[44].mxu1 %vm662_vm3, %v2041_v61  ;;  %v2159_v0 = vpop.permute.xlu0 %2158 }
0x1152   :  { %6142 = vmatprep.mubr.msk.bf16.mxu1 %vm7323_vm1, %v7322_v8 }
0x1154   :  { %v6710_v7 = vpop.eup %6709 }
0x1155   :  { %v2039_v10 = vmul.f32 %v6710_v7, %v6702_v34 }
0x1157   :  { %6141 = vmatpush3.bf16.xpose.msra.mxu1 %v2166_v63 }
0x1158   :  { %6152 = vmatprep.subr.bf16.mxu1 %v7322_v8 }
0x115e   :  { %6143 = vmatmul.mubr.msk.bf16.vlgmr.msra.gmra.mrb[48].mxu1 %vm544_vm2, %v2159_v0 }
0x115f   :  { %6154 = vmatprep.mubr.msk.bf16.mxu1 %vm7323_vm1, %v7322_v8 }
0x1171   :  { %v2032_v6 = vpop.xlane.xlu1 %2031 }
0x1172   :  { %6711 = vrcp.f32 %v2032_v6 }
0x1175   :  { %v2212_v12 = vpop.permute.xlu1 %2211 }
0x1176   :  { %v2217_v16 = vsel %vm544_vm2, %v2212_v12, 0 }
0x1179   :  { %v2210_v17 = vpop.permute.xlu1 %2209 }
0x117c   :  { %v6712_v9 = vpop.eup %6711 }
0x117d   :  { %v2040_v11 = vmul.f32 %v6712_v9, %v6704_v41 }
0x117f   :  { %v2042_v14 = vpack.c.bf16 %v2040_v11, %v2039_v10 }
0x1181   :  { %6137 = vmatmul.mubr.msk.bf16.vlgmr.msra.gmra.mrb[52].mxu0 %vm662_vm3, %v2042_v14 }
0x1182   :  { %6147 = vmatpush3.bf16.xpose.msra.mxu0 %v2217_v16  ;;  %6148 = vmatprep.mubr.msk.bf16.mxu0 %vm7323_vm1, %v7322_v8 }
0x1183   :  { %6158 = vmatprep.subr.bf16.mxu0 %v7322_v8 }
0x1189   :  { %6149 = vmatmul.mubr.msk.bf16.vlgmr.msra.gmra.mrb[56].mxu0 %vm544_vm2, %v2210_v17 }
0x118a   :  { %6160 = vmatprep.mubr.msk.bf16.mxu0 %vm7323_vm1, %v7322_v8 }
0x1224   :  { %v7942_v19 = vpop.f32.mrb[44].mxu1 }
0x1225   :  { %v6132_v23 = vpop.f32.mrb[45].mxu1 }
0x1226   :  { %v7944_v24 = vpop.f32.mrb[46].mxu1 }
0x1227   :  { %v6133_v25 = vpop.f32.mrb[47].mxu1 }
0x1231   :  { %v2202_v26 = vpop.f32.mrb[48].mxu1 }
0x1232   :  { %v2260_v28 = vmul.f32 0.35355338, %v2202_v26  ;;  %v6144_v38 = vpop.f32.mrb[49].mxu1 }
0x1233   :  { %v2205_v30 = vpop.f32.mrb[50].mxu1 }
0x1234   :  { %v2261_v34 = vmul.f32 0.35355338, %v2205_v30  ;;  %v6145_v36 = vpop.f32.mrb[51].mxu1  ;;  %v2264_v37 = vadd.f32 %v7892_v45, %v2260_v28 }
0x1236   :  { %v2268_v39 = vsel %vm662_vm3, %v2264_v37, -inf  ;;  %v2265_v40 = vadd.f32 %v7892_v45, %v2261_v34 }
0x1237   :  { %2269 = vmax.xlane.f32.xlu0 %v2268_v39 }
0x1238   :  { %v2271_v41 = vsel %vm662_vm3, %v2265_v40, -inf }
0x1239   :  { %2272 = vmax.xlane.f32.xlu1 %v2271_v41 }
0x1254   :  { %v7950_v42 = vpop.f32.mrb[52].mxu0 }
0x1255   :  { %v6138_v43 = vpop.f32.mrb[53].mxu0 }
0x1256   :  { %v7952_v49 = vpop.f32.mrb[54].mxu0 }
0x1257   :  { %v6139_v47 = vpop.f32.mrb[55].mxu0 }
0x125c   :  { %v2253_v48 = vpop.f32.mrb[56].mxu0 }
0x125d   :  { %v2262_v50 = vmul.f32 0.35355338, %v2253_v48  ;;  %v6150_v52 = vpop.f32.mrb[57].mxu0 }
0x125e   :  { %v2256_v54 = vpop.f32.mrb[58].mxu0 }
0x125f   :  { %v2263_v55 = vmul.f32 0.35355338, %v2256_v54  ;;  %v6151_v57 = vpop.f32.mrb[59].mxu0  ;;  %v2266_v61 = vadd.f32 %v7902_v4, %v2262_v50 }
0x1261   :  { %v2274_v62 = vsel %vm662_vm3, %v2266_v61, -inf  ;;  %v2267_v63 = vadd.f32 %v7902_v4, %v2263_v55 }
0x1262   :  { %2275 = vmax.xlane.f32.xlu0 %v2274_v62 }
0x1263   :  { %v2277_v0 = vsel %vm662_vm3, %v2267_v63, -inf }
0x1266   :  { %2278 = vmax.xlane.f32.xlu0 %v2277_v0 }
0x12c4   :  { %v2270_v6 = vpop.xlane.xlu0 %2269 }
0x12c5   :  { %v2280_v7 = vsub.f32 %v2264_v37, %v2270_v6 }
0x12c6   :  { %v2273_v9 = vpop.xlane.xlu1 %2272 }
0x12c7   :  { %v2284_v10 = vmul.f32 1.442695, %v2280_v7  ;;  %v2281_v11 = vsub.f32 %v2265_v40, %v2273_v9 }
0x12c9   :  { %6713 = vpow2.f32 %v2284_v10  ;;  %v2286_v12 = vmul.f32 1.442695, %v2281_v11 }
0x12cb   :  { %6715 = vpow2.f32 %v2286_v12 }
0x12d3   :  { %v6714_v14 = vpop.eup %6713 }
0x12d4   :  { %v2292_v16 = vsel %vm662_vm3, %v6714_v14, 0.0 }
0x12d5   :  { %v6716_v17 = vpop.eup %6715  ;;  %2293 = vadd.xlane.f32.xlu0 %v2292_v16 }
0x12d6   :  { %v2295_v23 = vsel %vm662_vm3, %v6716_v17, 0.0 }
0x12d7   :  { %2296 = vadd.xlane.f32.xlu1 %v2295_v23 }
0x12e8   :  { %2361 = vrot.lane.b32.xlu1 %v7632_v32, %s7334_s9 }
0x12ec   :  { %2431 = vrot.lane.b32.xlu1 %v7624_v21, %s7335_s12 }
0x12ef   :  { %v2276_v25 = vpop.xlane.xlu0 %2275 }
0x12f0   :  { %v2282_v26 = vsub.f32 %v2266_v61, %v2276_v25 }
0x12f2   :  { %v2288_v28 = vmul.f32 1.442695, %v2282_v26 }
0x12f3   :  { %v2279_v38 = vpop.xlane.xlu0 %2278 }
0x12f4   :  { %6717 = vpow2.f32 %v2288_v28  ;;  %v2283_v30 = vsub.f32 %v2267_v63, %v2279_v38 }
0x12f6   :  { %v2290_v36 = vmul.f32 1.442695, %v2283_v30 }
0x12f8   :  { %6719 = vpow2.f32 %v2290_v36 }
0x12fe   :  { %v6718_v34 = vpop.eup %6717 }
0x12ff   :  { %v2298_v37 = vsel %vm662_vm3, %v6718_v34, 0.0 }
0x1300   :  { %2299 = vadd.xlane.f32.xlu0 %v2298_v37 }
0x1302   :  { %v6720_v39 = vpop.eup %6719 }
0x1303   :  { %v2301_v40 = vsel %vm662_vm3, %v6720_v39, 0.0 }
0x1310   :  { %2302 = vadd.xlane.f32.xlu1 %v2301_v40 }
0x1316   :  { %2314 = vrot.lane.b32.xlu0 %v7626_v22, %s7334_s9 }
0x131a   :  { %2429 = vrot.lane.b32.xlu0 %v7624_v21, %s7336_s0 }
0x1321   :  { %2482 = vrot.lane.b32.xlu1 %v7630_v31, %s7335_s12 }
0x1325   :  { %2480 = vrot.lane.b32.xlu1 %v7630_v31, %s7336_s0 }
0x1362   :  { %v2294_v47 = vpop.xlane.xlu0 %2293 }
0x1364   :  { %v2297_v41 = vpop.xlane.xlu1 %2296 }
0x1365   :  { %6721 = vrcp.f32 %v2297_v41 }
0x1366   :  { %6723 = vrcp.f32 %v2294_v47 }
0x1368   :  { %v2362_v43 = vpop.permute.xlu1 %2361 }
0x1369   :  { %6159 = vmatpush3.bf16.msra.mxu0 %v2362_v43 }
0x136a   :  { %6170 = vmatprep.subr.bf16.mxu0 %v7322_v8 }
0x136c   :  { %v2432_v31 = vpop.permute.xlu1 %2431 }
0x136d   :  { %v2437_v61 = vsel %vm544_vm2, %v2432_v31, 0 }
0x136f   :  { %v6722_v48 = vpop.eup %6721 }
0x1370   :  { %v6724_v52 = vpop.eup %6723  ;;  %v2309_v54 = vmul.f32 %v6722_v48, %v6716_v17 }
0x1371   :  { %v2308_v55 = vmul.f32 %v6724_v52, %v6714_v14 }
0x1373   :  { %v2312_v57 = vpack.c.bf16 %v2309_v54, %v2308_v55 }
0x138d   :  { %v2300_v50 = vpop.xlane.xlu0 %2299 }
0x138e   :  { %6725 = vrcp.f32 %v2300_v50 }
0x1391   :  { %v2315_v21 = vpop.permute.xlu0 %2314 }
0x1392   :  { %6153 = vmatpush3.bf16.msra.mxu1 %v2315_v21 }
0x1393   :  { %6164 = vmatprep.subr.bf16.mxu1 %v7322_v8 }
0x1395   :  { %6155 = vmatmul.mubr.msk.bf16.vlgmr.msra.gmra.mrb[52].mxu1 %vm662_vm3, %v2312_v57  ;;  %v2430_v63 = vpop.permute.xlu0 %2429 }
0x1396   :  { %6166 = vmatprep.mubr.msk.bf16.mxu1 %vm7323_vm1, %v7322_v8 }
0x1398   :  { %v6726_v0 = vpop.eup %6725 }
0x1399   :  { %v2310_v7 = vmul.f32 %v6726_v0, %v6718_v34 }
0x139b   :  { %6165 = vmatpush3.bf16.xpose.msra.mxu1 %v2437_v61 }
0x139c   :  { %6176 = vmatprep.subr.bf16.mxu1 %v7322_v8 }
0x139d   :  { %v2303_v62 = vpop.xlane.xlu1 %2302 }
0x139e   :  { %6727 = vrcp.f32 %v2303_v62 }
0x13a1   :  { %v2483_v10 = vpop.permute.xlu1 %2482 }
0x13a2   :  { %6167 = vmatmul.mubr.msk.bf16.vlgmr.msra.gmra.mrb[56].mxu1 %vm544_vm2, %v2430_v63  ;;  %v2488_v12 = vsel %vm544_vm2, %v2483_v10, 0 }
0x13a3   :  { %6178 = vmatprep.mubr.msk.bf16.mxu1 %vm7323_vm1, %v7322_v8 }
0x13a5   :  { %v2481_v14 = vpop.permute.xlu1 %2480 }
0x13a8   :  { %v6728_v6 = vpop.eup %6727 }
0x13a9   :  { %v2311_v9 = vmul.f32 %v6728_v6, %v6720_v39 }
0x13ab   :  { %v2313_v11 = vpack.c.bf16 %v2311_v9, %v2310_v7 }
0x13ad   :  { %6161 = vmatmul.mubr.msk.bf16.vlgmr.msra.gmra.mrb[60].mxu0 %vm662_vm3, %v2313_v11 }
0x13ae   :  { %6171 = vmatpush3.bf16.xpose.msra.mxu0 %v2488_v12  ;;  %6172 = vmatprep.mubr.msk.bf16.mxu0 %vm7323_vm1, %v7322_v8 }
0x13af   :  { %6182 = vmatprep.subr.bf16.mxu0 %v7322_v8 }
0x13b5   :  { %6173 = vmatmul.mubr.msk.bf16.vlgmr.msra.gmra.mrb[64].mxu0 %vm544_vm2, %v2481_v14 }
0x13b6   :  { %6184 = vmatprep.mubr.msk.bf16.mxu0 %vm7323_vm1, %v7322_v8 }
0x1468   :  { %v7992_v16 = vpop.f32.mrb[52].mxu1 }
0x1469   :  { %v6156_v17 = vpop.f32.mrb[53].mxu1 }
0x146a   :  { %v7994_v23 = vpop.f32.mrb[54].mxu1 }
0x146b   :  { %v6157_v25 = vpop.f32.mrb[55].mxu1 }
0x1475   :  { %v2473_v26 = vpop.f32.mrb[56].mxu1 }
0x1476   :  { %v2531_v28 = vmul.f32 0.35355338, %v2473_v26  ;;  %v6168_v38 = vpop.f32.mrb[57].mxu1 }
0x1477   :  { %v2476_v30 = vpop.f32.mrb[58].mxu1 }
0x1478   :  { %v2535_v34 = vadd.f32 %v7892_v45, %v2531_v28  ;;  %v2532_v36 = vmul.f32 0.35355338, %v2476_v30  ;;  %v6169_v37 = vpop.f32.mrb[59].mxu1 }
0x147a   :  { %v2536_v39 = vadd.f32 %v7892_v45, %v2532_v36  ;;  %v2539_v40 = vsel %vm662_vm3, %v2535_v34, -inf }
0x147b   :  { %2540 = vmax.xlane.f32.xlu0 %v2539_v40 }
0x147c   :  { %v2542_v41 = vsel %vm662_vm3, %v2536_v39, -inf }
0x147d   :  { %2543 = vmax.xlane.f32.xlu1 %v2542_v41 }
0x1480   :  { %v8000_v43 = vpop.f32.mrb[60].mxu0 }
0x1481   :  { %v6162_v47 = vpop.f32.mrb[61].mxu0 }
0x1482   :  { %v8002_v48 = vpop.f32.mrb[62].mxu0 }
0x1483   :  { %v6163_v50 = vpop.f32.mrb[63].mxu0 }
0x1488   :  { %v2524_v52 = vpop.f32.mrb[64].mxu0 }
0x1489   :  { %v2533_v54 = vmul.f32 0.35355338, %v2524_v52  ;;  %v6174_v55 = vpop.f32.mrb[65].mxu0 }
0x148a   :  { %v2527_v21 = vpop.f32.mrb[66].mxu0 }
0x148b   :  { %v2537_v57 = vadd.f32 %v7902_v4, %v2533_v54  ;;  %v2534_v31 = vmul.f32 0.35355338, %v2527_v21  ;;  %v6175_v45 = vpop.f32.mrb[67].mxu0 }
0x148d   :  { %v2538_v61 = vadd.f32 %v7902_v4, %v2534_v31  ;;  %v2545_v62 = vsel %vm662_vm3, %v2537_v57, -inf }
0x148e   :  { %2546 = vmax.xlane.f32.xlu0 %v2545_v62 }
0x148f   :  { %v2548_v63 = vsel %vm662_vm3, %v2538_v61, -inf }
0x1492   :  { %2549 = vmax.xlane.f32.xlu0 %v2548_v63 }
0x1508   :  { %v2541_v0 = vpop.xlane.xlu0 %2540 }
0x1509   :  { %v2551_v6 = vsub.f32 %v2535_v34, %v2541_v0 }
0x150a   :  { %v2544_v7 = vpop.xlane.xlu1 %2543 }
0x150b   :  { %v2555_v9 = vmul.f32 1.442695, %v2551_v6  ;;  %v2552_v10 = vsub.f32 %v2536_v39, %v2544_v7  ;;  %v6569_v6 = vld [vmem:[%s8680_s27] sm:$0xff]   ;;  %v6570_v7 = vld [vmem:[%s8680_s27 + $0x8] sm:$0xff]  }
0x150d   :  { %6729 = vpow2.f32 %v2555_v9  ;;  %v2557_v11 = vmul.f32 1.442695, %v2552_v10 }
0x150f   :  { %6731 = vpow2.f32 %v2557_v11 }
0x1517   :  { %v6730_v12 = vpop.eup %6729 }
0x1518   :  { %v2563_v14 = vsel %vm662_vm3, %v6730_v12, 0.0 }
0x1519   :  { %v6732_v17 = vpop.eup %6731  ;;  %2564 = vadd.xlane.f32.xlu0 %v2563_v14 }
0x151a   :  { %v2566_v4 = vsel %vm662_vm3, %v6732_v17, 0.0 }
0x151b   :  { %v2547_v25 = vpop.xlane.xlu0 %2546  ;;  %2567 = vadd.xlane.f32.xlu1 %v2566_v4 }
0x151c   :  { %v2553_v26 = vsub.f32 %v2537_v57, %v2547_v25 }
0x151e   :  { %v2559_v28 = vmul.f32 1.442695, %v2553_v26 }
0x151f   :  { %v2550_v38 = vpop.xlane.xlu0 %2549 }
0x1520   :  { %6733 = vpow2.f32 %v2559_v28  ;;  %v2554_v30 = vsub.f32 %v2538_v61, %v2550_v38 }
0x1522   :  { %v2561_v34 = vmul.f32 1.442695, %v2554_v30 }
0x1524   :  { %6735 = vpow2.f32 %v2561_v34 }
0x152a   :  { %v6734_v36 = vpop.eup %6733 }
0x152b   :  { %v2569_v37 = vsel %vm662_vm3, %v6734_v36, 0.0 }
0x152c   :  { %2570 = vadd.xlane.f32.xlu0 %v2569_v37 }
0x152e   :  { %v6736_v39 = vpop.eup %6735 }
0x152f   :  { %v2572_v40 = vsel %vm662_vm3, %v6736_v39, 0.0 }
0x1530   :  { %2573 = vadd.xlane.f32.xlu1 %v2572_v40 }
0x1541   :  { %2632 = vrot.lane.b32.xlu1 %v7632_v32, %s7336_s0 }
0x1542   :  { %2585 = vrot.lane.b32.xlu0 %v7626_v22, %s7336_s0 }
0x1545   :  { %1057 = vrot.lane.b32.xlu1 %v7738_v1, %s7335_s12 }
0x1546   :  { %1061 = vrot.lane.b32.xlu0 %v7746_v18, %s7335_s12 }
0x1549   :  { %1059 = vrot.lane.b32.xlu1 %v7740_v5, %s7335_s12 }
0x154a   :  { %1328 = vrot.lane.b32.xlu0 %v7788_v27, %s7311_s16 }
0x154d   :  { %1063 = vrot.lane.b32.xlu1 %v7748_v20, %s7335_s12 }
0x154e   :  { %1332 = vrot.lane.b32.xlu0 %v7796_v44, %s7311_s16 }
0x1551   :  { %1330 = vrot.lane.b32.xlu1 %v7790_v29, %s7311_s16 }
0x1552   :  { %1599 = vrot.lane.b32.xlu0 %v7838_v56, %s7332_s6 }
0x1555   :  { %1334 = vrot.lane.b32.xlu1 %v7798_v46, %s7311_s16 }
0x1556   :  { %1603 = vrot.lane.b32.xlu0 %v7846_v13, %s7332_s6 }
0x1559   :  { %1601 = vrot.lane.b32.xlu1 %v7840_v58, %s7332_s6 }
0x155a   :  { %1870 = vrot.lane.b32.xlu0 %v7888_v33, %s7330_s30 }
0x155d   :  { %1605 = vrot.lane.b32.xlu1 %v7848_v15, %s7332_s6 }
0x155e   :  { %1874 = vrot.lane.b32.xlu0 %v7898_v51, %s7330_s30 }
0x1561   :  { %1872 = vrot.lane.b32.xlu1 %v7890_v35, %s7330_s30 }
0x1562   :  { %2141 = vrot.lane.b32.xlu0 %v7942_v19, %s7328_s22 }
0x1565   :  { %1876 = vrot.lane.b32.xlu1 %v7900_v53, %s7330_s30 }
0x1566   :  { %2145 = vrot.lane.b32.xlu0 %v7950_v42, %s7328_s22 }
0x1569   :  { %2143 = vrot.lane.b32.xlu1 %v7944_v24, %s7328_s22 }
0x156a   :  { %2412 = vrot.lane.b32.xlu0 %v7992_v16, %s7326_s3 }
0x156d   :  { %2147 = vrot.lane.b32.xlu1 %v7952_v49, %s7328_s22 }
0x156e   :  { %2416 = vrot.lane.b32.xlu0 %v8000_v43, %s7326_s3 }
0x1571   :  { %2414 = vrot.lane.b32.xlu1 %v7994_v23, %s7326_s3 }
0x1575   :  { %2418 = vrot.lane.b32.xlu1 %v8002_v48, %s7326_s3 }
0x15a6   :  { %v2565_v32 = vpop.xlane.xlu0 %2564 }
0x15a8   :  { %v2568_v22 = vpop.xlane.xlu1 %2567 }
0x15a9   :  { %6737 = vrcp.f32 %v2568_v22 }
0x15aa   :  { %6739 = vrcp.f32 %v2565_v32 }
0x15b3   :  { %v6738_v1 = vpop.eup %6737 }
0x15b4   :  { %v6740_v18 = vpop.eup %6739  ;;  %v2580_v20 = vmul.f32 %v6738_v1, %v6732_v17  ;;  %v6572_v17 = vld [vmem:[%s8680_s27 + $0x18] sm:$0xff]  }
0x15b5   :  { %v2579_v27 = vmul.f32 %v6740_v18, %v6730_v12  ;;  %v6571_v12 = vld [vmem:[%s8680_s27 + $0x10] sm:$0xff]  }
0x15b7   :  { %v2583_v46 = vpack.c.bf16 %v2580_v20, %v2579_v27 }
0x15b9   :  { %v2571_v5 = vpop.xlane.xlu0 %2570 }
0x15ba   :  { %6741 = vrcp.f32 %v2571_v5  ;;  %v5724_v5 = vld [vmem:[#allocation12] ss:$0 sm:$0xff] }
0x15bd   :  { %v2586_v29 = vpop.permute.xlu0 %2585  ;;  %v2574_v44 = vpop.xlane.xlu1 %2573 }
0x15be   :  { %6743 = vrcp.f32 %v2574_v44  ;;  %6177 = vmatpush3.bf16.msra.mxu1 %v2586_v29 }
0x15bf   :  { %6188 = vmatprep.subr.bf16.mxu1 %v6569_v6 }
0x15c1   :  { %v1062_v56 = vpop.permute.xlu0 %1061  ;;  %6179 = vmatmul.mubr.msk.bf16.vlgmr.msra.gmra.mrb[60].mxu1 %vm662_vm3, %v2583_v46  ;;  %v2633_v58 = vpop.permute.xlu1 %2632 }
0x15c2   :  { %1072 = vst.msk [vmem:[#allocation2 + $0x10] sm:$0xff] %vm1069_vm4, %v1062_v56  ;;  %6183 = vmatpush3.bf16.msra.mxu0 %v2633_v58  ;;  %6189 = vmatpush3.bf16.msra.mxu1 %v6569_v6  ;;  %v5731_v6 = vld [vmem:[#allocation14] ss:$0 sm:$0xff] }
0x15c3   :  { %6200 = vmatprep.subr.bf16.mxu0 %v7322_v8  ;;  %6190 = vmatprep.subr.bf16.mxu1 %v6570_v7 }
0x15c4   :  { %v6742_v33 = vpop.eup %6741 }
0x15c5   :  { %v1329_v13 = vpop.permute.xlu0 %1328  ;;  %v1058_v15 = vpop.permute.xlu1 %1057  ;;  %v2581_v51 = vmul.f32 %v6742_v33, %v6734_v36 }
0x15c6   :  { %1070 = vst.msk [vmem:[#allocation2] sm:$0xff] %vm1069_vm4, %v1058_v15  ;;  %6191 = vmatpush3.bf16.msra.mxu1 %v6570_v7 }
0x15c7   :  { %1341 = vst.msk [vmem:[#allocation2] sm:$0xff] %vm1340_vm5, %v1329_v13  ;;  %6192 = vmatprep.subr.bf16.mxu1 %v6571_v12 }
0x15c8   :  { %v6744_v35 = vpop.eup %6743 }
0x15c9   :  { %v2582_v53 = vmul.f32 %v6744_v35, %v6736_v39  ;;  %v1333_v19 = vpop.permute.xlu0 %1332  ;;  %v1060_v24 = vpop.permute.xlu1 %1059 }
0x15ca   :  { %1343 = vst.msk [vmem:[#allocation2 + $0x10] sm:$0xff] %vm1340_vm5, %v1333_v19  ;;  %6193 = vmatpush3.bf16.msra.mxu1 %v6571_v12 }
0x15cb   :  { %1071 = vst.msk [vmem:[#allocation2 + $0x8] sm:$0xff] %vm1069_vm4, %v1060_v24  ;;  %v2584_v42 = vpack.c.bf16 %v2582_v53, %v2581_v51  ;;  %6194 = vmatprep.subr.bf16.mxu1 %v6572_v17 }
0x15cd   :  { %v1600_v49 = vpop.permute.xlu0 %1599  ;;  %6185 = vmatmul.mubr.msk.bf16.vlgmr.msra.gmra.mrb[68].mxu0 %vm662_vm3, %v2584_v42  ;;  %v1064_v16 = vpop.permute.xlu1 %1063 }
0x15ce   :  { %1612 = vst.msk [vmem:[#allocation2] sm:$0xff] %vm1611_vm6, %v1600_v49  ;;  %6208 = vmatprep.mubr.msk.bf16.mxu0 %vm7323_vm1, %v7322_v8  ;;  %6195 = vmatpush3.bf16.msra.mxu1 %v6572_v17 }
0x15cf   :  { %1073 = vst.msk [vmem:[#allocation2 + $0x18] sm:$0xff] %vm1069_vm4, %v1064_v16 }
0x15d1   :  { %v1604_v23 = vpop.permute.xlu0 %1603  ;;  %v1331_v41 = vpop.permute.xlu1 %1330 }
0x15d2   :  { %1614 = vst.msk [vmem:[#allocation2 + $0x10] sm:$0xff] %vm1611_vm6, %v1604_v23 }
0x15d3   :  { %1342 = vst.msk [vmem:[#allocation2 + $0x8] sm:$0xff] %vm1340_vm5, %v1331_v41  ;;  %v6573_v41 = vld [vmem:[#allocation18] sm:$0xff]  }
0x15d4   :  { %6212 = vmatprep.subr.bf16.mxu1 %v6573_v41 }
0x15d5   :  { %v1871_v43 = vpop.permute.xlu0 %1870  ;;  %v1335_v47 = vpop.permute.xlu1 %1334 }
0x15d6   :  { %1883 = vst.msk [vmem:[#allocation2] sm:$0xff] %vm1882_vm7, %v1871_v43  ;;  %v6575_v43 = vld [vmem:[#allocation18 + $0x8] sm:$0xff]  }
0x15d7   :  { %1344 = vst.msk [vmem:[#allocation2 + $0x18] sm:$0xff] %vm1340_vm5, %v1335_v47  ;;  %v6574_v47 = vld [vmem:[%s8681_s17] sm:$0xff]  }
0x15d8   :  { %6201 = vmatpush3.bf16.msra.mxu0 %v6574_v47 }
0x15d9   :  { %v1875_v48 = vpop.permute.xlu0 %1874  ;;  %v1602_v50 = vpop.permute.xlu1 %1601  ;;  %6202 = vmatprep.subr.bf16.mxu0 %v7322_v8 }
0x15da   :  { %1885 = vst.msk [vmem:[#allocation2 + $0x10] sm:$0xff] %vm1882_vm7, %v1875_v48  ;;  %v6576_v48 = vld [vmem:[#allocation6] sm:$0xff]  }
0x15db   :  { %1613 = vst.msk [vmem:[#allocation2 + $0x8] sm:$0xff] %vm1611_vm6, %v1602_v50  ;;  %v6578_v50 = vld [vmem:[#allocation6 + $0x8] sm:$0xff]  }
0x15dd   :  { %v2142_v52 = vpop.permute.xlu0 %2141  ;;  %v1606_v54 = vpop.permute.xlu1 %1605 }
0x15de   :  { %2154 = vst.msk [vmem:[#allocation2] sm:$0xff] %vm2153_vm8, %v2142_v52  ;;  %v6577_v52 = vld [vmem:[%s8681_s17 + $0x8] sm:$0xff]  }
0x15df   :  { %1615 = vst.msk [vmem:[#allocation2 + $0x18] sm:$0xff] %vm1611_vm6, %v1606_v54  ;;  %6203 = vmatpush3.bf16.msra.mxu0 %v6577_v52  ;;  %v6579_v54 = vld [vmem:[%s8681_s17 + $0x10] sm:$0xff]  }
0x15e0   :  { %6204 = vmatprep.subr.bf16.mxu0 %v7322_v8 }
0x15e1   :  { %v2146_v55 = vpop.permute.xlu0 %2145  ;;  %v1873_v21 = vpop.permute.xlu1 %1872 }
0x15e2   :  { %2156 = vst.msk [vmem:[#allocation2 + $0x10] sm:$0xff] %vm2153_vm8, %v2146_v55  ;;  %v6580_v55 = vld [vmem:[%s8681_s17 + $0x18] sm:$0xff]  }
0x15e3   :  { %1884 = vst.msk [vmem:[#allocation2 + $0x8] sm:$0xff] %vm1882_vm7, %v1873_v21  ;;  %6205 = vmatpush3.bf16.msra.mxu0 %v6579_v54 }
0x15e4   :  { %6206 = vmatprep.subr.bf16.mxu0 %v7322_v8 }
0x15e5   :  { %v2413_v57 = vpop.permute.xlu0 %2412  ;;  %v1877_v31 = vpop.permute.xlu1 %1876 }
0x15e6   :  { %2425 = vst.msk [vmem:[#allocation2] sm:$0xff] %vm2424_vm9, %v2413_v57 }
0x15e7   :  { %1886 = vst.msk [vmem:[#allocation2 + $0x18] sm:$0xff] %vm1882_vm7, %v1877_v31  ;;  %6207 = vmatpush3.bf16.msra.mxu0 %v6580_v55 }
0x15e8   :  { %6220 = vmatprep.subr.bf16.mxu0 %v7322_v8 }
0x15e9   :  { %v2417_v45 = vpop.permute.xlu0 %2416  ;;  %v2144_v61 = vpop.permute.xlu1 %2143 }
0x15ea   :  { %2427 = vst.msk [vmem:[#allocation2 + $0x10] sm:$0xff] %vm2424_vm9, %v2417_v45 }
0x15eb   :  { %2155 = vst.msk [vmem:[#allocation2 + $0x8] sm:$0xff] %vm2153_vm8, %v2144_v61 }
0x15ed   :  { %v2148_v62 = vpop.permute.xlu1 %2147 }
0x15ee   :  { %2157 = vst.msk [vmem:[#allocation2 + $0x18] sm:$0xff] %vm2153_vm8, %v2148_v62 }
0x15f1   :  { %v2415_v63 = vpop.permute.xlu1 %2414 }
0x15f2   :  { %2426 = vst.msk [vmem:[#allocation2 + $0x8] sm:$0xff] %vm2424_vm9, %v2415_v63 }
0x15f5   :  { %v2419_v0 = vpop.permute.xlu1 %2418 }
0x15f6   :  { %2428 = vst.msk [vmem:[#allocation2 + $0x18] sm:$0xff] %vm2424_vm9, %v2419_v0 }
0x1694   :  { %v2625_v9 = vpop.f32.mrb[60].mxu1 }
0x1695   :  { %2683 = vrot.lane.b32.xlu0 %v2625_v9, %s7324_s19  ;;  %v6180_v10 = vpop.f32.mrb[61].mxu1 }
0x1696   :  { %v2628_v11 = vpop.f32.mrb[62].mxu1 }
0x1697   :  { %2685 = vrot.lane.b32.xlu1 %v2628_v11, %s7324_s19  ;;  %v6181_v14 = vpop.f32.mrb[63].mxu1  ;;  %v5732_v11 = vld [vmem:[#allocation15] ss:$0 sm:$0xff] }
0x16a0   :  { %v2672_v4 = vpop.f32.mrb[68].mxu0 }
0x16a1   :  { %2687 = vrot.lane.b32.xlu0 %v2672_v4, %s7324_s19  ;;  %v6186_v25 = vpop.f32.mrb[69].mxu0 }
0x16a2   :  { %v2675_v26 = vpop.f32.mrb[70].mxu0  ;;  %v5739_v25 = vld [vmem:[#allocation20] ss:$0 sm:$0xff] }
0x16a3   :  { %2689 = vrot.lane.b32.xlu1 %v2675_v26, %s7324_s19  ;;  %v6187_v28 = vpop.f32.mrb[71].mxu0 }
0x1707   :  { %v2684_v38 = vpop.permute.xlu0 %2683 }
0x1708   :  { %2696 = vst.msk [vmem:[#allocation2] sm:$0xff] %vm2695_vm10, %v2684_v38 }
0x1709   :  { %v2686_v30 = vpop.permute.xlu1 %2685 }
0x170a   :  { %2697 = vst.msk [vmem:[#allocation2 + $0x8] sm:$0xff] %vm2695_vm10, %v2686_v30 }
0x170f   :  { %v2700_v34 = vld [vmem:[#allocation2] sm:$0xff] }
0x1711   :  { %v2701_v36 = vld [vmem:[#allocation2 + $0x8] sm:$0xff] }
0x1712   :  { %v2704_v37 = vpack.c.bf16 %v2701_v36, %v2700_v34 }
0x1713   :  { %v2688_v39 = vpop.permute.xlu0 %2687 }
0x1714   :  { %2698 = vst.msk [vmem:[#allocation2 + $0x10] sm:$0xff] %vm2695_vm10, %v2688_v39  ;;  %6196 = vmatprep.mubr.msk.bf16.mxu1 %vm342_vm0, %v2704_v37 }
0x1715   :  { %v2690_v40 = vpop.permute.xlu1 %2689 }
0x1716   :  { %2699 = vst.msk [vmem:[#allocation2 + $0x18] sm:$0xff] %vm2695_vm10, %v2690_v40 }
0x171b   :  { %v2702_v22 = vld [vmem:[#allocation2 + $0x10] sm:$0xff] }
0x171d   :  { %v2703_v32 = vld [vmem:[#allocation2 + $0x18] sm:$0xff] }
0x171e   :  { %v2705_v1 = vpack.c.bf16 %v2703_v32, %v2702_v22 }
0x1720   :  { %6197 = vmatmul.mubr.msk.bf16.vlgmr.msra.gmra.mrb[64].mxu1 %vm342_vm0, %v2705_v1 }
0x1721   :  { %6213 = vmatpush3.bf16.msra.mxu1 %v6573_v41  ;;  %6216 = vmatprep.mubr.msk.bf16.mxu1 %vm2999_vm11, %v6576_v48 }
0x1722   :  { %6214 = vmatprep.subr.bf16.mxu1 %v6575_v43 }
0x1725   :  { %6215 = vmatpush3.bf16.msra.mxu1 %v6575_v43 }
0x1726   :  { %6226 = vmatprep.subr.bf16.mxu1 %v7322_v8 }
0x1728   :  { %6217 = vmatmul.mubr.msk.bf16.vlgmr.msra.gmra.mrb[68].mxu1 %vm2999_vm11, %v6578_v50 }
0x1729   :  { %6228 = vmatprep.mubr.msk.bf16.mxu1 %vm7323_vm1, %v7322_v8 }
0x17f3   :  { %v6198_v18 = vpop.f32.mrb[64].mxu1 }
0x17f4   :  { %v2794_v20 = vadd.f32 %v6198_v18, %v5724_v5  ;;  %v2785_v27 = vpop.f32.mrb[65].mxu1 }
0x17f5   :  { %v2786_v29 = vadd.f32 %v5724_v5, %v2785_v27  ;;  %v6199_v44 = vpop.f32.mrb[66].mxu1 }
0x17f6   :  { %v2802_v46 = vadd.f32 %v2794_v20, %v7613_v3  ;;  %v8108_v56 = vadd.f32 %v6199_v44, %v5724_v5  ;;  %v2788_v58 = vpop.f32.mrb[67].mxu1 }
0x17f7   :  { %v2800_v13 = vadd.f32 %v2786_v29, %v7603_v59  ;;  %v8111_v15 = vadd.f32 %v5724_v5, %v2788_v58  ;;  %v5733_v5 = vld [vmem:[#allocation17] ss:$0 sm:$0xff] }
0x17f8   :  { %v2812_v33 = vsel %vm342_vm0, %v2802_v46, 0.0 }
0x17f9   :  { %2813 = vadd.xlane.f32.xlu1 %v2812_v33  ;;  %v2806_v35 = vsel %vm342_vm0, %v2800_v13, 0.0 }
0x17fa   :  { %2807 = vadd.xlane.f32.xlu0 %v2806_v35 }
0x17fb   :  { %v6218_v26 = vpop.f32.mrb[68].mxu1 }
0x17fc   :  { %v3049_v28 = vadd.f32 %v6218_v26, %v5739_v25  ;;  %v3040_v38 = vpop.f32.mrb[69].mxu1 }
0x17fd   :  { %v3041_v30 = vadd.f32 %v5739_v25, %v3040_v38  ;;  %v6219_v34 = vpop.f32.mrb[70].mxu1 }
0x17fe   :  { %v3052_v36 = vadd.f32 %v6219_v34, %v5739_v25  ;;  %v3043_v37 = vpop.f32.mrb[71].mxu1 }
0x17ff   :  { %v3044_v39 = vadd.f32 %v5739_v25, %v3043_v37 }
0x1800   :  { %v8137_v40 = vpack.c.bf16 %v3052_v36, %v3049_v28 }
0x1801   :  { %v8139_v22 = vpack.c.bf16 %v3044_v39, %v3041_v30 }
0x1802   :  { %v3109_v1 = vsel %vm544_vm2, %v8137_v40, 0 }
0x1803   :  { %v3063_v32 = vsel %vm544_vm2, %v8139_v22, 0  ;;  %6227 = vmatpush3.bf16.xpose.msra.mxu1 %v3109_v1 }
0x1804   :  { %6238 = vmatprep.subr.bf16.mxu1 %v7322_v8 }
0x1886   :  { %v2814_v51 = vpop.xlane.xlu1 %2813 }
0x1887   :  { %v2820_v53 = vmul.f32 0.015625, %v2814_v51  ;;  %v2808_v19 = vpop.xlane.xlu0 %2807 }
0x1888   :  { %v2818_v24 = vmul.f32 0.015625, %v2808_v19 }
0x1889   :  { %v2824_v42 = vsub.f32 %v2802_v46, %v2820_v53 }
0x188a   :  { %v2822_v3 = vsub.f32 %v2800_v13, %v2818_v24  ;;  %v8159_v24 = vld [vmem:[#allocation3] ss:$0 sm:$0xff] }
0x188b   :  { %v2828_v23 = vmul.f32 %v2824_v42, %v2824_v42 }
0x188c   :  { %v2826_v49 = vmul.f32 %v2822_v3, %v2822_v3 }
0x188d   :  { %v2836_v59 = vsel %vm342_vm0, %v2828_v23, 0.0 }
0x188e   :  { %v2830_v16 = vsel %vm342_vm0, %v2826_v49, 0.0 }
0x188f   :  { %2831 = vadd.xlane.f32.xlu0 %v2830_v16 }
0x1893   :  { %2837 = vadd.xlane.f32.xlu0 %v2836_v59  ;;  %v8162_v59 = vld [vmem:[#allocation3 + $0x1] ss:$0 sm:$0xff] }
0x191c   :  { %v2832_v21 = vpop.xlane.xlu0 %2831 }
0x191d   :  { %v2842_v57 = vmul.f32 0.015625, %v2832_v21 }
0x191f   :  { %v2846_v31 = vadd.f32 1e-12, %v2842_v57 }
0x1920   :  { %v2838_v45 = vpop.xlane.xlu0 %2837 }
0x1921   :  { %6745 = vrsqrt.f32 %v2846_v31  ;;  %v2844_v61 = vmul.f32 0.015625, %v2838_v45 }
0x1923   :  { %v2848_v62 = vadd.f32 1e-12, %v2844_v61 }
0x1925   :  { %6747 = vrsqrt.f32 %v2848_v62 }
0x192b   :  { %v6746_v63 = vpop.eup %6745 }
0x192c   :  { %v2854_v0 = vmul.f32 %v6746_v63, %v2822_v3 }
0x192e   :  { %v2864_v9 = vmul.f32 %v5731_v6, %v2854_v0 }
0x192f   :  { %v6748_v7 = vpop.eup %6747 }
0x1930   :  { %v2856_v10 = vmul.f32 %v6748_v7, %v2824_v42  ;;  %v8128_v14 = vadd.f32 %v5732_v11, %v2864_v9 }
0x1932   :  { %v2866_v12 = vmul.f32 %v5731_v6, %v2856_v10 }
0x1934   :  { %v8130_v17 = vadd.f32 %v5732_v11, %v2866_v12 }
0x1936   :  { %v2882_v4 = vpack.c.bf16 %v8130_v17, %v8128_v14 }
0x1938   :  { %6209 = vmatmul.mubr.msk.bf16.vlgmr.msra.gmra.mrb[72].mxu0 %vm342_vm0, %v2882_v4 }
0x1939   :  { %6222 = vmatprep.mubr.msk.bf16.mxu0 %vm7323_vm1, %v7322_v8  ;;  %6221 = vmatpush3.bf16.xpose.msra.mxu0 %v3063_v32 }
0x193a   :  { %6232 = vmatprep.subr.bf16.mxu0 %v7322_v8 }
0x1a0b   :  { %v2959_v18 = vpop.f32.mrb[72].mxu0 }
0x1a0c   :  { %v2960_v20 = vadd.f32 %v5733_v5, %v2959_v18  ;;  %v6210_v27 = vpop.f32.mrb[73].mxu0 }
0x1a0d   :  { %v2962_v29 = vpop.f32.mrb[74].mxu0 }
0x1a0e   :  { %v8147_v44 = vpack.c.bf16 %v2960_v20, %v2960_v20  ;;  %v2963_v46 = vadd.f32 %v5733_v5, %v2962_v29  ;;  %v6211_v58 = vpop.f32.mrb[75].mxu0 }
0x1a10   :  { %v8149_v13 = vpack.c.bf16 %v2963_v46, %v2963_v46  ;;  %6223 = vmatmul.mubr.msk.bf16.vlgmr.msra.gmra.mrb[76].mxu0 %vm544_vm2, %v8147_v44 }
0x1a11   :  { %6234 = vmatprep.mubr.msk.bf16.mxu0 %vm7323_vm1, %v7322_v8 }
0x1a12   :  { %6229 = vmatmul.mubr.msk.bf16.vlgmr.msra.gmra.mrb[72].mxu1 %vm544_vm2, %v8149_v13 }
0x1a13   :  { %6240 = vmatprep.mubr.msk.bf16.mxu1 %vm7323_vm1, %v7322_v8 }
0x1ae3   :  { %v3099_v33 = vpop.f32.mrb[76].mxu0 }
0x1ae4   :  { %v3151_v35 = vmul.f32 0.35355338, %v3099_v33  ;;  %v6224_v51 = vpop.f32.mrb[77].mxu0 }
0x1ae5   :  { %v3102_v53 = vpop.f32.mrb[78].mxu0  ;;  %v3145_v19 = vpop.f32.mrb[72].mxu1 }
0x1ae6   :  { %v3153_v42 = vadd.f32 %v8159_v24, %v3151_v35  ;;  %v3152_v3 = vmul.f32 0.35355338, %v3145_v19  ;;  %v6225_v49 = vpop.f32.mrb[79].mxu0  ;;  %v6230_v16 = vpop.f32.mrb[73].mxu1 }
0x1ae7   :  { %v3148_v23 = vpop.f32.mrb[74].mxu1 }
0x1ae8   :  { %v3154_v41 = vadd.f32 %v8162_v59, %v3152_v3  ;;  %v6231_v43 = vpop.f32.mrb[75].mxu1  ;;  %v3155_v47 = vsel %vm662_vm3, %v3153_v42, -inf }
0x1ae9   :  { %3156 = vmax.xlane.f32.xlu0 %v3155_v47 }
0x1aea   :  { %v3158_v48 = vsel %vm662_vm3, %v3154_v41, -inf }
0x1aeb   :  { %3159 = vmax.xlane.f32.xlu1 %v3158_v48 }
0x1afc   :  { %3227 = vrot.lane.b32.xlu1 %v8137_v40, %s7301_s28 }
0x1b00   :  { %3278 = vrot.lane.b32.xlu1 %v8139_v22, %s7325_s18 }
0x1b76   :  { %v3157_v50 = vpop.xlane.xlu0 %3156 }
0x1b77   :  { %v3161_v52 = vsub.f32 %v3153_v42, %v3157_v50 }
0x1b78   :  { %v3160_v54 = vpop.xlane.xlu1 %3159 }
0x1b79   :  { %v3163_v55 = vmul.f32 1.442695, %v3161_v52  ;;  %v3162_v21 = vsub.f32 %v3154_v41, %v3160_v54 }
0x1b7b   :  { %6749 = vpow2.f32 %v3163_v55  ;;  %v3165_v57 = vmul.f32 1.442695, %v3162_v21 }
0x1b7c   :  { %v3228_v31 = vpop.permute.xlu1 %3227 }
0x1b7d   :  { %6751 = vpow2.f32 %v3165_v57  ;;  %6239 = vmatpush3.bf16.msra.mxu1 %v3228_v31 }
0x1b7e   :  { %6250 = vmatprep.subr.bf16.mxu1 %v7322_v8 }
0x1b80   :  { %v3279_v0 = vpop.permute.xlu1 %3278 }
0x1b81   :  { %v3284_v28 = vsel %vm544_vm2, %v3279_v0, 0 }
0x1b85   :  { %v6750_v45 = vpop.eup %6749 }
0x1b86   :  { %v3167_v61 = vsel %vm662_vm3, %v6750_v45, 0.0 }
0x1b87   :  { %v6752_v62 = vpop.eup %6751  ;;  %3168 = vadd.xlane.f32.xlu0 %v3167_v61 }
0x1b88   :  { %v3170_v63 = vsel %vm662_vm3, %v6752_v62, 0.0 }
0x1b89   :  { %3171 = vadd.xlane.f32.xlu1 %v3170_v63 }
0x1b9a   :  { %3329 = vrot.lane.b32.xlu1 %v8137_v40, %s7325_s18 }
0x1b9d   :  { %3180 = vrot.lane.b32.xlu0 %v8139_v22, %s7301_s28 }
0x1b9e   :  { %3327 = vrot.lane.b32.xlu1 %v8149_v13, %s7325_s18 }
0x1ba1   :  { %3276 = vrot.lane.b32.xlu0 %v8147_v44, %s7325_s18 }
0x1c14   :  { %v3169_v6 = vpop.xlane.xlu0 %3168 }
0x1c15   :  { %6753 = vrcp.f32 %v3169_v6 }
0x1c16   :  { %v3172_v7 = vpop.xlane.xlu1 %3171 }
0x1c17   :  { %6755 = vrcp.f32 %v3172_v7 }
0x1c18   :  { %v3181_v9 = vpop.permute.xlu0 %3180 }
0x1c19   :  { %6233 = vmatpush3.bf16.msra.mxu0 %v3181_v9 }
0x1c1a   :  { %6244 = vmatprep.subr.bf16.mxu0 %v7322_v8  ;;  %v3330_v26 = vpop.permute.xlu1 %3329 }
0x1c1b   :  { %v3335_v30 = vsel %vm544_vm2, %v3330_v26, 0 }
0x1c1c   :  { %v3277_v34 = vpop.permute.xlu0 %3276 }
0x1c1e   :  { %v3328_v36 = vpop.permute.xlu1 %3327 }
0x1c1f   :  { %v6754_v10 = vpop.eup %6753 }
0x1c20   :  { %v3175_v11 = vmul.f32 %v6754_v10, %v6750_v45 }
0x1c21   :  { %v6756_v12 = vpop.eup %6755 }
0x1c22   :  { %v3177_v4 = vpack.c.bf16 %v3175_v11, %v3175_v11  ;;  %v3176_v25 = vmul.f32 %v6756_v12, %v6752_v62 }
0x1c24   :  { %6235 = vmatmul.mubr.msk.bf16.vlgmr.msra.gmra.mrb[80].mxu0 %vm662_vm3, %v3177_v4  ;;  %v3178_v38 = vpack.c.bf16 %v3176_v25, %v3176_v25 }
0x1c25   :  { %6245 = vmatpush3.bf16.xpose.msra.mxu0 %v3284_v28  ;;  %6246 = vmatprep.mubr.msk.bf16.mxu0 %vm7323_vm1, %v7322_v8 }
0x1c26   :  { %6241 = vmatmul.mubr.msk.bf16.vlgmr.msra.gmra.mrb[76].mxu1 %vm662_vm3, %v3178_v38  ;;  %6256 = vmatprep.subr.bf16.mxu0 %v7322_v8 }
0x1c27   :  { %6251 = vmatpush3.bf16.xpose.msra.mxu1 %v3335_v30  ;;  %6252 = vmatprep.mubr.msk.bf16.mxu1 %vm7323_vm1, %v7322_v8 }
0x1c28   :  { %6262 = vmatprep.subr.bf16.mxu1 %v7322_v8 }
0x1c2c   :  { %6247 = vmatmul.mubr.msk.bf16.vlgmr.msra.gmra.mrb[84].mxu0 %vm544_vm2, %v3277_v34 }
0x1c2d   :  { %6258 = vmatprep.mubr.msk.bf16.mxu0 %vm7323_vm1, %v7322_v8 }
0x1c2e   :  { %6253 = vmatmul.mubr.msk.bf16.vlgmr.msra.gmra.mrb[80].mxu1 %vm544_vm2, %v3328_v36 }
0x1c2f   :  { %6264 = vmatprep.mubr.msk.bf16.mxu1 %vm7323_vm1, %v7322_v8 }
0x1cf7   :  { %v3220_v37 = vpop.f32.mrb[80].mxu0 }
0x1cf8   :  { %3273 = vst.msk [vmem:[#allocation2] sm:$0xff] %vm544_vm2, %v3220_v37  ;;  %v6236_v39 = vpop.f32.mrb[81].mxu0 }
0x1cf9   :  { %v3223_v32 = vpop.f32.mrb[82].mxu0  ;;  %v3267_v1 = vpop.f32.mrb[76].mxu1 }
0x1cfa   :  { %3274 = vst.msk [vmem:[#allocation2 + $0x10] sm:$0xff] %vm544_vm2, %v3267_v1  ;;  %v6237_v5 = vpop.f32.mrb[83].mxu0  ;;  %v6242_v18 = vpop.f32.mrb[77].mxu1 }
0x1cfb   :  { %v3270_v20 = vpop.f32.mrb[78].mxu1 }
0x1cfc   :  { %v6243_v27 = vpop.f32.mrb[79].mxu1 }
0x1cff   :  { %v3320_v29 = vpop.f32.mrb[84].mxu0 }
0x1d00   :  { %v3377_v46 = vmul.f32 0.35355338, %v3320_v29  ;;  %v6248_v58 = vpop.f32.mrb[85].mxu0 }
0x1d01   :  { %v3323_v33 = vpop.f32.mrb[86].mxu0  ;;  %v3371_v35 = vpop.f32.mrb[80].mxu1 }
0x1d02   :  { %v3379_v51 = vadd.f32 %v8159_v24, %v3377_v46  ;;  %v3378_v53 = vmul.f32 0.35355338, %v3371_v35  ;;  %v6249_v19 = vpop.f32.mrb[87].mxu0  ;;  %v6254_v42 = vpop.f32.mrb[81].mxu1 }
0x1d03   :  { %v3374_v3 = vpop.f32.mrb[82].mxu1 }
0x1d04   :  { %v3380_v49 = vadd.f32 %v8162_v59, %v3378_v53  ;;  %v6255_v16 = vpop.f32.mrb[83].mxu1  ;;  %v3381_v23 = vsel %vm662_vm3, %v3379_v51, -inf }
0x1d05   :  { %3382 = vmax.xlane.f32.xlu0 %v3381_v23 }
0x1d06   :  { %v3384_v41 = vsel %vm662_vm3, %v3380_v49, -inf }
0x1d07   :  { %3385 = vmax.xlane.f32.xlu1 %v3384_v41 }
0x1d18   :  { %3451 = vrot.lane.b32.xlu1 %v8137_v40, %s7324_s19 }
0x1d1c   :  { %3509 = vrot.lane.b32.xlu1 %v8139_v22, %s7327_s13 }
0x1d20   :  { %3559 = vrot.lane.b32.xlu1 %v8137_v40, %s7327_s13 }
0x1d24   :  { %3557 = vrot.lane.b32.xlu1 %v8149_v13, %s7327_s13 }
0x1d92   :  { %v3383_v43 = vpop.xlane.xlu0 %3382 }
0x1d93   :  { %v3387_v47 = vsub.f32 %v3379_v51, %v3383_v43 }
0x1d94   :  { %v3386_v48 = vpop.xlane.xlu1 %3385 }
0x1d95   :  { %v3389_v50 = vmul.f32 1.442695, %v3387_v47  ;;  %v3388_v52 = vsub.f32 %v3380_v49, %v3386_v48 }
0x1d97   :  { %6757 = vpow2.f32 %v3389_v50  ;;  %v3391_v54 = vmul.f32 1.442695, %v3388_v52 }
0x1d98   :  { %v3452_v55 = vpop.permute.xlu1 %3451 }
0x1d99   :  { %6759 = vpow2.f32 %v3391_v54  ;;  %6263 = vmatpush3.bf16.msra.mxu1 %v3452_v55 }
0x1d9a   :  { %6274 = vmatprep.subr.bf16.mxu1 %v7322_v8 }
0x1d9c   :  { %v3510_v6 = vpop.permute.xlu1 %3509 }
0x1d9d   :  { %v3515_v12 = vsel %vm544_vm2, %v3510_v6, 0 }
0x1da0   :  { %v3560_v4 = vpop.permute.xlu1 %3559 }
0x1da1   :  { %v6758_v21 = vpop.eup %6757  ;;  %v3565_v26 = vsel %vm544_vm2, %v3560_v4, 0 }
0x1da2   :  { %v3393_v57 = vsel %vm662_vm3, %v6758_v21, 0.0 }
0x1da3   :  { %v6760_v31 = vpop.eup %6759  ;;  %3394 = vadd.xlane.f32.xlu0 %v3393_v57 }
0x1da4   :  { %v3396_v45 = vsel %vm662_vm3, %v6760_v31, 0.0  ;;  %v3558_v38 = vpop.permute.xlu1 %3557 }
0x1da7   :  { %3397 = vadd.xlane.f32.xlu0 %v3396_v45 }
0x1dbd   :  { %3405 = vrot.lane.b32.xlu0 %v8139_v22, %s7324_s19 }
0x1dc1   :  { %3507 = vrot.lane.b32.xlu0 %v8147_v44, %s7327_s13 }
0x1e30   :  { %v3395_v61 = vpop.xlane.xlu0 %3394 }
0x1e31   :  { %6761 = vrcp.f32 %v3395_v61 }
0x1e34   :  { %v3398_v62 = vpop.xlane.xlu0 %3397 }
0x1e35   :  { %6763 = vrcp.f32 %v3398_v62 }
0x1e38   :  { %v3406_v63 = vpop.permute.xlu0 %3405 }
0x1e39   :  { %6257 = vmatpush3.bf16.msra.mxu0 %v3406_v63 }
0x1e3a   :  { %6268 = vmatprep.subr.bf16.mxu0 %v7322_v8 }
0x1e3b   :  { %v6762_v0 = vpop.eup %6761 }
0x1e3c   :  { %v3401_v7 = vmul.f32 %v6762_v0, %v6758_v21  ;;  %v3508_v28 = vpop.permute.xlu0 %3507 }
0x1e3e   :  { %v3403_v9 = vpack.c.bf16 %v3401_v7, %v3401_v7 }
0x1e3f   :  { %v6764_v10 = vpop.eup %6763 }
0x1e40   :  { %v3402_v11 = vmul.f32 %v6764_v10, %v6760_v31  ;;  %6259 = vmatmul.mubr.msk.bf16.vlgmr.msra.gmra.mrb[88].mxu0 %vm662_vm3, %v3403_v9 }
0x1e41   :  { %6270 = vmatprep.mubr.msk.bf16.mxu0 %vm7323_vm1, %v7322_v8 }
0x1e42   :  { %6269 = vmatpush3.bf16.xpose.msra.mxu0 %v3515_v12  ;;  %v3404_v25 = vpack.c.bf16 %v3402_v11, %v3402_v11 }
0x1e43   :  { %6280 = vmatprep.subr.bf16.mxu0 %v7322_v8 }
0x1e44   :  { %6265 = vmatmul.mubr.msk.bf16.vlgmr.msra.gmra.mrb[84].mxu1 %vm662_vm3, %v3404_v25 }
0x1e45   :  { %6275 = vmatpush3.bf16.xpose.msra.mxu1 %v3565_v26  ;;  %6276 = vmatprep.mubr.msk.bf16.mxu1 %vm7323_vm1, %v7322_v8 }
0x1e46   :  { %6286 = vmatprep.subr.bf16.mxu1 %v7322_v8 }
0x1e49   :  { %6271 = vmatmul.mubr.msk.bf16.vlgmr.msra.gmra.mrb[92].mxu0 %vm544_vm2, %v3508_v28 }
0x1e4a   :  { %6282 = vmatprep.mubr.msk.bf16.mxu0 %vm7323_vm1, %v7322_v8 }
0x1e4c   :  { %6277 = vmatmul.mubr.msk.bf16.vlgmr.msra.gmra.mrb[88].mxu1 %vm544_vm2, %v3558_v38 }
0x1e4d   :  { %6288 = vmatprep.mubr.msk.bf16.mxu1 %vm7323_vm1, %v7322_v8 }
0x1f13   :  { %v8237_v30 = vpop.f32.mrb[88].mxu0 }
0x1f14   :  { %v6260_v34 = vpop.f32.mrb[89].mxu0 }
0x1f15   :  { %v3448_v36 = vpop.f32.mrb[90].mxu0 }
0x1f16   :  { %v6261_v37 = vpop.f32.mrb[91].mxu0 }
0x1f17   :  { %v8239_v39 = vpop.f32.mrb[84].mxu1 }
0x1f18   :  { %v6266_v32 = vpop.f32.mrb[85].mxu1 }
0x1f19   :  { %v3494_v1 = vpop.f32.mrb[86].mxu1 }
0x1f1a   :  { %v6267_v5 = vpop.f32.mrb[87].mxu1 }
0x1f1c   :  { %v3551_v18 = vpop.f32.mrb[92].mxu0 }
0x1f1d   :  { %v3607_v20 = vmul.f32 0.35355338, %v3551_v18  ;;  %v6272_v27 = vpop.f32.mrb[93].mxu0 }
0x1f1e   :  { %v3554_v29 = vpop.f32.mrb[94].mxu0 }
0x1f1f   :  { %v3609_v46 = vadd.f32 %v8159_v24, %v3607_v20  ;;  %v6273_v58 = vpop.f32.mrb[95].mxu0  ;;  %v3601_v33 = vpop.f32.mrb[88].mxu1 }
0x1f20   :  { %v3608_v35 = vmul.f32 0.35355338, %v3601_v33  ;;  %v6278_v51 = vpop.f32.mrb[89].mxu1 }
0x1f21   :  { %v3604_v53 = vpop.f32.mrb[90].mxu1  ;;  %v3611_v19 = vsel %vm662_vm3, %v3609_v46, -inf }
0x1f22   :  { %v3610_v42 = vadd.f32 %v8162_v59, %v3608_v35  ;;  %v6279_v3 = vpop.f32.mrb[91].mxu1  ;;  %3612 = vmax.xlane.f32.xlu0 %v3611_v19 }
0x1f24   :  { %v3614_v49 = vsel %vm662_vm3, %v3610_v42, -inf }
0x1f25   :  { %3615 = vmax.xlane.f32.xlu1 %v3614_v49 }
0x1f36   :  { %3681 = vrot.lane.b32.xlu1 %v8137_v40, %s7326_s3 }
0x1f3a   :  { %3739 = vrot.lane.b32.xlu1 %v8139_v22, %s7329_s23 }
0x1f3e   :  { %3789 = vrot.lane.b32.xlu1 %v8137_v40, %s7329_s23 }
0x1f42   :  { %3787 = vrot.lane.b32.xlu1 %v8149_v13, %s7329_s23 }
0x1faf   :  { %v3613_v16 = vpop.xlane.xlu0 %3612 }
0x1fb0   :  { %v3617_v23 = vsub.f32 %v3609_v46, %v3613_v16 }
0x1fb2   :  { %v3619_v41 = vmul.f32 1.442695, %v3617_v23  ;;  %v3616_v43 = vpop.xlane.xlu1 %3615 }
0x1fb3   :  { %v3618_v47 = vsub.f32 %v3610_v42, %v3616_v43 }
0x1fb4   :  { %6765 = vpow2.f32 %v3619_v41 }
0x1fb5   :  { %v3621_v48 = vmul.f32 1.442695, %v3618_v47 }
0x1fb6   :  { %v3682_v50 = vpop.permute.xlu1 %3681 }
0x1fb7   :  { %6767 = vpow2.f32 %v3621_v48  ;;  %6287 = vmatpush3.bf16.msra.mxu1 %v3682_v50 }
0x1fb8   :  { %6298 = vmatprep.subr.bf16.mxu1 %v7322_v8 }
0x1fba   :  { %v3740_v62 = vpop.permute.xlu1 %3739 }
0x1fbb   :  { %v3745_v9 = vsel %vm544_vm2, %v3740_v62, 0 }
0x1fbe   :  { %v6766_v52 = vpop.eup %6765  ;;  %v3790_v10 = vpop.permute.xlu1 %3789 }
0x1fbf   :  { %v3623_v54 = vsel %vm662_vm3, %v6766_v52, 0.0  ;;  %v3795_v12 = vsel %vm544_vm2, %v3790_v10, 0 }
0x1fc0   :  { %3624 = vadd.xlane.f32.xlu0 %v3623_v54 }
0x1fc1   :  { %v6768_v55 = vpop.eup %6767 }
0x1fc2   :  { %v3626_v21 = vsel %vm662_vm3, %v6768_v55, 0.0  ;;  %v3788_v25 = vpop.permute.xlu1 %3787 }
0x1fc4   :  { %3627 = vadd.xlane.f32.xlu0 %v3626_v21 }
0x1fda   :  { %3635 = vrot.lane.b32.xlu0 %v8139_v22, %s7326_s3 }
0x1fde   :  { %3737 = vrot.lane.b32.xlu0 %v8147_v44, %s7329_s23 }
0x204d   :  { %v3625_v57 = vpop.xlane.xlu0 %3624 }
0x204e   :  { %6769 = vrcp.f32 %v3625_v57 }
0x2051   :  { %v3628_v31 = vpop.xlane.xlu0 %3627 }
0x2052   :  { %6771 = vrcp.f32 %v3628_v31 }
0x2055   :  { %v3636_v45 = vpop.permute.xlu0 %3635 }
0x2056   :  { %6281 = vmatpush3.bf16.msra.mxu0 %v3636_v45 }
0x2057   :  { %6292 = vmatprep.subr.bf16.mxu0 %v7322_v8 }
0x2058   :  { %v6770_v61 = vpop.eup %6769 }
0x2059   :  { %v3631_v63 = vmul.f32 %v6770_v61, %v6766_v52  ;;  %v3738_v4 = vpop.permute.xlu0 %3737 }
0x205b   :  { %v3633_v0 = vpack.c.bf16 %v3631_v63, %v3631_v63 }
0x205c   :  { %v6772_v6 = vpop.eup %6771 }
0x205d   :  { %v3632_v7 = vmul.f32 %v6772_v6, %v6768_v55  ;;  %6283 = vmatmul.mubr.msk.bf16.vlgmr.msra.gmra.mrb[96].mxu0 %vm662_vm3, %v3633_v0 }
0x205e   :  { %6294 = vmatprep.mubr.msk.bf16.mxu0 %vm7323_vm1, %v7322_v8 }
0x205f   :  { %6293 = vmatpush3.bf16.xpose.msra.mxu0 %v3745_v9  ;;  %v3634_v11 = vpack.c.bf16 %v3632_v7, %v3632_v7 }
0x2060   :  { %6304 = vmatprep.subr.bf16.mxu0 %v7322_v8 }
0x2061   :  { %6289 = vmatmul.mubr.msk.bf16.vlgmr.msra.gmra.mrb[92].mxu1 %vm662_vm3, %v3634_v11 }
0x2062   :  { %6299 = vmatpush3.bf16.xpose.msra.mxu1 %v3795_v12  ;;  %6300 = vmatprep.mubr.msk.bf16.mxu1 %vm7323_vm1, %v7322_v8 }
0x2063   :  { %6310 = vmatprep.subr.bf16.mxu1 %v7322_v8 }
0x2066   :  { %6295 = vmatmul.mubr.msk.bf16.vlgmr.msra.gmra.mrb[100].mxu0 %vm544_vm2, %v3738_v4 }
0x2067   :  { %6306 = vmatprep.mubr.msk.bf16.mxu0 %vm7323_vm1, %v7322_v8 }
0x2069   :  { %6301 = vmatmul.mubr.msk.bf16.vlgmr.msra.gmra.mrb[96].mxu1 %vm544_vm2, %v3788_v25 }
0x206a   :  { %6312 = vmatprep.mubr.msk.bf16.mxu1 %vm7323_vm1, %v7322_v8 }
0x2130   :  { %v8277_v26 = vpop.f32.mrb[96].mxu0 }
0x2131   :  { %v6284_v28 = vpop.f32.mrb[97].mxu0 }
0x2132   :  { %v3678_v38 = vpop.f32.mrb[98].mxu0 }
0x2133   :  { %v6285_v34 = vpop.f32.mrb[99].mxu0 }
0x2134   :  { %v8279_v36 = vpop.f32.mrb[92].mxu1 }
0x2135   :  { %v6290_v37 = vpop.f32.mrb[93].mxu1 }
0x2136   :  { %v3724_v32 = vpop.f32.mrb[94].mxu1 }
0x2137   :  { %v6291_v1 = vpop.f32.mrb[95].mxu1 }
0x2139   :  { %v3781_v5 = vpop.f32.mrb[100].mxu0 }
0x213a   :  { %v3837_v18 = vmul.f32 0.35355338, %v3781_v5  ;;  %v6296_v20 = vpop.f32.mrb[101].mxu0 }
0x213b   :  { %v3784_v27 = vpop.f32.mrb[102].mxu0 }
0x213c   :  { %v3839_v29 = vadd.f32 %v8159_v24, %v3837_v18  ;;  %v6297_v46 = vpop.f32.mrb[103].mxu0  ;;  %v3831_v58 = vpop.f32.mrb[96].mxu1 }
0x213d   :  { %v3838_v33 = vmul.f32 0.35355338, %v3831_v58  ;;  %v6302_v35 = vpop.f32.mrb[97].mxu1 }
0x213e   :  { %v3834_v51 = vpop.f32.mrb[98].mxu1  ;;  %v3841_v53 = vsel %vm662_vm3, %v3839_v29, -inf }
0x213f   :  { %v3840_v19 = vadd.f32 %v8162_v59, %v3838_v33  ;;  %v6303_v42 = vpop.f32.mrb[99].mxu1  ;;  %3842 = vmax.xlane.f32.xlu0 %v3841_v53 }
0x2141   :  { %v3844_v3 = vsel %vm662_vm3, %v3840_v19, -inf }
0x2142   :  { %3845 = vmax.xlane.f32.xlu1 %v3844_v3 }
0x2153   :  { %3911 = vrot.lane.b32.xlu1 %v8137_v40, %s7328_s22 }
0x2157   :  { %3969 = vrot.lane.b32.xlu1 %v8139_v22, %s7331_s21 }
0x215b   :  { %4019 = vrot.lane.b32.xlu1 %v8137_v40, %s7331_s21 }
0x215f   :  { %4017 = vrot.lane.b32.xlu1 %v8149_v13, %s7331_s21 }
0x21cc   :  { %v3843_v49 = vpop.xlane.xlu0 %3842 }
0x21cd   :  { %v3847_v16 = vsub.f32 %v3839_v29, %v3843_v49 }
0x21cf   :  { %v3849_v23 = vmul.f32 1.442695, %v3847_v16  ;;  %v3846_v41 = vpop.xlane.xlu1 %3845 }
0x21d0   :  { %v3848_v43 = vsub.f32 %v3840_v19, %v3846_v41 }
0x21d1   :  { %6773 = vpow2.f32 %v3849_v23 }
0x21d2   :  { %v3851_v47 = vmul.f32 1.442695, %v3848_v43 }
0x21d3   :  { %v3912_v48 = vpop.permute.xlu1 %3911 }
0x21d4   :  { %6775 = vpow2.f32 %v3851_v47  ;;  %6311 = vmatpush3.bf16.msra.mxu1 %v3912_v48 }
0x21d5   :  { %6322 = vmatprep.subr.bf16.mxu1 %v7322_v8 }
0x21d7   :  { %v3970_v61 = vpop.permute.xlu1 %3969 }
0x21d8   :  { %v3975_v7 = vsel %vm544_vm2, %v3970_v61, 0 }
0x21db   :  { %v6774_v50 = vpop.eup %6773  ;;  %v4020_v9 = vpop.permute.xlu1 %4019 }
0x21dc   :  { %v3853_v52 = vsel %vm662_vm3, %v6774_v50, 0.0  ;;  %v4025_v11 = vsel %vm544_vm2, %v4020_v9, 0 }
0x21dd   :  { %3854 = vadd.xlane.f32.xlu0 %v3853_v52 }
0x21de   :  { %v6776_v54 = vpop.eup %6775 }
0x21df   :  { %v3856_v55 = vsel %vm662_vm3, %v6776_v54, 0.0  ;;  %v4018_v4 = vpop.permute.xlu1 %4017 }
0x21e1   :  { %3857 = vadd.xlane.f32.xlu0 %v3856_v55 }
0x21f7   :  { %3865 = vrot.lane.b32.xlu0 %v8139_v22, %s7328_s22 }
0x21fb   :  { %3967 = vrot.lane.b32.xlu0 %v8147_v44, %s7331_s21 }
0x226a   :  { %v3855_v21 = vpop.xlane.xlu0 %3854 }
0x226b   :  { %6777 = vrcp.f32 %v3855_v21 }
0x226e   :  { %v3858_v57 = vpop.xlane.xlu0 %3857 }
0x226f   :  { %6779 = vrcp.f32 %v3858_v57 }
0x2272   :  { %v3866_v31 = vpop.permute.xlu0 %3865 }
0x2273   :  { %6305 = vmatpush3.bf16.msra.mxu0 %v3866_v31 }
0x2274   :  { %6316 = vmatprep.subr.bf16.mxu0 %v7322_v8 }
0x2275   :  { %v6778_v45 = vpop.eup %6777 }
0x2276   :  { %v3861_v62 = vmul.f32 %v6778_v45, %v6774_v50  ;;  %v3968_v12 = vpop.permute.xlu0 %3967 }
0x2278   :  { %v3863_v63 = vpack.c.bf16 %v3861_v62, %v3861_v62 }
0x2279   :  { %v6780_v0 = vpop.eup %6779 }
0x227a   :  { %v3862_v6 = vmul.f32 %v6780_v0, %v6776_v54  ;;  %6307 = vmatmul.mubr.msk.bf16.vlgmr.msra.gmra.mrb[104].mxu0 %vm662_vm3, %v3863_v63 }
0x227b   :  { %6318 = vmatprep.mubr.msk.bf16.mxu0 %vm7323_vm1, %v7322_v8 }
0x227c   :  { %6317 = vmatpush3.bf16.xpose.msra.mxu0 %v3975_v7  ;;  %v3864_v10 = vpack.c.bf16 %v3862_v6, %v3862_v6 }
0x227d   :  { %6328 = vmatprep.subr.bf16.mxu0 %v7322_v8 }
0x227e   :  { %6313 = vmatmul.mubr.msk.bf16.vlgmr.msra.gmra.mrb[100].mxu1 %vm662_vm3, %v3864_v10 }
0x227f   :  { %6323 = vmatpush3.bf16.xpose.msra.mxu1 %v4025_v11  ;;  %6324 = vmatprep.mubr.msk.bf16.mxu1 %vm7323_vm1, %v7322_v8 }
0x2280   :  { %6334 = vmatprep.subr.bf16.mxu1 %v7322_v8 }
0x2283   :  { %6319 = vmatmul.mubr.msk.bf16.vlgmr.msra.gmra.mrb[108].mxu0 %vm544_vm2, %v3968_v12 }
0x2284   :  { %6330 = vmatprep.mubr.msk.bf16.mxu0 %vm7323_vm1, %v7322_v8 }
0x2286   :  { %6325 = vmatmul.mubr.msk.bf16.vlgmr.msra.gmra.mrb[104].mxu1 %vm544_vm2, %v4018_v4 }
0x2287   :  { %6336 = vmatprep.mubr.msk.bf16.mxu1 %vm7323_vm1, %v7322_v8 }
0x234d   :  { %v8317_v25 = vpop.f32.mrb[104].mxu0 }
0x234e   :  { %v6308_v28 = vpop.f32.mrb[105].mxu0 }
0x234f   :  { %v3908_v38 = vpop.f32.mrb[106].mxu0 }
0x2350   :  { %v6309_v34 = vpop.f32.mrb[107].mxu0 }
0x2351   :  { %v8319_v37 = vpop.f32.mrb[100].mxu1 }
0x2352   :  { %v6314_v32 = vpop.f32.mrb[101].mxu1 }
0x2353   :  { %v3954_v1 = vpop.f32.mrb[102].mxu1 }
0x2354   :  { %v6315_v5 = vpop.f32.mrb[103].mxu1 }
0x2356   :  { %v4011_v18 = vpop.f32.mrb[108].mxu0 }
0x2357   :  { %v4067_v20 = vmul.f32 0.35355338, %v4011_v18  ;;  %v6320_v27 = vpop.f32.mrb[109].mxu0 }
0x2358   :  { %v4014_v29 = vpop.f32.mrb[110].mxu0 }
0x2359   :  { %v4069_v46 = vadd.f32 %v8159_v24, %v4067_v20  ;;  %v6321_v58 = vpop.f32.mrb[111].mxu0  ;;  %v4061_v33 = vpop.f32.mrb[104].mxu1 }
0x235a   :  { %v4068_v35 = vmul.f32 0.35355338, %v4061_v33  ;;  %v6326_v51 = vpop.f32.mrb[105].mxu1 }
0x235b   :  { %v4064_v53 = vpop.f32.mrb[106].mxu1  ;;  %v4071_v19 = vsel %vm662_vm3, %v4069_v46, -inf }
0x235c   :  { %v4070_v42 = vadd.f32 %v8162_v59, %v4068_v35  ;;  %v6327_v3 = vpop.f32.mrb[107].mxu1  ;;  %4072 = vmax.xlane.f32.xlu0 %v4071_v19 }
0x235e   :  { %v4074_v49 = vsel %vm662_vm3, %v4070_v42, -inf }
0x235f   :  { %4075 = vmax.xlane.f32.xlu1 %v4074_v49 }
0x2370   :  { %4141 = vrot.lane.b32.xlu1 %v8137_v40, %s7330_s30 }
0x2374   :  { %4199 = vrot.lane.b32.xlu1 %v8139_v22, %s7333_s26 }
0x2378   :  { %4249 = vrot.lane.b32.xlu1 %v8137_v40, %s7333_s26 }
0x237c   :  { %4247 = vrot.lane.b32.xlu1 %v8149_v13, %s7333_s26 }
0x23e9   :  { %v4073_v16 = vpop.xlane.xlu0 %4072 }
0x23ea   :  { %v4077_v23 = vsub.f32 %v4069_v46, %v4073_v16 }
0x23ec   :  { %v4079_v41 = vmul.f32 1.442695, %v4077_v23  ;;  %v4076_v43 = vpop.xlane.xlu1 %4075 }
0x23ed   :  { %v4078_v47 = vsub.f32 %v4070_v42, %v4076_v43 }
0x23ee   :  { %6781 = vpow2.f32 %v4079_v41 }
0x23ef   :  { %v4081_v48 = vmul.f32 1.442695, %v4078_v47 }
0x23f0   :  { %v4142_v50 = vpop.permute.xlu1 %4141 }
0x23f1   :  { %6783 = vpow2.f32 %v4081_v48  ;;  %6335 = vmatpush3.bf16.msra.mxu1 %v4142_v50 }
0x23f2   :  { %6346 = vmatprep.subr.bf16.mxu1 %v7322_v8 }
0x23f4   :  { %v4200_v62 = vpop.permute.xlu1 %4199 }
0x23f5   :  { %v4205_v9 = vsel %vm544_vm2, %v4200_v62, 0 }
0x23f8   :  { %v6782_v52 = vpop.eup %6781  ;;  %v4250_v10 = vpop.permute.xlu1 %4249 }
0x23f9   :  { %v4083_v54 = vsel %vm662_vm3, %v6782_v52, 0.0  ;;  %v4255_v12 = vsel %vm544_vm2, %v4250_v10, 0 }
0x23fa   :  { %4084 = vadd.xlane.f32.xlu0 %v4083_v54 }
0x23fb   :  { %v6784_v55 = vpop.eup %6783 }
0x23fc   :  { %v4086_v21 = vsel %vm662_vm3, %v6784_v55, 0.0  ;;  %v4248_v28 = vpop.permute.xlu1 %4247 }
0x23fe   :  { %4087 = vadd.xlane.f32.xlu0 %v4086_v21 }
0x2414   :  { %4095 = vrot.lane.b32.xlu0 %v8139_v22, %s7330_s30 }
0x2418   :  { %4197 = vrot.lane.b32.xlu0 %v8147_v44, %s7333_s26 }
0x2487   :  { %v4085_v57 = vpop.xlane.xlu0 %4084 }
0x2488   :  { %6785 = vrcp.f32 %v4085_v57 }
0x248b   :  { %v4088_v31 = vpop.xlane.xlu0 %4087 }
0x248c   :  { %6787 = vrcp.f32 %v4088_v31 }
0x248f   :  { %v4096_v45 = vpop.permute.xlu0 %4095 }
0x2490   :  { %6329 = vmatpush3.bf16.msra.mxu0 %v4096_v45 }
0x2491   :  { %6340 = vmatprep.subr.bf16.mxu0 %v7322_v8 }
0x2492   :  { %v6786_v61 = vpop.eup %6785 }
0x2493   :  { %v4091_v63 = vmul.f32 %v6786_v61, %v6782_v52  ;;  %v4198_v4 = vpop.permute.xlu0 %4197 }
0x2495   :  { %v4093_v0 = vpack.c.bf16 %v4091_v63, %v4091_v63 }
0x2496   :  { %v6788_v6 = vpop.eup %6787 }
0x2497   :  { %v4092_v7 = vmul.f32 %v6788_v6, %v6784_v55  ;;  %6331 = vmatmul.mubr.msk.bf16.vlgmr.msra.gmra.mrb[112].mxu0 %vm662_vm3, %v4093_v0 }
0x2498   :  { %6342 = vmatprep.mubr.msk.bf16.mxu0 %vm7323_vm1, %v7322_v8 }
0x2499   :  { %6341 = vmatpush3.bf16.xpose.msra.mxu0 %v4205_v9  ;;  %v4094_v11 = vpack.c.bf16 %v4092_v7, %v4092_v7 }
0x249a   :  { %6352 = vmatprep.subr.bf16.mxu0 %v7322_v8 }
0x249b   :  { %6337 = vmatmul.mubr.msk.bf16.vlgmr.msra.gmra.mrb[108].mxu1 %vm662_vm3, %v4094_v11 }
0x249c   :  { %6347 = vmatpush3.bf16.xpose.msra.mxu1 %v4255_v12  ;;  %6348 = vmatprep.mubr.msk.bf16.mxu1 %vm7323_vm1, %v7322_v8 }
0x249d   :  { %6358 = vmatprep.subr.bf16.mxu1 %v7322_v8 }
0x24a0   :  { %6343 = vmatmul.mubr.msk.bf16.vlgmr.msra.gmra.mrb[116].mxu0 %vm544_vm2, %v4198_v4 }
0x24a1   :  { %6354 = vmatprep.mubr.msk.bf16.mxu0 %vm7323_vm1, %v7322_v8 }
0x24a3   :  { %6349 = vmatmul.mubr.msk.bf16.vlgmr.msra.gmra.mrb[112].mxu1 %vm544_vm2, %v4248_v28 }
0x24a4   :  { %6360 = vmatprep.mubr.msk.bf16.mxu1 %vm7323_vm1, %v7322_v8 }
0x256a   :  { %v8357_v38 = vpop.f32.mrb[112].mxu0 }
0x256b   :  { %v6332_v34 = vpop.f32.mrb[113].mxu0 }
0x256c   :  { %v4138_v32 = vpop.f32.mrb[114].mxu0 }
0x256d   :  { %v6333_v1 = vpop.f32.mrb[115].mxu0 }
0x256e   :  { %v8359_v5 = vpop.f32.mrb[108].mxu1 }
0x256f   :  { %v6338_v18 = vpop.f32.mrb[109].mxu1 }
0x2570   :  { %v4184_v20 = vpop.f32.mrb[110].mxu1 }
0x2571   :  { %v6339_v27 = vpop.f32.mrb[111].mxu1 }
0x2573   :  { %v4241_v29 = vpop.f32.mrb[116].mxu0 }
0x2574   :  { %v4297_v46 = vmul.f32 0.35355338, %v4241_v29  ;;  %v6344_v58 = vpop.f32.mrb[117].mxu0 }
0x2575   :  { %v4244_v33 = vpop.f32.mrb[118].mxu0 }
0x2576   :  { %v4299_v35 = vadd.f32 %v8159_v24, %v4297_v46  ;;  %v6345_v51 = vpop.f32.mrb[119].mxu0  ;;  %v4291_v53 = vpop.f32.mrb[112].mxu1 }
0x2577   :  { %v4298_v19 = vmul.f32 0.35355338, %v4291_v53  ;;  %v6350_v42 = vpop.f32.mrb[113].mxu1 }
0x2578   :  { %v4294_v3 = vpop.f32.mrb[114].mxu1  ;;  %v4301_v49 = vsel %vm662_vm3, %v4299_v35, -inf }
0x2579   :  { %v4300_v16 = vadd.f32 %v8162_v59, %v4298_v19  ;;  %v6351_v23 = vpop.f32.mrb[115].mxu1  ;;  %4302 = vmax.xlane.f32.xlu0 %v4301_v49 }
0x257b   :  { %v4304_v41 = vsel %vm662_vm3, %v4300_v16, -inf }
0x257c   :  { %4305 = vmax.xlane.f32.xlu1 %v4304_v41 }
0x258d   :  { %4371 = vrot.lane.b32.xlu1 %v8137_v40, %s7332_s6 }
0x2591   :  { %4429 = vrot.lane.b32.xlu1 %v8139_v22, %s7334_s9 }
0x2595   :  { %4479 = vrot.lane.b32.xlu1 %v8137_v40, %s7334_s9 }
0x2599   :  { %4477 = vrot.lane.b32.xlu1 %v8149_v13, %s7334_s9 }
0x2606   :  { %v4303_v43 = vpop.xlane.xlu0 %4302 }
0x2607   :  { %v4307_v47 = vsub.f32 %v4299_v35, %v4303_v43 }
0x2609   :  { %v4309_v48 = vmul.f32 1.442695, %v4307_v47  ;;  %v4306_v50 = vpop.xlane.xlu1 %4305 }
0x260a   :  { %v4308_v52 = vsub.f32 %v4300_v16, %v4306_v50 }
0x260b   :  { %6789 = vpow2.f32 %v4309_v48 }
0x260c   :  { %v4311_v54 = vmul.f32 1.442695, %v4308_v52 }
0x260d   :  { %v4372_v55 = vpop.permute.xlu1 %4371 }
0x260e   :  { %6791 = vpow2.f32 %v4311_v54  ;;  %6359 = vmatpush3.bf16.msra.mxu1 %v4372_v55 }
0x260f   :  { %6370 = vmatprep.subr.bf16.mxu1 %v7322_v8 }
0x2611   :  { %v4430_v6 = vpop.permute.xlu1 %4429 }
0x2612   :  { %v4435_v12 = vsel %vm544_vm2, %v4430_v6, 0 }
0x2615   :  { %v6790_v21 = vpop.eup %6789  ;;  %v4480_v4 = vpop.permute.xlu1 %4479 }
0x2616   :  { %v4313_v57 = vsel %vm662_vm3, %v6790_v21, 0.0  ;;  %v4485_v34 = vsel %vm544_vm2, %v4480_v4, 0 }
0x2617   :  { %4314 = vadd.xlane.f32.xlu0 %v4313_v57 }
0x2618   :  { %v6792_v31 = vpop.eup %6791 }
0x2619   :  { %v4316_v45 = vsel %vm662_vm3, %v6792_v31, 0.0  ;;  %v4478_v1 = vpop.permute.xlu1 %4477 }
0x261b   :  { %4317 = vadd.xlane.f32.xlu0 %v4316_v45 }
0x2631   :  { %4325 = vrot.lane.b32.xlu0 %v8139_v22, %s7332_s6 }
0x2635   :  { %4427 = vrot.lane.b32.xlu0 %v8147_v44, %s7334_s9 }
0x26a4   :  { %v4315_v61 = vpop.xlane.xlu0 %4314 }
0x26a5   :  { %6793 = vrcp.f32 %v4315_v61 }
0x26a8   :  { %v4318_v62 = vpop.xlane.xlu0 %4317 }
0x26a9   :  { %6795 = vrcp.f32 %v4318_v62 }
0x26ac   :  { %v4326_v63 = vpop.permute.xlu0 %4325 }
0x26ad   :  { %6353 = vmatpush3.bf16.msra.mxu0 %v4326_v63 }
0x26ae   :  { %6364 = vmatprep.subr.bf16.mxu0 %v7322_v8 }
0x26af   :  { %v6794_v0 = vpop.eup %6793 }
0x26b0   :  { %v4321_v7 = vmul.f32 %v6794_v0, %v6790_v21  ;;  %v4428_v32 = vpop.permute.xlu0 %4427 }
0x26b2   :  { %v4323_v9 = vpack.c.bf16 %v4321_v7, %v4321_v7 }
0x26b3   :  { %v6796_v10 = vpop.eup %6795 }
0x26b4   :  { %v4322_v11 = vmul.f32 %v6796_v10, %v6792_v31  ;;  %6355 = vmatmul.mubr.msk.bf16.vlgmr.msra.gmra.mrb[120].mxu0 %vm662_vm3, %v4323_v9 }
0x26b5   :  { %6366 = vmatprep.mubr.msk.bf16.mxu0 %vm7323_vm1, %v7322_v8 }
0x26b6   :  { %6365 = vmatpush3.bf16.xpose.msra.mxu0 %v4435_v12  ;;  %v4324_v28 = vpack.c.bf16 %v4322_v11, %v4322_v11 }
0x26b7   :  { %6376 = vmatprep.subr.bf16.mxu0 %v7322_v8 }
0x26b8   :  { %6361 = vmatmul.mubr.msk.bf16.vlgmr.msra.gmra.mrb[116].mxu1 %vm662_vm3, %v4324_v28 }
0x26b9   :  { %6371 = vmatpush3.bf16.xpose.msra.mxu1 %v4485_v34  ;;  %6372 = vmatprep.mubr.msk.bf16.mxu1 %vm7323_vm1, %v7322_v8 }
0x26ba   :  { %6382 = vmatprep.subr.bf16.mxu1 %v7322_v8 }
0x26bd   :  { %6367 = vmatmul.mubr.msk.bf16.vlgmr.msra.gmra.mrb[124].mxu0 %vm544_vm2, %v4428_v32 }
0x26be   :  { %6378 = vmatprep.mubr.msk.bf16.mxu0 %vm7323_vm1, %v7322_v8 }
0x26c0   :  { %6373 = vmatmul.mubr.msk.bf16.vlgmr.msra.gmra.mrb[120].mxu1 %vm544_vm2, %v4478_v1 }
0x26c1   :  { %6384 = vmatprep.mubr.msk.bf16.mxu1 %vm7323_vm1, %v7322_v8 }
0x2787   :  { %v8397_v18 = vpop.f32.mrb[120].mxu0 }
0x2788   :  { %v6356_v20 = vpop.f32.mrb[121].mxu0 }
0x2789   :  { %v4368_v27 = vpop.f32.mrb[122].mxu0 }
0x278a   :  { %v6357_v29 = vpop.f32.mrb[123].mxu0 }
0x278b   :  { %v8399_v46 = vpop.f32.mrb[116].mxu1 }
0x278c   :  { %v6362_v58 = vpop.f32.mrb[117].mxu1 }
0x278d   :  { %v4414_v33 = vpop.f32.mrb[118].mxu1 }
0x278e   :  { %v6363_v35 = vpop.f32.mrb[119].mxu1 }
0x2790   :  { %v4471_v51 = vpop.f32.mrb[124].mxu0 }
0x2791   :  { %v4527_v53 = vmul.f32 0.35355338, %v4471_v51  ;;  %v6368_v19 = vpop.f32.mrb[125].mxu0 }
0x2792   :  { %v4474_v42 = vpop.f32.mrb[126].mxu0 }
0x2793   :  { %v4529_v3 = vadd.f32 %v8159_v24, %v4527_v53  ;;  %v6369_v49 = vpop.f32.mrb[127].mxu0  ;;  %v4521_v16 = vpop.f32.mrb[120].mxu1 }
0x2794   :  { %v4528_v23 = vmul.f32 0.35355338, %v4521_v16  ;;  %v6374_v41 = vpop.f32.mrb[121].mxu1 }
0x2795   :  { %v4524_v43 = vpop.f32.mrb[122].mxu1  ;;  %v4531_v47 = vsel %vm662_vm3, %v4529_v3, -inf }
0x2796   :  { %v4530_v48 = vadd.f32 %v8162_v59, %v4528_v23  ;;  %v6375_v50 = vpop.f32.mrb[123].mxu1  ;;  %4532 = vmax.xlane.f32.xlu0 %v4531_v47  ;;  %v6849_v23 = vld [vmem:[#allocation3] ss:$0 sm:$0xff] }
0x2798   :  { %v4534_v52 = vsel %vm662_vm3, %v4530_v48, -inf }
0x2799   :  { %4535 = vmax.xlane.f32.xlu1 %v4534_v52 }
0x27aa   :  { %4601 = vrot.lane.b32.xlu1 %v8137_v40, %s7311_s16 }
0x27ae   :  { %4659 = vrot.lane.b32.xlu1 %v8139_v22, %s7336_s0 }
0x27b2   :  { %4709 = vrot.lane.b32.xlu1 %v8137_v40, %s7336_s0 }
0x27b6   :  { %4707 = vrot.lane.b32.xlu1 %v8149_v13, %s7336_s0 }
0x2823   :  { %v4533_v24 = vpop.xlane.xlu0 %4532 }
0x2824   :  { %v4537_v54 = vsub.f32 %v4529_v3, %v4533_v24 }
0x2826   :  { %v4539_v59 = vmul.f32 1.442695, %v4537_v54  ;;  %v4536_v55 = vpop.xlane.xlu1 %4535  ;;  %v6850_v54 = vld [vmem:[#allocation3 + $0x1] ss:$0 sm:$0xff] }
0x2827   :  { %v4538_v21 = vsub.f32 %v4530_v48, %v4536_v55 }
0x2828   :  { %6797 = vpow2.f32 %v4539_v59 }
0x2829   :  { %v4541_v57 = vmul.f32 1.442695, %v4538_v21 }
0x282a   :  { %v4602_v31 = vpop.permute.xlu1 %4601 }
0x282b   :  { %6799 = vpow2.f32 %v4541_v57  ;;  %6383 = vmatpush3.bf16.msra.mxu1 %v4602_v31 }
0x282c   :  { %6394 = vmatprep.subr.bf16.mxu1 %v7322_v8 }
0x282e   :  { %v4660_v9 = vpop.permute.xlu1 %4659 }
0x282f   :  { %v4665_v28 = vsel %vm544_vm2, %v4660_v9, 0 }
0x2832   :  { %v6798_v45 = vpop.eup %6797  ;;  %v4710_v34 = vpop.permute.xlu1 %4709 }
0x2833   :  { %v4543_v61 = vsel %vm662_vm3, %v6798_v45, 0.0  ;;  %v4715_v32 = vsel %vm544_vm2, %v4710_v34, 0 }
0x2834   :  { %4544 = vadd.xlane.f32.xlu0 %v4543_v61 }
0x2835   :  { %v6800_v62 = vpop.eup %6799 }
0x2836   :  { %v4546_v63 = vsel %vm662_vm3, %v6800_v62, 0.0  ;;  %v4708_v20 = vpop.permute.xlu1 %4707 }
0x2838   :  { %4547 = vadd.xlane.f32.xlu0 %v4546_v63 }
0x284e   :  { %4555 = vrot.lane.b32.xlu0 %v8139_v22, %s7311_s16 }
0x2852   :  { %4657 = vrot.lane.b32.xlu0 %v8147_v44, %s7336_s0 }
0x28c1   :  { %v4545_v13 = vpop.xlane.xlu0 %4544 }
0x28c2   :  { %6801 = vrcp.f32 %v4545_v13 }
0x28c5   :  { %v4548_v0 = vpop.xlane.xlu0 %4547 }
0x28c6   :  { %6803 = vrcp.f32 %v4548_v0 }
0x28c9   :  { %v4556_v6 = vpop.permute.xlu0 %4555 }
0x28ca   :  { %6377 = vmatpush3.bf16.msra.mxu0 %v4556_v6 }
0x28cb   :  { %6388 = vmatprep.subr.bf16.mxu0 %v7322_v8 }
0x28cc   :  { %v6802_v7 = vpop.eup %6801 }
0x28cd   :  { %v4551_v10 = vmul.f32 %v6802_v7, %v6798_v45  ;;  %v4658_v1 = vpop.permute.xlu0 %4657 }
0x28cf   :  { %v4553_v11 = vpack.c.bf16 %v4551_v10, %v4551_v10 }
0x28d0   :  { %v6804_v12 = vpop.eup %6803 }
0x28d1   :  { %v4552_v4 = vmul.f32 %v6804_v12, %v6800_v62  ;;  %6379 = vmatmul.mubr.msk.bf16.vlgmr.msra.gmra.mrb[128].mxu0 %vm662_vm3, %v4553_v11 }
0x28d2   :  { %6390 = vmatprep.mubr.msk.bf16.mxu0 %vm7323_vm1, %v7322_v8 }
0x28d3   :  { %6389 = vmatpush3.bf16.xpose.msra.mxu0 %v4665_v28  ;;  %v4554_v44 = vpack.c.bf16 %v4552_v4, %v4552_v4 }
0x28d4   :  { %6400 = vmatprep.subr.bf16.mxu0 %v7322_v8 }
0x28d5   :  { %6385 = vmatmul.mubr.msk.bf16.vlgmr.msra.gmra.mrb[124].mxu1 %vm662_vm3, %v4554_v44 }
0x28d6   :  { %6395 = vmatpush3.bf16.xpose.msra.mxu1 %v4715_v32  ;;  %6396 = vmatprep.mubr.msk.bf16.mxu1 %vm7323_vm1, %v7322_v8 }
0x28d7   :  { %6406 = vmatprep.subr.bf16.mxu1 %v7322_v8 }
0x28da   :  { %6391 = vmatmul.mubr.msk.bf16.vlgmr.msra.gmra.mrb[132].mxu0 %vm544_vm2, %v4658_v1 }
0x28db   :  { %6402 = vmatprep.mubr.msk.bf16.mxu0 %vm7323_vm1, %v7322_v8 }
0x28dd   :  { %6397 = vmatmul.mubr.msk.bf16.vlgmr.msra.gmra.mrb[128].mxu1 %vm544_vm2, %v4708_v20 }
0x28de   :  { %6408 = vmatprep.mubr.msk.bf16.mxu1 %vm7323_vm1, %v7322_v8 }
0x29a4   :  { %v8437_v27 = vpop.f32.mrb[128].mxu0 }
0x29a5   :  { %v6380_v29 = vpop.f32.mrb[129].mxu0 }
0x29a6   :  { %v4598_v58 = vpop.f32.mrb[130].mxu0 }
0x29a7   :  { %v6381_v33 = vpop.f32.mrb[131].mxu0 }
0x29a8   :  { %v4641_v35 = vpop.f32.mrb[124].mxu1 }
0x29a9   :  { %v6386_v51 = vpop.f32.mrb[125].mxu1 }
0x29aa   :  { %v4644_v53 = vpop.f32.mrb[126].mxu1 }
0x29ab   :  { %v6387_v19 = vpop.f32.mrb[127].mxu1 }
0x29ad   :  { %v4701_v42 = vpop.f32.mrb[132].mxu0 }
0x29ae   :  { %v4757_v3 = vmul.f32 0.35355338, %v4701_v42  ;;  %v6392_v49 = vpop.f32.mrb[133].mxu0 }
0x29af   :  { %v4704_v16 = vpop.f32.mrb[134].mxu0 }
0x29b0   :  { %v4759_v41 = vadd.f32 %v6849_v23, %v4757_v3  ;;  %v6393_v43 = vpop.f32.mrb[135].mxu0  ;;  %v4751_v47 = vpop.f32.mrb[128].mxu1 }
0x29b1   :  { %v4758_v48 = vmul.f32 0.35355338, %v4751_v47  ;;  %v6398_v50 = vpop.f32.mrb[129].mxu1 }
0x29b2   :  { %v4754_v52 = vpop.f32.mrb[130].mxu1  ;;  %v4761_v24 = vsel %vm662_vm3, %v4759_v41, -inf }
0x29b3   :  { %v4760_v59 = vadd.f32 %v6850_v54, %v4758_v48  ;;  %v6399_v55 = vpop.f32.mrb[131].mxu1  ;;  %4762 = vmax.xlane.f32.xlu0 %v4761_v24  ;;  %v5778_v48 = vld [vmem:[#allocation21] ss:$0 sm:$0xff] }
0x29b5   :  { %v4764_v21 = vsel %vm662_vm3, %v4760_v59, -inf }
0x29b6   :  { %4765 = vmax.xlane.f32.xlu1 %v4764_v21 }
0x29c7   :  { %4831 = vrot.lane.b32.xlu1 %v8137_v40, %s7335_s12 }
0x29cb   :  { %3499 = vrot.lane.b32.xlu1 %v8237_v30, %s7335_s12 }
0x29cf   :  { %3501 = vrot.lane.b32.xlu1 %v8239_v39, %s7335_s12 }
0x29d3   :  { %3731 = vrot.lane.b32.xlu1 %v8279_v36, %s7311_s16 }
0x29d7   :  { %3961 = vrot.lane.b32.xlu1 %v8319_v37, %s7332_s6 }
0x29db   :  { %4191 = vrot.lane.b32.xlu1 %v8359_v5, %s7330_s30 }
0x29df   :  { %4421 = vrot.lane.b32.xlu1 %v8399_v46, %s7328_s22 }
0x29e3   :  { %4651 = vrot.lane.b32.xlu1 %v4641_v35, %s7326_s3 }
0x2a40   :  { %v4763_v40 = vpop.xlane.xlu0 %4762 }
0x2a41   :  { %v4767_v57 = vsub.f32 %v4759_v41, %v4763_v40  ;;  %v2801_v40 = vadd.f32 %v8111_v15, %v7605_v60 }
0x2a43   :  { %v4769_v30 = vmul.f32 1.442695, %v4767_v57  ;;  %v4766_v31 = vpop.xlane.xlu1 %4765 }
0x2a44   :  { %v4768_v45 = vsub.f32 %v4760_v59, %v4766_v31 }
0x2a45   :  { %6805 = vpow2.f32 %v4769_v30 }
0x2a46   :  { %v4771_v39 = vmul.f32 1.442695, %v4768_v45  ;;  %v2803_v45 = vadd.f32 %v8108_v56, %v7611_v2 }
0x2a47   :  { %v4832_v61 = vpop.permute.xlu1 %4831 }
0x2a48   :  { %6807 = vpow2.f32 %v4771_v39  ;;  %6407 = vmatpush3.bf16.msra.mxu1 %v4832_v61  ;;  %v2809_v39 = vsel %vm342_vm0, %v2801_v40, 0.0 }
0x2a49   :  { %6424 = vmatprep.subr.bf16.mxu1 %v7322_v8 }
0x2a4b   :  { %v3500_v36 = vpop.permute.xlu1 %3499 }
0x2a4c   :  { %3505 = vst.msk [vmem:[#allocation2] sm:$0xff] %vm1069_vm4, %v3500_v36 }
0x2a4f   :  { %v6806_v37 = vpop.eup %6805  ;;  %v3502_v5 = vpop.permute.xlu1 %3501 }
0x2a50   :  { %3506 = vst.msk [vmem:[#allocation2 + $0x10] sm:$0xff] %vm1069_vm4, %v3502_v5  ;;  %v4773_v46 = vsel %vm662_vm3, %v6806_v37, 0.0 }
0x2a51   :  { %4774 = vadd.xlane.f32.xlu0 %v4773_v46 }
0x2a52   :  { %v6808_v62 = vpop.eup %6807 }
0x2a53   :  { %v3732_v63 = vpop.permute.xlu1 %3731  ;;  %v4776_v13 = vsel %vm662_vm3, %v6808_v62, 0.0 }
0x2a54   :  { %3736 = vst.msk [vmem:[#allocation2 + $0x10] sm:$0xff] %vm1340_vm5, %v3732_v63 }
0x2a55   :  { %4777 = vadd.xlane.f32.xlu0 %v4776_v13 }
0x2a57   :  { %v3962_v0 = vpop.permute.xlu1 %3961 }
0x2a58   :  { %3966 = vst.msk [vmem:[#allocation2 + $0x10] sm:$0xff] %vm1611_vm6, %v3962_v0 }
0x2a5b   :  { %v4192_v6 = vpop.permute.xlu1 %4191 }
0x2a5c   :  { %4196 = vst.msk [vmem:[#allocation2 + $0x10] sm:$0xff] %vm1882_vm7, %v4192_v6 }
0x2a5f   :  { %v4422_v7 = vpop.permute.xlu1 %4421 }
0x2a60   :  { %4426 = vst.msk [vmem:[#allocation2 + $0x10] sm:$0xff] %vm2153_vm8, %v4422_v7 }
0x2a63   :  { %v4652_v9 = vpop.permute.xlu1 %4651 }
0x2a64   :  { %4656 = vst.msk [vmem:[#allocation2 + $0x10] sm:$0xff] %vm2424_vm9, %v4652_v9 }
0x2a6b   :  { %4785 = vrot.lane.b32.xlu0 %v8139_v22, %s7335_s12 }
0x2a6f   :  { %3729 = vrot.lane.b32.xlu0 %v8277_v26, %s7311_s16  ;;  %s8682_s16 = sld [smem:[#allocation45_spill]] }
0x2a73   :  { %3959 = vrot.lane.b32.xlu0 %v8317_v25, %s7332_s6 }
0x2a75   :  { %v6581_v20 = vld [vmem:[%s8682_s16] sm:$0xff]   ;;  %v6583_v29 = vld [vmem:[%s8682_s16 + $0x10] sm:$0xff]   ;;  %v6584_v58 = vld [vmem:[%s8682_s16 + $0x18] sm:$0xff]  }
0x2a77   :  { %4189 = vrot.lane.b32.xlu0 %v8357_v38, %s7330_s30 }
0x2a7b   :  { %4419 = vrot.lane.b32.xlu0 %v8397_v18, %s7328_s22 }
0x2a7f   :  { %4649 = vrot.lane.b32.xlu0 %v8437_v27, %s7326_s3  ;;  %v6582_v27 = vld [vmem:[%s8682_s16 + $0x8] sm:$0xff]  }
0x2ade   :  { %v4775_v10 = vpop.xlane.xlu0 %4774 }
0x2adf   :  { %6809 = vrcp.f32 %v4775_v10 }
0x2ae2   :  { %v4778_v11 = vpop.xlane.xlu0 %4777 }
0x2ae3   :  { %6811 = vrcp.f32 %v4778_v11 }
0x2ae6   :  { %v4786_v22 = vpop.permute.xlu0 %4785 }
0x2ae7   :  { %6401 = vmatpush3.bf16.msra.mxu0 %v4786_v22 }
0x2ae8   :  { %6412 = vmatprep.subr.bf16.mxu0 %v7322_v8 }
0x2ae9   :  { %v6810_v26 = vpop.eup %6809 }
0x2aea   :  { %v4781_v12 = vmul.f32 %v6810_v26, %v6806_v37  ;;  %v3730_v25 = vpop.permute.xlu0 %3729  ;;  %v6585_v26 = vld [vmem:[%s8683_s2] sm:$0xff]  }
0x2aeb   :  { %3735 = vst.msk [vmem:[#allocation2] sm:$0xff] %vm1340_vm5, %v3730_v25  ;;  %v6587_v25 = vld [vmem:[%s8683_s2 + $0x10] sm:$0xff]  }
0x2aec   :  { %v4783_v38 = vpack.c.bf16 %v4781_v12, %v4781_v12  ;;  %v6586_v12 = vld [vmem:[%s8683_s2 + $0x8] sm:$0xff]  }
0x2aed   :  { %v6812_v4 = vpop.eup %6811 }
0x2aee   :  { %v4782_v18 = vmul.f32 %v6812_v4, %v6808_v62  ;;  %6403 = vmatmul.mubr.msk.bf16.vlgmr.msra.gmra.mrb[136].mxu0 %vm662_vm3, %v4783_v38  ;;  %v3960_v28 = vpop.permute.xlu0 %3959  ;;  %v6588_v38 = vld [vmem:[%s8683_s2 + $0x18] sm:$0xff]  }
0x2aef   :  { %3965 = vst.msk [vmem:[#allocation2] sm:$0xff] %vm1611_vm6, %v3960_v28  ;;  %6420 = vmatprep.mubr.msk.bf16.mxu0 %vm7323_vm1, %v7322_v8  ;;  %6413 = vmatpush3.bf16.msra.mxu0 %v6581_v20 }
0x2af0   :  { %v4784_v34 = vpack.c.bf16 %v4782_v18, %v4782_v18  ;;  %6414 = vmatprep.subr.bf16.mxu0 %v7322_v8 }
0x2af2   :  { %6409 = vmatmul.mubr.msk.bf16.vlgmr.msra.gmra.mrb[132].mxu1 %vm662_vm3, %v4784_v34  ;;  %v4190_v44 = vpop.permute.xlu0 %4189 }
0x2af3   :  { %4195 = vst.msk [vmem:[#allocation2] sm:$0xff] %vm1882_vm7, %v4190_v44  ;;  %6432 = vmatprep.mubr.msk.bf16.mxu1 %vm7323_vm1, %v7322_v8  ;;  %6415 = vmatpush3.bf16.msra.mxu0 %v6582_v27 }
0x2af4   :  { %6416 = vmatprep.subr.bf16.mxu0 %v7322_v8  ;;  %6425 = vmatpush3.bf16.msra.mxu1 %v6585_v26 }
0x2af5   :  { %6426 = vmatprep.subr.bf16.mxu1 %v7322_v8 }
0x2af6   :  { %v4420_v32 = vpop.permute.xlu0 %4419 }
0x2af7   :  { %4425 = vst.msk [vmem:[#allocation2] sm:$0xff] %vm2153_vm8, %v4420_v32  ;;  %6417 = vmatpush3.bf16.msra.mxu0 %v6583_v29 }
0x2af8   :  { %6418 = vmatprep.subr.bf16.mxu0 %v7322_v8  ;;  %6427 = vmatpush3.bf16.msra.mxu1 %v6586_v12 }
0x2af9   :  { %6428 = vmatprep.subr.bf16.mxu1 %v7322_v8 }
0x2afa   :  { %v4650_v1 = vpop.permute.xlu0 %4649 }
0x2afb   :  { %4655 = vst.msk [vmem:[#allocation2] sm:$0xff] %vm2424_vm9, %v4650_v1  ;;  %6419 = vmatpush3.bf16.msra.mxu0 %v6584_v58 }
0x2afc   :  { %6436 = vmatprep.subr.bf16.mxu0 %v7322_v8  ;;  %6429 = vmatpush3.bf16.msra.mxu1 %v6587_v25 }
0x2afd   :  { %6430 = vmatprep.subr.bf16.mxu1 %v7322_v8 }
0x2b00   :  { %6431 = vmatpush3.bf16.msra.mxu1 %v6588_v38 }
0x2b01   :  { %6456 = vmatprep.subr.bf16.mxu1 %v7322_v8 }
0x2bc1   :  { %v4825_v33 = vpop.f32.mrb[136].mxu0 }
0x2bc2   :  { %4879 = vrot.lane.b32.xlu0 %v4825_v33, %s7324_s19  ;;  %v6404_v35 = vpop.f32.mrb[137].mxu0 }
0x2bc3   :  { %v4828_v51 = vpop.f32.mrb[138].mxu0 }
0x2bc4   :  { %v6405_v53 = vpop.f32.mrb[139].mxu0  ;;  %v5784_v51 = vld [vmem:[#allocation23] ss:$0 sm:$0xff] }
0x2bc5   :  { %v4871_v19 = vpop.f32.mrb[132].mxu1 }
0x2bc6   :  { %4881 = vrot.lane.b32.xlu1 %v4871_v19, %s7324_s19  ;;  %v6410_v42 = vpop.f32.mrb[133].mxu1 }
0x2bc7   :  { %v4874_v3 = vpop.f32.mrb[134].mxu1 }
0x2bc8   :  { %v6411_v49 = vpop.f32.mrb[135].mxu1 }
0x2bc9   :  { %v5785_v49 = vld [vmem:[%s8684_s7] ss:$0 sm:$0xff] }
0x2c34   :  { %v4880_v16 = vpop.permute.xlu0 %4879 }
0x2c35   :  { %4885 = vst.msk [vmem:[#allocation2] sm:$0xff] %vm2695_vm10, %v4880_v16 }
0x2c38   :  { %v4882_v23 = vpop.permute.xlu1 %4881 }
0x2c39   :  { %4886 = vst.msk [vmem:[#allocation2 + $0x10] sm:$0xff] %vm2695_vm10, %v4882_v23 }
0x2c3c   :  { %v4887_v41 = vld [vmem:[#allocation2] sm:$0xff] }
0x2c40   :  { %v4888_v43 = vld [vmem:[#allocation2 + $0x10] sm:$0xff] }
0x2c41   :  { %v4889_v47 = vpack.c.bf16 %v4888_v43, %v4887_v41  ;;  %v6589_v43 = vld [vmem:[%s8685_s10] sm:$0xff]  }
0x2c43   :  { %6421 = vmatmul.mubr.msk.bf16.vlgmr.msra.gmra.mrb[140].mxu0 %vm342_vm0, %v4889_v47 }
0x2c44   :  { %6452 = vmatprep.mubr.msk.bf16.mxu0 %vm7323_vm1, %v7322_v8 }
0x2d16   :  { %v4966_v50 = vpop.f32.mrb[140].mxu0 }
0x2d17   :  { %v4967_v52 = vadd.f32 %v5778_v48, %v4966_v50  ;;  %v6422_v24 = vpop.f32.mrb[141].mxu0 }
0x2d18   :  { %v4969_v54 = vpop.f32.mrb[142].mxu0 }
0x2d19   :  { %v4973_v59 = vadd.f32 %v4967_v52, %v8128_v14  ;;  %v4970_v55 = vadd.f32 %v5778_v48, %v4969_v54  ;;  %v6423_v21 = vpop.f32.mrb[143].mxu0  ;;  %v2815_v14 = vsel %vm342_vm0, %v2803_v45, 0.0  ;;  %v6590_v52 = vld [vmem:[%s8685_s10 + $0x8] sm:$0xff]  }
0x2d1b   :  { %v4974_v57 = vadd.f32 %v4970_v55, %v8130_v17  ;;  %v4977_v30 = vsel %vm342_vm0, %v4973_v59, 0.0  ;;  %v6851_v55 = vld [vmem:[#allocation14] ss:$0 sm:$0xff] }
0x2d1c   :  { %4978 = vadd.xlane.f32.xlu0 %v4977_v30  ;;  %v6852_v30 = vld [vmem:[#allocation15] ss:$0 sm:$0xff] }
0x2d1d   :  { %v4980_v31 = vsel %vm342_vm0, %v4974_v57, 0.0 }
0x2d1e   :  { %4981 = vadd.xlane.f32.xlu1 %v4980_v31 }
0x2d20   :  { %2810 = vadd.xlane.f32.xlu0 %v2809_v39 }
0x2d24   :  { %2816 = vadd.xlane.f32.xlu0 %v2815_v14  ;;  %v6593_v14 = vld [vmem:[%s8686_s15] sm:$0xff]  }
0x2d25   :  { %6437 = vmatpush3.bf16.msra.mxu0 %v6593_v14 }
0x2d26   :  { %6438 = vmatprep.subr.bf16.mxu0 %v7322_v8 }
0x2da9   :  { %v4979_v61 = vpop.xlane.xlu0 %4978 }
0x2daa   :  { %v4983_v36 = vmul.f32 0.015625, %v4979_v61  ;;  %v6594_v61 = vld [vmem:[%s8686_s15 + $0x8] sm:$0xff]  }
0x2dab   :  { %v4982_v60 = vpop.xlane.xlu1 %4981  ;;  %6439 = vmatpush3.bf16.msra.mxu0 %v6594_v61 }
0x2dac   :  { %v4985_v15 = vsub.f32 %v4973_v59, %v4983_v36  ;;  %v4984_v17 = vmul.f32 0.015625, %v4982_v60  ;;  %v6591_v59 = vld [vmem:[%s8685_s10 + $0x10] sm:$0xff]   ;;  %6440 = vmatprep.subr.bf16.mxu0 %v7322_v8  ;;  %v6596_v60 = vld [vmem:[%s8686_s15 + $0x18] sm:$0xff]  }
0x2dad   :  { %v2811_v37 = vpop.xlane.xlu0 %2810  ;;  %v6595_v36 = vld [vmem:[%s8686_s15 + $0x10] sm:$0xff]  }
0x2dae   :  { %v4986_v5 = vsub.f32 %v4974_v57, %v4984_v17  ;;  %v2819_v46 = vmul.f32 0.015625, %v2811_v37  ;;  %v4987_v62 = vmul.f32 %v4985_v15, %v4985_v15  ;;  %v6592_v57 = vld [vmem:[%s8685_s10 + $0x18] sm:$0xff]   ;;  %v6598_v17 = vld [vmem:[%s8686_s15 + $0x20] sm:$0xff]   ;;  %v6599_v37 = vld [vmem:[%s8687_s8 + $0x8] sm:$0xff]  }
0x2daf   :  { %6441 = vmatpush3.bf16.msra.mxu0 %v6595_v36 }
0x2db0   :  { %v8515_v63 = vsub.f32 %v2801_v40, %v2819_v46  ;;  %v4989_v2 = vsel %vm342_vm0, %v4987_v62, 0.0  ;;  %v4988_v56 = vmul.f32 %v4986_v5, %v4986_v5  ;;  %6442 = vmatprep.subr.bf16.mxu0 %v7322_v8  ;;  %v6601_v46 = vld [vmem:[%s8687_s8 + $0x10] sm:$0xff]  }
0x2db1   :  { %4990 = vadd.xlane.f32.xlu0 %v4989_v2  ;;  %v2817_v13 = vpop.xlane.xlu0 %2816  ;;  %v6602_v62 = vld [vmem:[%s8686_s15 + $0x30] sm:$0xff]   ;;  %v6604_v2 = vld [vmem:[%s8686_s15 + $0x38] sm:$0xff]  }
0x2db2   :  { %v2821_v0 = vmul.f32 0.015625, %v2817_v13  ;;  %v4992_v6 = vsel %vm342_vm0, %v4988_v56, 0.0  ;;  %v2827_v7 = vmul.f32 %v8515_v63, %v8515_v63  ;;  %v6605_v56 = vld [vmem:[%s8687_s8 + $0x20] sm:$0xff]   ;;  %v6606_v13 = vld [vmem:[%s8687_s8 + $0x28] sm:$0xff]  }
0x2db3   :  { %4993 = vadd.xlane.f32.xlu1 %v4992_v6  ;;  %6443 = vmatpush3.bf16.msra.mxu0 %v6596_v60  ;;  %v6608_v6 = vld [vmem:[%s8687_s8 + $0x38] sm:$0xff]  }
0x2db4   :  { %v2825_v9 = vsub.f32 %v2803_v45, %v2821_v0  ;;  %v2833_v10 = vsel %vm342_vm0, %v2827_v7, 0.0  ;;  %6444 = vmatprep.subr.bf16.mxu0 %v7322_v8  ;;  %v6607_v0 = vld [vmem:[%s8687_s8 + $0x30] sm:$0xff]   ;;  %v5786_v7 = vld [vmem:[%s8688_s29] ss:$0 sm:$0xff] }
0x2db5   :  { %2834 = vadd.xlane.f32.xlu0 %v2833_v10 }
0x2db6   :  { %v2829_v11 = vmul.f32 %v2825_v9, %v2825_v9 }
0x2db7   :  { %6445 = vmatpush3.bf16.msra.mxu0 %v6598_v17 }
0x2db8   :  { %v2839_v22 = vsel %vm342_vm0, %v2829_v11, 0.0  ;;  %6446 = vmatprep.subr.bf16.mxu0 %v7322_v8 }
0x2db9   :  { %2840 = vadd.xlane.f32.xlu1 %v2839_v22 }
0x2e3e   :  { %v4991_v4 = vpop.xlane.xlu0 %4990 }
0x2e3f   :  { %v4995_v18 = vmul.f32 0.015625, %v4991_v4 }
0x2e40   :  { %v4994_v28 = vpop.xlane.xlu1 %4993 }
0x2e41   :  { %v4997_v34 = vadd.f32 1e-12, %v4995_v18  ;;  %v4996_v44 = vmul.f32 0.015625, %v4994_v28 }
0x2e42   :  { %v2835_v1 = vpop.xlane.xlu0 %2834 }
0x2e43   :  { %6813 = vrsqrt.f32 %v4997_v34  ;;  %v4998_v32 = vadd.f32 1e-12, %v4996_v44  ;;  %v2843_v27 = vmul.f32 0.015625, %v2835_v1 }
0x2e45   :  { %6815 = vrsqrt.f32 %v4998_v32  ;;  %v2847_v33 = vadd.f32 1e-12, %v2843_v27  ;;  %v5803_v32 = vld [vmem:[#allocation29] ss:$0 sm:$0xff] }
0x2e46   :  { %v2841_v20 = vpop.xlane.xlu1 %2840 }
0x2e47   :  { %v2845_v29 = vmul.f32 0.015625, %v2841_v20 }
0x2e49   :  { %v2849_v58 = vadd.f32 1e-12, %v2845_v29 }
0x2e4b   :  { %6817 = vrsqrt.f32 %v2849_v58 }
0x2e4c   :  { %6819 = vrsqrt.f32 %v2847_v33 }
0x2e4d   :  { %v6814_v35 = vpop.eup %6813 }
0x2e4e   :  { %v5001_v53 = vmul.f32 %v6814_v35, %v4985_v15  ;;  %v6597_v15 = vld [vmem:[%s8687_s8] sm:$0xff]  }
0x2e4f   :  { %v6816_v19 = vpop.eup %6815 }
0x2e50   :  { %v5009_v42 = vmul.f32 %v5784_v51, %v5001_v53  ;;  %v5002_v3 = vmul.f32 %v6816_v19, %v4986_v5  ;;  %v6600_v5 = vld [vmem:[%s8686_s15 + $0x28] sm:$0xff]  }
0x2e51   :  { %6447 = vmatpush3.bf16.msra.mxu0 %v6600_v5 }
0x2e52   :  { %v5010_v16 = vmul.f32 %v5784_v51, %v5002_v3  ;;  %v8532_v23 = vadd.f32 %v5785_v49, %v5009_v42  ;;  %6448 = vmatprep.subr.bf16.mxu0 %v7322_v8 }
0x2e54   :  { %v8534_v41 = vadd.f32 %v5785_v49, %v5010_v16 }
0x2e55   :  { %v6818_v48 = vpop.eup %6817  ;;  %6449 = vmatpush3.bf16.msra.mxu0 %v6602_v62 }
0x2e56   :  { %v5019_v47 = vpack.c.bf16 %v8534_v41, %v8532_v23  ;;  %v6820_v50 = vpop.eup %6819  ;;  %v2857_v24 = vmul.f32 %v6818_v48, %v2825_v9  ;;  %6450 = vmatprep.subr.bf16.mxu0 %v7322_v8 }
0x2e57   :  { %v2855_v54 = vmul.f32 %v6820_v50, %v8515_v63  ;;  %v6603_v63 = vld [vmem:[%s8687_s8 + $0x18] sm:$0xff]  }
0x2e58   :  { %6433 = vmatmul.mubr.msk.bf16.vlgmr.msra.gmra.mrb[136].mxu1 %vm342_vm0, %v5019_v47  ;;  %v2867_v21 = vmul.f32 %v6851_v55, %v2857_v24 }
0x2e59   :  { %6457 = vmatpush3.bf16.msra.mxu1 %v6589_v43  ;;  %6464 = vmatprep.mubr.msk.bf16.mxu1 %vm7323_vm1, %v7322_v8  ;;  %v2865_v40 = vmul.f32 %v6851_v55, %v2855_v54 }
0x2e5a   :  { %6458 = vmatprep.subr.bf16.mxu1 %v7322_v8  ;;  %v8549_v31 = vadd.f32 %v6852_v30, %v2867_v21  ;;  %6451 = vmatpush3.bf16.msra.mxu0 %v6604_v2 }
0x2e5b   :  { %v8551_v45 = vadd.f32 %v6852_v30, %v2865_v40 }
0x2e5d   :  { %6459 = vmatpush3.bf16.msra.mxu1 %v6590_v52  ;;  %v5316_v39 = vpack.c.bf16 %v8549_v31, %v8551_v45 }
0x2e5e   :  { %6460 = vmatprep.subr.bf16.mxu1 %v7322_v8 }
0x2e61   :  { %6461 = vmatpush3.bf16.msra.mxu1 %v6591_v59 }
0x2e62   :  { %6462 = vmatprep.subr.bf16.mxu1 %v7322_v8 }
0x2e65   :  { %6463 = vmatpush3.bf16.msra.mxu1 %v6592_v57 }
0x2e66   :  { %6468 = vmatprep.subr.bf16.mxu1 %v7322_v8 }
0x2e68   :  { %6465 = vmatmul.mubr.msk.bf16.vlgmr.msra.gmra.mrb[140].mxu1 %vm342_vm0, %v5316_v39 }
0x2e69   :  { %6484 = vmatprep.mubr.msk.bf16.mxu1 %vm7323_vm1, %v7322_v8  ;;  %6469 = vmatpush3.bf16.msra.mxu1 %v6597_v15 }
0x2e6a   :  { %6470 = vmatprep.subr.bf16.mxu1 %v7322_v8 }
0x2e6d   :  { %6471 = vmatpush3.bf16.msra.mxu1 %v6599_v37 }
0x2e6e   :  { %6472 = vmatprep.subr.bf16.mxu1 %v7322_v8 }
0x2e71   :  { %6473 = vmatpush3.bf16.msra.mxu1 %v6601_v46 }
0x2e72   :  { %6474 = vmatprep.subr.bf16.mxu1 %v7322_v8 }
0x2e75   :  { %6475 = vmatpush3.bf16.msra.mxu1 %v6603_v63 }
0x2e76   :  { %6476 = vmatprep.subr.bf16.mxu1 %v7322_v8 }
0x2e79   :  { %6477 = vmatpush3.bf16.msra.mxu1 %v6605_v56 }
0x2e7a   :  { %6478 = vmatprep.subr.bf16.mxu1 %v7322_v8 }
0x2e7d   :  { %6479 = vmatpush3.bf16.msra.mxu1 %v6606_v13 }
0x2e7e   :  { %6480 = vmatprep.subr.bf16.mxu1 %v7322_v8 }
0x2e81   :  { %6481 = vmatpush3.bf16.msra.mxu1 %v6607_v0 }
0x2e82   :  { %6482 = vmatprep.subr.bf16.mxu1 %v7322_v8 }
0x2e85   :  { %6483 = vmatpush3.bf16.msra.mxu1 %v6608_v6 }
0x2f2b   :  { %v5096_v9 = vpop.f32.mrb[136].mxu1 }
0x2f2c   :  { %v8590_v10 = vadd.f32 %v5786_v7, %v5096_v9  ;;  %v6434_v11 = vpop.f32.mrb[137].mxu1 }
0x2f2d   :  { %v5099_v22 = vpop.f32.mrb[138].mxu1 }
0x2f2e   :  { %v8593_v26 = vmul.f32 0.70710677, %v8590_v10  ;;  %v8595_v12 = vadd.f32 %v5786_v7, %v5099_v22  ;;  %v6435_v25 = vpop.f32.mrb[139].mxu1 }
0x2f30   :  { %v5105_v38 = vand.u32 2147483647, %v8593_v26  ;;  %v8599_v4 = vmul.f32 0.70710677, %v8595_v12  ;;  %vm5145_vm12 = vcmp.ge.f32.partialorder %v8593_v26, 0.0 }
0x2f32   :  { %v5107_v8 = vmul.f32 0.3275911, %v5105_v38  ;;  %v5106_v18 = vand.u32 2147483647, %v8599_v4  ;;  %v5133_v1 = vsub.f32 0.0, %v5105_v38  ;;  %vm5146_vm13 = vcmp.ge.f32.partialorder %v8599_v4, 0.0 }
0x2f34   :  { %v5109_v28 = vadd.f32 1.0, %v5107_v8  ;;  %v5108_v34 = vmul.f32 0.3275911, %v5106_v18  ;;  %v5135_v53 = vmul.f32 %v5133_v1, %v5105_v38  ;;  %v5134_v19 = vsub.f32 0.0, %v5106_v18 }
0x2f36   :  { %6821 = vrcp.f32 %v5109_v28  ;;  %v5110_v44 = vadd.f32 1.0, %v5108_v34  ;;  %v5137_v52 = vmul.f32 1.442695, %v5135_v53  ;;  %v5136_v24 = vmul.f32 %v5134_v19, %v5106_v18 }
0x2f38   :  { %6823 = vrcp.f32 %v5110_v44  ;;  %v5139_v39 = vmul.f32 1.442695, %v5136_v24  ;;  %v5152_v24 = vmul.f32 0.5, %v8595_v12 }
0x2f3b   :  { %v5393_v20 = vpop.f32.mrb[140].mxu1 }
0x2f3c   :  { %v8602_v27 = vadd.f32 %v5803_v32, %v5393_v20  ;;  %v6466_v29 = vpop.f32.mrb[141].mxu1 }
0x2f3d   :  { %v5396_v58 = vpop.f32.mrb[142].mxu1 }
0x2f3e   :  { %v8605_v33 = vmul.f32 0.70710677, %v8602_v27  ;;  %v8607_v35 = vadd.f32 %v5803_v32, %v5396_v58  ;;  %v6467_v51 = vpop.f32.mrb[143].mxu1 }
0x2f40   :  { %v6822_v42 = vpop.eup %6821  ;;  %v5402_v3 = vand.u32 2147483647, %v8605_v33  ;;  %v8611_v49 = vmul.f32 0.70710677, %v8607_v35  ;;  %vm5442_vm14 = vcmp.ge.f32.partialorder %v8605_v33, 0.0 }
0x2f41   :  { %v5115_v16 = vmul.f32 1.0614054, %v6822_v42 }
0x2f42   :  { %v5404_v43 = vmul.f32 0.3275911, %v5402_v3  ;;  %v5403_v47 = vand.u32 2147483647, %v8611_v49  ;;  %v6824_v48 = vpop.eup %6823  ;;  %v5430_v17 = vsub.f32 0.0, %v5402_v3  ;;  %vm5443_vm15 = vcmp.ge.f32.partialorder %v8611_v49, 0.0 }
0x2f43   :  { %v5117_v50 = vadd.f32 -1.4531521, %v5115_v16  ;;  %v5116_v54 = vmul.f32 1.0614054, %v6824_v48 }
0x2f44   :  { %v5406_v59 = vadd.f32 1.0, %v5404_v43  ;;  %v5405_v55 = vmul.f32 0.3275911, %v5403_v47  ;;  %v5431_v62 = vsub.f32 0.0, %v5403_v47  ;;  %v5432_v56 = vmul.f32 %v5430_v17, %v5402_v3 }
0x2f45   :  { %v5119_v21 = vmul.f32 %v6822_v42, %v5117_v50  ;;  %v5118_v40 = vadd.f32 -1.4531521, %v5116_v54 }
0x2f46   :  { %6825 = vrcp.f32 %v5406_v59  ;;  %v5407_v57 = vadd.f32 1.0, %v5405_v55  ;;  %v5433_v25 = vmul.f32 %v5431_v62, %v5403_v47  ;;  %v5434_v8 = vmul.f32 1.442695, %v5432_v56 }
0x2f47   :  { %v5121_v30 = vadd.f32 1.4214138, %v5119_v21  ;;  %6827 = vpow2.f32 %v5137_v52  ;;  %v5120_v14 = vmul.f32 %v6824_v48, %v5118_v40  ;;  %v5151_v52 = vmul.f32 0.5, %v8590_v10 }
0x2f48   :  { %6829 = vrcp.f32 %v5407_v57  ;;  %v5436_v58 = vmul.f32 1.442695, %v5433_v25 }
0x2f49   :  { %v5123_v61 = vmul.f32 %v6822_v42, %v5121_v30  ;;  %v5122_v36 = vadd.f32 1.4214138, %v5120_v14  ;;  %6831 = vpow2.f32 %v5139_v39 }
0x2f4a   :  { %6833 = vpow2.f32 %v5434_v8 }
0x2f4b   :  { %v5125_v60 = vadd.f32 -0.28449672, %v5123_v61  ;;  %v5124_v15 = vmul.f32 %v6824_v48, %v5122_v36  ;;  %6835 = vpow2.f32 %v5436_v58 }
0x2f4d   :  { %v5127_v37 = vmul.f32 %v6822_v42, %v5125_v60  ;;  %v5126_v5 = vadd.f32 -0.28449672, %v5124_v15 }
0x2f4f   :  { %v5129_v46 = vadd.f32 0.2548296, %v5127_v37  ;;  %v5128_v2 = vmul.f32 %v6824_v48, %v5126_v5 }
0x2f50   :  { %v6826_v63 = vpop.eup %6825 }
0x2f51   :  { %v5131_v13 = vmul.f32 %v6822_v42, %v5129_v46  ;;  %v5412_v0 = vmul.f32 1.0614054, %v6826_v63  ;;  %v6828_v6 = vpop.eup %6827  ;;  %v5130_v7 = vadd.f32 0.2548296, %v5128_v2  ;;  %v5449_v2 = vmul.f32 0.5, %v8607_v35 }
0x2f52   :  { %v6830_v9 = vpop.eup %6829 }
0x2f53   :  { %v5141_v11 = vmul.f32 %v6828_v6, %v5131_v13  ;;  %v5414_v22 = vadd.f32 -1.4531521, %v5412_v0  ;;  %v5132_v38 = vmul.f32 %v6824_v48, %v5130_v7  ;;  %v5413_v18 = vmul.f32 1.0614054, %v6830_v9  ;;  %v6832_v28 = vpop.eup %6831  ;;  %v5792_v7 = vld [vmem:[#allocation24] ss:$0 sm:$0xff] }
0x2f54   :  { %v6834_v14 = vpop.eup %6833 }
0x2f55   :  { %v5143_v34 = vsub.f32 1.0, %v5141_v11  ;;  %v5416_v44 = vmul.f32 %v6826_v63, %v5414_v22  ;;  %v5142_v32 = vmul.f32 %v6832_v28, %v5132_v38  ;;  %v5415_v1 = vadd.f32 -1.4531521, %v5413_v18  ;;  %v6836_v60 = vpop.eup %6835  ;;  %v5809_v18 = vld [vmem:[%s7486_s4] ss:$0 sm:$0xff]  ;;  %s7337_s4 = smov [#allocation30]  }
0x2f56   :  { %s5627_s11 = sshll.u32 %s7337_s4, 4  ;;  %s5628_s11 = int_to_ptr.vmem [resolvable:$true] %s5627_s11 }
0x2f57   :  { %v5147_v20 = vsub.f32 0.0, %v5143_v34  ;;  %v5418_v29 = vadd.f32 1.4214138, %v5416_v44  ;;  %v5144_v51 = vsub.f32 1.0, %v5142_v32  ;;  %v5417_v53 = vmul.f32 %v6830_v9, %v5415_v1  ;;  %s7227_s24 = scalar_lea.vmem %s5628_s11, 256  ;;  %p7232_p11 = scmp.lt.s32.totalorder %s5628_s11, %s5628_s11 }
0x2f58   :  { %p7228_p10 = scmp.ne.s32.totalorder %s5628_s11, %s7227_s24  ;;  %p7233_p12 = scmp.lt.s32.totalorder %s7227_s24, %s7227_s24 }
0x2f59   :  { %v5149_v19 = vsel %vm5145_vm12, %v5143_v34, %v5147_v20  ;;  %v5420_v42 = vmul.f32 %v6826_v63, %v5418_v29  ;;  %v5148_v3 = vsub.f32 0.0, %v5144_v51  ;;  %v5419_v16 = vadd.f32 1.4214138, %v5417_v53 }
0x2f5a   :  { %v5153_v43 = vadd.f32 1.0, %v5149_v19  ;;  %p7234_p13 = por %p7233_p12, %p7232_p11 }
0x2f5b   :  { %v5422_v47 = vadd.f32 -0.28449672, %v5420_v42  ;;  %v5150_v48 = vsel %vm5146_vm13, %v5144_v51, %v5148_v3  ;;  %v5421_v50 = vmul.f32 %v6830_v9, %v5419_v16 }
0x2f5c   :  { %v5154_v54 = vadd.f32 1.0, %v5150_v48  ;;  %v5155_v55 = vmul.f32 %v5153_v43, %v5151_v52  ;;  %p7235_p0 = pnand %p7234_p13, %p7228_p10 }
0x2f5d   :  { %v5424_v26 = vmul.f32 %v6826_v63, %v5422_v47  ;;  %v5423_v59 = vadd.f32 -0.28449672, %v5421_v50 }
0x2f5e   :  { %v5156_v21 = vmul.f32 %v5154_v54, %v5152_v24 }
0x2f5f   :  { %v5426_v40 = vadd.f32 0.2548296, %v5424_v26  ;;  %v5425_v57 = vmul.f32 %v6830_v9, %v5423_v59 }
0x2f60   :  { %v5157_v30 = vpack.c.bf16 %v5156_v21, %v5155_v55 }
0x2f61   :  { %v5428_v39 = vmul.f32 %v6826_v63, %v5426_v40  ;;  %v5427_v61 = vadd.f32 0.2548296, %v5425_v57  ;;  %v5448_v63 = vmul.f32 0.5, %v8602_v27 }
0x2f62   :  { %6453 = vmatmul.mubr.bf16.vlgmr.msra.gmra.mrb[144].mxu0 %v5157_v30 }
0x2f63   :  { %v5438_v4 = vmul.f32 %v6834_v14, %v5428_v39  ;;  %v5429_v36 = vmul.f32 %v6830_v9, %v5427_v61 }
0x2f65   :  { %v5440_v15 = vsub.f32 1.0, %v5438_v4  ;;  %v5439_v17 = vmul.f32 %v6836_v60, %v5429_v36  ;;  %v5801_v60 = vld [vmem:[#allocation26] ss:$0 sm:$0xff] }
0x2f67   :  { %v5444_v10 = vsub.f32 0.0, %v5440_v15  ;;  %v5441_v12 = vsub.f32 1.0, %v5439_v17 }
0x2f69   :  { %v5446_v37 = vsel %vm5442_vm14, %v5440_v15, %v5444_v10  ;;  %v5445_v5 = vsub.f32 0.0, %v5441_v12 }
0x2f6a   :  { %v5450_v46 = vadd.f32 1.0, %v5446_v37  ;;  %v5802_v37 = vld [vmem:[#allocation27] ss:$0 sm:$0xff] }
0x2f6b   :  { %v5447_v62 = vsel %vm5443_vm15, %v5441_v12, %v5445_v5 }
0x2f6c   :  { %v5451_v56 = vadd.f32 1.0, %v5447_v62  ;;  %v5452_v13 = vmul.f32 %v5450_v46, %v5448_v63 }
0x2f6e   :  { %v5453_v0 = vmul.f32 %v5451_v56, %v5449_v2 }
0x2f70   :  { %v5454_v6 = vpack.c.bf16 %v5453_v0, %v5452_v13 }
0x2f72   :  { %6485 = vmatmul.mubr.bf16.vlgmr.msra.gmra.mrb[144].mxu1 %v5454_v6 }
0x3035   :  { %v5263_v9 = vpop.f32.mrb[144].mxu0 }
0x3036   :  { %v5264_v33 = vadd.f32 %v5792_v7, %v5263_v9  ;;  %v6454_v11 = vpop.f32.mrb[145].mxu0 }
0x3037   :  { %v5266_v22 = vpop.f32.mrb[146].mxu0  ;;  %v5818_v11 = vld [vmem:[%s7491_s25] ss:$0 sm:$0xff] }
0x3038   :  { %v5270_v25 = vadd.f32 %v5264_v33, %v8532_v23  ;;  %v5267_v38 = vadd.f32 %v5792_v7, %v5266_v22  ;;  %v6455_v49 = vpop.f32.mrb[147].mxu0 }
0x303a   :  { %v5271_v8 = vadd.f32 %v5267_v38, %v8534_v41  ;;  %v5274_v27 = vsel %vm342_vm0, %v5270_v25, 0.0  ;;  %v5819_v38 = vld [vmem:[%s7496_s5] ss:$0 sm:$0xff] }
0x303b   :  { %5275 = vadd.xlane.f32.xlu0 %v5274_v27 }
0x303c   :  { %v5277_v35 = vsel %vm342_vm0, %v5271_v8, 0.0 }
0x303d   :  { %5278 = vadd.xlane.f32.xlu1 %v5277_v35 }
0x3045   :  { %v5560_v28 = vpop.f32.mrb[144].mxu1 }
0x3046   :  { %v5561_v34 = vadd.f32 %v5809_v18, %v5560_v28  ;;  %v6486_v44 = vpop.f32.mrb[145].mxu1 }
0x3047   :  { %v5563_v32 = vpop.f32.mrb[146].mxu1 }
0x3048   :  { %v5567_v1 = vadd.f32 %v5561_v34, %v8551_v45  ;;  %v5564_v20 = vadd.f32 %v5809_v18, %v5563_v32  ;;  %v6487_v29 = vpop.f32.mrb[147].mxu1 }
0x304a   :  { %v5568_v23 = vadd.f32 %v5564_v20, %v8549_v31  ;;  %v5571_v58 = vsel %vm342_vm0, %v5567_v1, 0.0 }
0x304b   :  { %5572 = vadd.xlane.f32.xlu0 %v5571_v58 }
0x304c   :  { %v5574_v41 = vsel %vm342_vm0, %v5568_v23, 0.0 }
0x304d   :  { %5575 = vadd.xlane.f32.xlu1 %v5574_v41 }
0x30c8   :  { %v5276_v51 = vpop.xlane.xlu0 %5275 }
0x30c9   :  { %v5280_v53 = vmul.f32 0.015625, %v5276_v51 }
0x30ca   :  { %v5279_v19 = vpop.xlane.xlu1 %5278 }
0x30cb   :  { %v5282_v42 = vsub.f32 %v5270_v25, %v5280_v53  ;;  %v5281_v3 = vmul.f32 0.015625, %v5279_v19 }
0x30cd   :  { %v5283_v16 = vsub.f32 %v5271_v8, %v5281_v3  ;;  %v5284_v43 = vmul.f32 %v5282_v42, %v5282_v42 }
0x30cf   :  { %v5286_v47 = vsel %vm342_vm0, %v5284_v43, 0.0  ;;  %v5285_v45 = vmul.f32 %v5283_v16, %v5283_v16 }
0x30d0   :  { %5287 = vadd.xlane.f32.xlu0 %v5286_v47 }
0x30d1   :  { %v5289_v48 = vsel %vm342_vm0, %v5285_v45, 0.0 }
0x30d2   :  { %5290 = vadd.xlane.f32.xlu1 %v5289_v48 }
0x30d8   :  { %v5573_v31 = vpop.xlane.xlu0 %5572 }
0x30d9   :  { %v5577_v50 = vmul.f32 0.015625, %v5573_v31 }
0x30da   :  { %v5576_v52 = vpop.xlane.xlu1 %5575 }
0x30db   :  { %v5579_v24 = vsub.f32 %v5567_v1, %v5577_v50  ;;  %v5578_v54 = vmul.f32 0.015625, %v5576_v52 }
0x30dd   :  { %v5580_v26 = vsub.f32 %v5568_v23, %v5578_v54  ;;  %v5581_v59 = vmul.f32 %v5579_v24, %v5579_v24 }
0x30df   :  { %v5583_v55 = vsel %vm342_vm0, %v5581_v59, 0.0  ;;  %v5582_v21 = vmul.f32 %v5580_v26, %v5580_v26 }
0x30e0   :  { %5584 = vadd.xlane.f32.xlu0 %v5583_v55 }
0x30e1   :  { %v5586_v40 = vsel %vm342_vm0, %v5582_v21, 0.0  ;;  %vm5615_vm0 = vcmask 519168  }
0x30e2   :  { %5587 = vadd.xlane.f32.xlu1 %v5586_v40 }
0x315d   :  { %v5288_v57 = vpop.xlane.xlu0 %5287 }
0x315e   :  { %v5292_v30 = vmul.f32 0.015625, %v5288_v57 }
0x315f   :  { %v5291_v39 = vpop.xlane.xlu1 %5290 }
0x3160   :  { %v5294_v14 = vadd.f32 1e-12, %v5292_v30  ;;  %v5293_v61 = vmul.f32 0.015625, %v5291_v39 }
0x3162   :  { %6837 = vrsqrt.f32 %v5294_v14  ;;  %v5295_v4 = vadd.f32 1e-12, %v5293_v61 }
0x3164   :  { %6839 = vrsqrt.f32 %v5295_v4 }
0x316c   :  { %v6838_v36 = vpop.eup %6837 }
0x316d   :  { %v5298_v15 = vmul.f32 %v6838_v36, %v5282_v42  ;;  %v5585_v17 = vpop.xlane.xlu0 %5584 }
0x316e   :  { %v6840_v10 = vpop.eup %6839  ;;  %v5589_v12 = vmul.f32 0.015625, %v5585_v17 }
0x316f   :  { %v5306_v5 = vmul.f32 %v5801_v60, %v5298_v15  ;;  %v5299_v46 = vmul.f32 %v6840_v10, %v5283_v16  ;;  %v5588_v62 = vpop.xlane.xlu1 %5587 }
0x3170   :  { %v5591_v63 = vadd.f32 1e-12, %v5589_v12  ;;  %v5590_v2 = vmul.f32 0.015625, %v5588_v62 }
0x3171   :  { %v5307_v56 = vmul.f32 %v5801_v60, %v5299_v46  ;;  %v5314_v13 = vadd.f32 %v5802_v37, %v5306_v5 }
0x3172   :  { %6841 = vrsqrt.f32 %v5591_v63  ;;  %v5592_v0 = vadd.f32 1e-12, %v5590_v2 }
0x3173   :  { %v5315_v6 = vadd.f32 %v5802_v37, %v5307_v56  ;;  %v5613_v7 = vpack.c.bf16 %v5314_v13, %v5314_v13 }
0x3174   :  { %6843 = vrsqrt.f32 %v5592_v0 }
0x3175   :  { %v5614_v9 = vpack.c.bf16 %v5315_v6, %v5315_v6  ;;  %5616 = vst.msk [vmem:[#allocation30] sm:$0xf] %vm5615_vm0, %v5613_v7 }
0x3177   :  { %5617 = vst.msk [vmem:[#allocation30 + $0x8] sm:$0xf] %vm5615_vm0, %v5614_v9 }
0x317c   :  { %v6842_v33 = vpop.eup %6841 }
0x317d   :  { %v5595_v22 = vmul.f32 %v6842_v33, %v5579_v24 }
0x317e   :  { %v6844_v25 = vpop.eup %6843 }
0x317f   :  { %v5603_v49 = vmul.f32 %v5818_v11, %v5595_v22  ;;  %v5596_v8 = vmul.f32 %v6844_v25, %v5580_v26 }
0x3181   :  { %v5604_v27 = vmul.f32 %v5818_v11, %v5596_v8  ;;  %v5611_v35 = vadd.f32 %v5819_v38, %v5603_v49 }
0x3183   :  { %v5612_v18 = vadd.f32 %v5819_v38, %v5604_v27  ;;  %v5618_v28 = vpack.c.bf16 %v5611_v35, %v5611_v35 }
0x3185   :  { %v5619_v34 = vpack.c.bf16 %v5612_v18, %v5612_v18  ;;  %5620 = vst.msk [vmem:[#allocation30 + $0x4] sm:$0xf] %vm5615_vm0, %v5618_v28 }
0x3187   :  { %5621 = vst.msk [vmem:[#allocation30 + $0xc] sm:$0xf] %vm5615_vm0, %v5619_v34 }
0x3188   :  { %7238 = shalt.err (!%p7235_p0)
}
0x3189   :  { %s7239_s5 = scalar_lea.hbm %s7501_s20, 256 }
0x318a   :  { %p7240_p1 = scmp.ne.s32.totalorder %s7501_s20, %s7239_s5  ;;  %p7243_p2 = scmp.lt.u32.totalorder %s7239_s5, %s7501_s20 }
0x318c   :  { %p7245_p3 = pnand %p7243_p2, %p7240_p1 }
0x318e   :  { %7248 = shalt.err (!%p7245_p3)
}
0x318f   :  { %5633 = dma.vmem_to_hbm [thread:$0]  %s5628_s11, 256, %s7501_s20, [#allocation5], %s7301_s28, %s7301_s28, %s7302_s1  }
0x3190   :  { %7267 = dma.done.wait [#allocation5], 256  }
0x3191   :  { %7268 = vsyncadd [#allocation5], 4294967040 }
0x3192   :  { %5637 = vsyncpa [#allocation4], 1 }
0x3193   :  { %5638 = vsyncpa [#allocation7], 1 }
0x3194   :  { %5639 = vsyncpa [#allocation10], 1 }
0x3195   :  { %5640 = vsyncpa [#allocation13], 1 }
0x3196   :  { %5641 = vsyncpa [#allocation16], 1 }
0x3197   :  { %5642 = vsyncpa [#allocation19], 1 }
0x3198   :  { %5643 = vsyncpa [#allocation22], 1 }
0x3199   :  { %5644 = vsyncpa [#allocation25], 1 }
0x319a   :  { %5645 = vsyncpa [#allocation28], 1 }
0x319b   :  { %5646 = vsyncpa [#allocation5], 1 }

</bundles_post_ra>
